<compile_context>
chip_gen: v7x
topology: tpu7x:2x2x1
jax: 0.10.0
libtpu: 0.0.40
codegen_flags: <defaults>
</compile_context>

<pallas_src>
import jax
import jax.numpy as jnp
import numpy as np
from jax import lax
from jax.experimental import pallas as pl
from jax.experimental.pallas import tpu as pltpu

_SUBLANES_BF16 = 16   # bf16 packs 16 rows per vreg sublane group


# ---------------------------------------------------------------------------
# Fused kernel.  grid = (phase, d_tile index)
#   phase 0: accumulate res = x A^T - y  and  h = (x+noise) W1  over D tiles,
#            finalize h -> relu(h + b1) cast to bf16 once.
#   phase 1: per output D tile: delta_g = res @ A[:, tile],
#            den = h_bf16 @ W2[:, tile] + b2[tile],
#            out = relu((1-g*t)*x - g*delta_g + (g*t)*den).
# ---------------------------------------------------------------------------
def _fused_kernel(coef_ref, x_ref, noise_ref, a_ref, w1_ref, w2_ref,
                  y_ref, b1_ref, b2_ref, out_ref, res_s, h_s, hbf_s):
    p = pl.program_id(0)          # phase
    k = pl.program_id(1)          # D-tile index
    kd = pl.num_programs(1)

    @pl.when(p == 0)
    def _reduce():
        @pl.when(k == 0)
        def _init():
            res_s[...] = -y_ref[...]
            h_s[...] = jnp.zeros_like(h_s)

        x = x_ref[...]
        xb = x.astype(jnp.bfloat16)
        zb = (x + noise_ref[...]).astype(jnp.bfloat16)

        # x @ A_tile.T : contract the D-tile dim of both operands (NT matmul);
        # no transposed copy of A is ever materialized in HBM.
        res_s[...] += lax.dot_general(
            xb, a_ref[...], (((1,), (1,)), ((), ())),
            preferred_element_type=jnp.float32)
        h_s[...] += jnp.dot(zb, w1_ref[...],
                            preferred_element_type=jnp.float32)

        @pl.when(k == kd - 1)
        def _finalize():
            # hidden activations cast to bf16 ONCE (hoisted out of phase 1)
            hbf_s[...] = jnp.maximum(h_s[...] + b1_ref[...],
                                     0.0).astype(jnp.bfloat16)

    @pl.when(p == 1)
    def _epilogue():
        c_x = coef_ref[0]     # 1 - gamma * tau
        c_g = coef_ref[1]     # gamma
        c_d = coef_ref[2]     # gamma * tau

        # residual kept in f32 for the data-gradient matmul (cancellation-
        # sensitive); the extra MXU passes are hidden -- kernel is HBM-bound.
        delta_g = jnp.dot(res_s[...], a_ref[...].astype(jnp.float32),
                          preferred_element_type=jnp.float32)
        den = jnp.dot(hbf_s[...], w2_ref[...],
                      preferred_element_type=jnp.float32) + b2_ref[...]

        xnext = c_x * x_ref[...] - c_g * delta_g + c_d * den
        out_ref[...] = jnp.maximum(xnext, 0.0)        # clip: xnext[xnext<=0]=0


# ---------------------------------------------------------------------------
# VMEM budgeting / adaptive tile selection
# ---------------------------------------------------------------------------
def _vmem_caps():
    try:
        cap = int(pltpu.get_tpu_info().vmem_capacity_bytes)
    except Exception:
        cap = 64 * 1024 * 1024            # v7x is the smallest per-TC VMEM
    budget = min(int(cap * 0.55), 96 * 1024 * 1024)
    return budget, cap


def _footprint_bytes(d_tile, np_rows, m, hd):
    f32, bf16 = 4, 2
    b = 0
    b += 2 * np_rows * d_tile * f32 * 2           # x, noise (double-buffered)
    b += 2 * m * d_tile * bf16                    # A tile
    b += 2 * d_tile * hd * bf16                   # w1 tile
    b += 2 * hd * d_tile * bf16                   # w2 tile
    b += 2 * np_rows * m * f32                    # y
    b += 2 * hd * f32 + 2 * d_tile * f32          # b1, b2
    b += 2 * np_rows * d_tile * f32               # out
    b += np_rows * m * f32 + np_rows * hd * (f32 + bf16)   # scratch res/h/hbf
    return b


def _pick_d_tile(d, np_rows, m, hd, budget):
    divs = [t for t in range(128, d + 1, 128) if d % t == 0]
    fitting = [t for t in divs if _footprint_bytes(t, np_rows, m, hd) <= budget]
    return max(fitting) if fitting else divs[0]


def _pad_rows(a, rows):
    pad = rows - a.shape[0]
    if pad == 0:
        return a
    # NOTE: padded rows produce h = relu(b1) != 0; harmless (all ops are
    # row-independent) and the rows are sliced off before returning.
    return jnp.pad(a, ((0, pad), (0, 0)))


def reddeq_block(x_nchw, gamma, tau, A, y, noise_flat, w1, b1, w2, b2,
                 *, d_tile=None):
    N, C, H, W = x_nchw.shape
    D = C * H * W
    M = A.shape[0]
    Hd = w1.shape[1]
    assert D % 128 == 0 and M % 128 == 0 and Hd % 128 == 0

    budget, cap = _vmem_caps()
    NP = max(_SUBLANES_BF16,
             -(-N // _SUBLANES_BF16) * _SUBLANES_BF16)

    if d_tile is None:
        d_tile = _pick_d_tile(D, NP, M, Hd, budget)
    assert D % d_tile == 0 and d_tile % 128 == 0
    kd = D // d_tile
    last = kd - 1     # python int -> phase-1 index maps "stick" (no extra DMA)

    x = _pad_rows(x_nchw.reshape(N, D).astype(jnp.float32), NP)
    yp = _pad_rows(y.astype(jnp.float32), NP)
    noise = _pad_rows(noise_flat.astype(jnp.float32), NP)

    # bf16 weight streaming (halves dominant HBM traffic); f32 accumulation.
    a_bf = A.astype(jnp.bfloat16)
    w1_bf = w1.astype(jnp.bfloat16)
    w2_bf = w2.astype(jnp.bfloat16)
    b1f = b1.astype(jnp.float32).reshape(1, Hd)
    b2f = b2.astype(jnp.float32).reshape(1, D)

    # folded epilogue scalars, delivered once via SMEM
    coefs = jnp.asarray([1.0 - gamma * tau, gamma, gamma * tau],
                        dtype=jnp.float32)

    vmem_limit = int(min(cap * 3 // 4,
                         max(32 * 1024 * 1024,
                             _footprint_bytes(d_tile, NP, M, Hd) + (16 << 20))))

    out = pl.pallas_call(
        _fused_kernel,
        grid=(2, kd),
        in_specs=[
            pl.BlockSpec(memory_space=pltpu.MemorySpace.SMEM),            # coefs
            pl.BlockSpec((NP, d_tile), lambda p, k: (0, k)),              # x
            pl.BlockSpec((NP, d_tile),
                         lambda p, k: (0, k * (1 - p) + last * p)),       # noise
            pl.BlockSpec((M, d_tile), lambda p, k: (0, k)),               # A  (bf16)
            pl.BlockSpec((d_tile, Hd),
                         lambda p, k: (k * (1 - p) + last * p, 0)),       # w1 (bf16)
            pl.BlockSpec((Hd, d_tile), lambda p, k: (0, k * p)),          # w2 (bf16)
            pl.BlockSpec((NP, M), lambda p, k: (0, 0)),                   # y
            pl.BlockSpec((1, Hd), lambda p, k: (0, 0)),                   # b1
            pl.BlockSpec((1, d_tile), lambda p, k: (0, k * p)),           # b2
        ],
        out_specs=pl.BlockSpec((NP, d_tile), lambda p, k: (0, k * p)),
        out_shape=jax.ShapeDtypeStruct((NP, D), jnp.float32),
        scratch_shapes=[
            pltpu.VMEM((NP, M), jnp.float32),      # res = x A^T - y (f32)
            pltpu.VMEM((NP, Hd), jnp.float32),     # h accumulator (f32)
            pltpu.VMEM((NP, Hd), jnp.bfloat16),    # relu(h+b1), cast once
        ],
        compiler_params=pltpu.CompilerParams(
            dimension_semantics=("arbitrary", "arbitrary"),
            vmem_limit_bytes=vmem_limit),
    )(coefs, x, noise, a_bf, w1_bf, w2_bf, yp, b1f, b2f)

    return out[:N].reshape(N, C, H, W)


def reddeq_reference(x_nchw, gamma, tau, A, y, noise_flat, w1, b1, w2, b2):
    N, C, H, W = x_nchw.shape
    x = x_nchw.reshape(N, -1).astype(jnp.float32)
    delta_g = (x @ A.T - y) @ A
    z = x + noise_flat
    den = jnp.maximum(z @ w1 + b1, 0.0) @ w2 + b2
    xSubD = x - den
    xnext = x - gamma * (delta_g + tau * xSubD)
    xnext = jnp.maximum(xnext, 0.0)
    return xnext.reshape(N, C, H, W)


if __name__ == "__main__":
    # small shapes consistent with the module's image-domain forward
    N, C, H, W = 2, 4, 16, 16
    D = C * H * W          # 1024
    M = 256                # number of measurements for the data term
    Hd = 512               # denoiser hidden width
    gamma, tau = 0.1, 0.5

    key = jax.random.PRNGKey(0)
    kx, kA, ky, kn, k1, k2, kb1, kb2 = jax.random.split(key, 8)

    x = jax.random.uniform(kx, (N, C, H, W), jnp.float32)                 # non-neg image
    A = jax.random.normal(kA, (M, D), jnp.float32) * (1.0 / np.sqrt(D))
    y = jax.random.normal(ky, (N, M), jnp.float32) * 0.1
    noise = jax.random.normal(kn, (N, D), jnp.float32) * 0.01             # useNoise=True
    w1 = jax.random.normal(k1, (D, Hd), jnp.float32) * (1.0 / np.sqrt(D))
    b1 = jax.random.normal(kb1, (1, Hd), jnp.float32) * 0.01
    w2 = jax.random.normal(k2, (Hd, D), jnp.float32) * (1.0 / np.sqrt(Hd))
    b2 = jax.random.normal(kb2, (1, D), jnp.float32) * 0.01

    out = reddeq_block(x, gamma, tau, A, y, noise, w1, b1, w2, b2)
    out = jax.block_until_ready(out)

    ref = reddeq_reference(x, gamma, tau, A, y, noise, w1, b1, w2, b2)
    # bf16 weight streaming (f32 accumulation) -> looser tolerance than pure f32
    np.testing.assert_allclose(np.asarray(out), np.asarray(ref),
                               rtol=2e-2, atol=2e-2)

    print("KERNEL_OK")
</pallas_src>

<mosaic_0001>
module attributes {stable_mosaic.version = 11 : i64} {
  func.func @_fused_kernel(%arg0: i32, %arg1: i32, %arg2: memref<3xf32, #tpu.memory_space<smem>>, %arg3: memref<16x1024xf32, #tpu.memory_space<vmem>>, %arg4: memref<16x1024xf32, #tpu.memory_space<vmem>>, %arg5: memref<256x1024xbf16, #tpu.memory_space<vmem>>, %arg6: memref<1024x512xbf16, #tpu.memory_space<vmem>>, %arg7: memref<512x1024xbf16, #tpu.memory_space<vmem>>, %arg8: memref<16x256xf32, #tpu.memory_space<vmem>>, %arg9: memref<1x512xf32, #tpu.memory_space<vmem>>, %arg10: memref<1x1024xf32, #tpu.memory_space<vmem>>, %arg11: memref<16x1024xf32, #tpu.memory_space<vmem>>, %arg12: memref<16x256xf32, #tpu.memory_space<vmem>>, %arg13: memref<16x512xf32, #tpu.memory_space<vmem>>, %arg14: memref<16x512xbf16, #tpu.memory_space<vmem>>) attributes {dimension_semantics = [#tpu.dimension_semantics<arbitrary>, #tpu.dimension_semantics<arbitrary>], iteration_bounds = array<i64: 2, 1>, scalar_prefetch = 0 : i64, scratch_operands = 3 : i64, tpu.core_type = #tpu.core_type<tc>, window_params = [{transform_indices = @transform_0, window_bounds = array<i64: 3>}, {transform_indices = @transform_1, window_bounds = array<i64: 16, 1024>}, {transform_indices = @transform_2, window_bounds = array<i64: 16, 1024>}, {transform_indices = @transform_3, window_bounds = array<i64: 256, 1024>}, {transform_indices = @transform_4, window_bounds = array<i64: 1024, 512>}, {transform_indices = @transform_5, window_bounds = array<i64: 512, 1024>}, {pipeline_mode = #tpu.pipeline_mode<synchronous>, transform_indices = @transform_6, window_bounds = array<i64: 16, 256>}, {pipeline_mode = #tpu.pipeline_mode<synchronous>, transform_indices = @transform_7, window_bounds = array<i64: 1, 512>}, {transform_indices = @transform_8, window_bounds = array<i64: 1, 1024>}, {transform_indices = @transform_9, window_bounds = array<i64: 16, 1024>}]} {
    %c0_i32 = arith.constant 0 : i32
    %0 = arith.cmpi eq, %arg0, %c0_i32 : i32
    %1 = arith.extui %0 : i1 to i32
    %c0_i32_0 = arith.constant 0 : i32
    %2 = arith.cmpi ne, %1, %c0_i32_0 : i32
    scf.if %2 {
      %c0_i32_2 = arith.constant 0 : i32
      %6 = arith.cmpi eq, %arg1, %c0_i32_2 : i32
      %7 = arith.extui %6 : i1 to i32
      %c0_i32_3 = arith.constant 0 : i32
      %8 = arith.cmpi ne, %7, %c0_i32_3 : i32
      scf.if %8 {
        %c0_22 = arith.constant 0 : index
        %c0_23 = arith.constant 0 : index
        %27 = vector.load %arg8[%c0_22, %c0_23] : memref<16x256xf32, #tpu.memory_space<vmem>>, vector<16x256xf32>
        %cst_24 = arith.constant 0.000000e+00 : f32
        %28 = vector.broadcast %cst_24 : f32 to vector<16x256xf32>
        %29 = arith.subf %28, %27 : vector<16x256xf32>
        %c0_25 = arith.constant 0 : index
        %c0_26 = arith.constant 0 : index
        %30 = vector.load %arg12[%c0_25, %c0_26] : memref<16x256xf32, #tpu.memory_space<vmem>>, vector<16x256xf32>
        tpu.vector_store %arg12[%c0_25, %c0_26], %29 {strides = array<i32>} : memref<16x256xf32, #tpu.memory_space<vmem>>, vector<16x256xf32>,
        %cst_27 = arith.constant 0.000000e+00 : f32
        %31 = vector.broadcast %cst_27 : f32 to vector<16x512xf32>
        %c0_28 = arith.constant 0 : index
        %c0_29 = arith.constant 0 : index
        %32 = vector.load %arg13[%c0_28, %c0_29] : memref<16x512xf32, #tpu.memory_space<vmem>>, vector<16x512xf32>
        tpu.vector_store %arg13[%c0_28, %c0_29], %31 {strides = array<i32>} : memref<16x512xf32, #tpu.memory_space<vmem>>, vector<16x512xf32>,
      } else {
      }
      %c0 = arith.constant 0 : index
      %c0_4 = arith.constant 0 : index
      %9 = vector.load %arg3[%c0, %c0_4] : memref<16x1024xf32, #tpu.memory_space<vmem>>, vector<16x1024xf32>
      %10 = arith.truncf %9 : vector<16x1024xf32> to vector<16x1024xbf16>
      %c0_5 = arith.constant 0 : index
      %c0_6 = arith.constant 0 : index
      %11 = vector.load %arg4[%c0_5, %c0_6] : memref<16x1024xf32, #tpu.memory_space<vmem>>, vector<16x1024xf32>
      %12 = arith.addf %9, %11 : vector<16x1024xf32>
      %13 = arith.truncf %12 : vector<16x1024xf32> to vector<16x1024xbf16>
      %c0_7 = arith.constant 0 : index
      %c0_8 = arith.constant 0 : index
      %14 = vector.load %arg12[%c0_7, %c0_8] : memref<16x256xf32, #tpu.memory_space<vmem>>, vector<16x256xf32>
      %c0_9 = arith.constant 0 : index
      %c0_10 = arith.constant 0 : index
      %15 = vector.load %arg5[%c0_9, %c0_10] : memref<256x1024xbf16, #tpu.memory_space<vmem>>, vector<256x1024xbf16>
      %cst = arith.constant dense<0.000000e+00> : vector<16x256xf32>
      %16 = tpu.matmul %10, %15, %cst {dimension_numbers = #tpu.dot_dimension_numbers<[1], [1], [0], [0], [0, 0, 1, 0], [], []>} : vector<16x1024xbf16>, vector<256x1024xbf16>, vector<16x256xf32> -> vector<16x256xf32>
      %17 = arith.addf %14, %16 : vector<16x256xf32>
      %c0_11 = arith.constant 0 : index
      %c0_12 = arith.constant 0 : index
      %18 = vector.load %arg12[%c0_11, %c0_12] : memref<16x256xf32, #tpu.memory_space<vmem>>, vector<16x256xf32>
      tpu.vector_store %arg12[%c0_11, %c0_12], %17 {strides = array<i32>} : memref<16x256xf32, #tpu.memory_space<vmem>>, vector<16x256xf32>,
      %c0_13 = arith.constant 0 : index
      %c0_14 = arith.constant 0 : index
      %19 = vector.load %arg13[%c0_13, %c0_14] : memref<16x512xf32, #tpu.memory_space<vmem>>, vector<16x512xf32>
      %c0_15 = arith.constant 0 : index
      %c0_16 = arith.constant 0 : index
      %20 = vector.load %arg6[%c0_15, %c0_16] : memref<1024x512xbf16, #tpu.memory_space<vmem>>, vector<1024x512xbf16>
      %cst_17 = arith.constant dense<0.000000e+00> : vector<16x512xf32>
      %21 = tpu.matmul %13, %20, %cst_17 {dimension_numbers = #tpu.dot_dimension_numbers<[1], [0], [0], [1], [0, 0, 1, 1], [], []>} : vector<16x1024xbf16>, vector<1024x512xbf16>, vector<16x512xf32> -> vector<16x512xf32>
      %22 = arith.addf %19, %21 : vector<16x512xf32>
      %c0_18 = arith.constant 0 : index
      %c0_19 = arith.constant 0 : index
      %23 = vector.load %arg13[%c0_18, %c0_19] : memref<16x512xf32, #tpu.memory_space<vmem>>, vector<16x512xf32>
      tpu.vector_store %arg13[%c0_18, %c0_19], %22 {strides = array<i32>} : memref<16x512xf32, #tpu.memory_space<vmem>>, vector<16x512xf32>,
      %c0_i32_20 = arith.constant 0 : i32
      %24 = arith.cmpi eq, %arg1, %c0_i32_20 : i32
      %25 = arith.extui %24 : i1 to i32
      %c0_i32_21 = arith.constant 0 : i32
      %26 = arith.cmpi ne, %25, %c0_i32_21 : i32
      scf.if %26 {
        %c0_22 = arith.constant 0 : index
        %c0_23 = arith.constant 0 : index
        %27 = vector.load %arg13[%c0_22, %c0_23] : memref<16x512xf32, #tpu.memory_space<vmem>>, vector<16x512xf32>
        %c0_24 = arith.constant 0 : index
        %c0_25 = arith.constant 0 : index
        %28 = vector.load %arg9[%c0_24, %c0_25] : memref<1x512xf32, #tpu.memory_space<vmem>>, vector<1x512xf32>
        %29 = vector.broadcast %28 : vector<1x512xf32> to vector<16x512xf32>
        %30 = arith.addf %27, %29 : vector<16x512xf32>
        %cst_26 = arith.constant 0.000000e+00 : f32
        %31 = vector.broadcast %cst_26 : f32 to vector<16x512xf32>
        %32 = arith.maximumf %30, %31 : vector<16x512xf32>
        %33 = arith.truncf %32 : vector<16x512xf32> to vector<16x512xbf16>
        %c0_27 = arith.constant 0 : index
        %c0_28 = arith.constant 0 : index
        %34 = vector.load %arg14[%c0_27, %c0_28] : memref<16x512xbf16, #tpu.memory_space<vmem>>, vector<16x512xbf16>
        tpu.vector_store %arg14[%c0_27, %c0_28], %33 {strides = array<i32>} : memref<16x512xbf16, #tpu.memory_space<vmem>>, vector<16x512xbf16>,
      } else {
      }
    } else {
    }
    %c1_i32 = arith.constant 1 : i32
    %3 = arith.cmpi eq, %arg0, %c1_i32 : i32
    %4 = arith.extui %3 : i1 to i32
    %c0_i32_1 = arith.constant 0 : i32
    %5 = arith.cmpi ne, %4, %c0_i32_1 : i32
    scf.if %5 {
      %c0 = arith.constant 0 : index
      %6 = memref.load %arg2[%c0] : memref<3xf32, #tpu.memory_space<smem>>
      %c1 = arith.constant 1 : index
      %7 = memref.load %arg2[%c1] : memref<3xf32, #tpu.memory_space<smem>>
      %c2 = arith.constant 2 : index
      %8 = memref.load %arg2[%c2] : memref<3xf32, #tpu.memory_space<smem>>
      %c0_2 = arith.constant 0 : index
      %c0_3 = arith.constant 0 : index
      %9 = vector.load %arg12[%c0_2, %c0_3] : memref<16x256xf32, #tpu.memory_space<vmem>>, vector<16x256xf32>
      %c0_4 = arith.constant 0 : index
      %c0_5 = arith.constant 0 : index
      %10 = vector.load %arg5[%c0_4, %c0_5] : memref<256x1024xbf16, #tpu.memory_space<vmem>>, vector<256x1024xbf16>
      %11 = arith.extf %10 : vector<256x1024xbf16> to vector<256x1024xf32>
      %cst = arith.constant dense<0.000000e+00> : vector<16x1024xf32>
      %12 = tpu.matmul %9, %11, %cst {dimension_numbers = #tpu.dot_dimension_numbers<[1], [0], [0], [1], [0, 0, 1, 1], [], []>} : vector<16x256xf32>, vector<256x1024xf32>, vector<16x1024xf32> -> vector<16x1024xf32>
      %c0_6 = arith.constant 0 : index
      %c0_7 = arith.constant 0 : index
      %13 = vector.load %arg14[%c0_6, %c0_7] : memref<16x512xbf16, #tpu.memory_space<vmem>>, vector<16x512xbf16>
      %c0_8 = arith.constant 0 : index
      %c0_9 = arith.constant 0 : index
      %14 = vector.load %arg7[%c0_8, %c0_9] : memref<512x1024xbf16, #tpu.memory_space<vmem>>, vector<512x1024xbf16>
      %cst_10 = arith.constant dense<0.000000e+00> : vector<16x1024xf32>
      %15 = tpu.matmul %13, %14, %cst_10 {dimension_numbers = #tpu.dot_dimension_numbers<[1], [0], [0], [1], [0, 0, 1, 1], [], []>} : vector<16x512xbf16>, vector<512x1024xbf16>, vector<16x1024xf32> -> vector<16x1024xf32>
      %c0_11 = arith.constant 0 : index
      %c0_12 = arith.constant 0 : index
      %16 = vector.load %arg10[%c0_11, %c0_12] : memref<1x1024xf32, #tpu.memory_space<vmem>>, vector<1x1024xf32>
      %17 = vector.broadcast %16 : vector<1x1024xf32> to vector<16x1024xf32>
      %18 = arith.addf %15, %17 : vector<16x1024xf32>
      %c0_13 = arith.constant 0 : index
      %c0_14 = arith.constant 0 : index
      %19 = vector.load %arg3[%c0_13, %c0_14] : memref<16x1024xf32, #tpu.memory_space<vmem>>, vector<16x1024xf32>
      %20 = vector.broadcast %6 : f32 to vector<16x1024xf32>
      %21 = arith.mulf %20, %19 : vector<16x1024xf32>
      %22 = vector.broadcast %7 : f32 to vector<16x1024xf32>
      %23 = arith.mulf %22, %12 : vector<16x1024xf32>
      %24 = arith.subf %21, %23 : vector<16x1024xf32>
      %25 = vector.broadcast %8 : f32 to vector<16x1024xf32>
      %26 = arith.mulf %25, %18 : vector<16x1024xf32>
      %27 = arith.addf %24, %26 : vector<16x1024xf32>
      %cst_15 = arith.constant 0.000000e+00 : f32
      %28 = vector.broadcast %cst_15 : f32 to vector<16x1024xf32>
      %29 = arith.maximumf %27, %28 : vector<16x1024xf32>
      %c0_16 = arith.constant 0 : index
      %c0_17 = arith.constant 0 : index
      %30 = vector.load %arg11[%c0_16, %c0_17] : memref<16x1024xf32, #tpu.memory_space<vmem>>, vector<16x1024xf32>
      tpu.vector_store %arg11[%c0_16, %c0_17], %29 {strides = array<i32>} : memref<16x1024xf32, #tpu.memory_space<vmem>>, vector<16x1024xf32>,
    } else {
    }
    return
  }
  func.func @transform_0(%arg0: i32, %arg1: i32) -> i32 {
    %c0_i32 = arith.constant 0 : i32
    %c0_i32_0 = arith.constant 0 : i32
    return %c0_i32 : i32
  }
  func.func @transform_1(%arg0: i32, %arg1: i32) -> (i32, i32) {
    %c0_i32 = arith.constant 0 : i32
    %c0_i32_0 = arith.constant 0 : i32
    return %c0_i32, %arg1 : i32, i32
  }
  func.func @transform_2(%arg0: i32, %arg1: i32) -> (i32, i32) {
    %c1_i32 = arith.constant 1 : i32
    %0 = arith.subi %c1_i32, %arg0 : i32
    %1 = arith.muli %arg1, %0 : i32
    %c0_i32 = arith.constant 0 : i32
    %2 = arith.muli %c0_i32, %arg0 : i32
    %3 = arith.addi %1, %2 : i32
    %c0_i32_0 = arith.constant 0 : i32
    %c0_i32_1 = arith.constant 0 : i32
    return %c0_i32_0, %3 : i32, i32
  }
  func.func @transform_3(%arg0: i32, %arg1: i32) -> (i32, i32) {
    %c0_i32 = arith.constant 0 : i32
    %c0_i32_0 = arith.constant 0 : i32
    return %c0_i32, %arg1 : i32, i32
  }
  func.func @transform_4(%arg0: i32, %arg1: i32) -> (i32, i32) {
    %c1_i32 = arith.constant 1 : i32
    %0 = arith.subi %c1_i32, %arg0 : i32
    %1 = arith.muli %arg1, %0 : i32
    %c0_i32 = arith.constant 0 : i32
    %2 = arith.muli %c0_i32, %arg0 : i32
    %3 = arith.addi %1, %2 : i32
    %c0_i32_0 = arith.constant 0 : i32
    %c0_i32_1 = arith.constant 0 : i32
    return %3, %c0_i32_0 : i32, i32
  }
  func.func @transform_5(%arg0: i32, %arg1: i32) -> (i32, i32) {
    %0 = arith.muli %arg1, %arg0 : i32
    %c0_i32 = arith.constant 0 : i32
    %c0_i32_0 = arith.constant 0 : i32
    return %c0_i32, %0 : i32, i32
  }
  func.func @transform_6(%arg0: i32, %arg1: i32) -> (i32, i32) {
    %c0_i32 = arith.constant 0 : i32
    %c0_i32_0 = arith.constant 0 : i32
    %c0_i32_1 = arith.constant 0 : i32
    return %c0_i32, %c0_i32_0 : i32, i32
  }
  func.func @transform_7(%arg0: i32, %arg1: i32) -> (i32, i32) {
    %c0_i32 = arith.constant 0 : i32
    %c0_i32_0 = arith.constant 0 : i32
    %c0_i32_1 = arith.constant 0 : i32
    return %c0_i32, %c0_i32_0 : i32, i32
  }
  func.func @transform_8(%arg0: i32, %arg1: i32) -> (i32, i32) {
    %0 = arith.muli %arg1, %arg0 : i32
    %c0_i32 = arith.constant 0 : i32
    %c0_i32_0 = arith.constant 0 : i32
    return %c0_i32, %0 : i32, i32
  }
  func.func @transform_9(%arg0: i32, %arg1: i32) -> (i32, i32) {
    %0 = arith.muli %arg1, %arg0 : i32
    %c0_i32 = arith.constant 0 : i32
    %c0_i32_0 = arith.constant 0 : i32
    return %c0_i32, %0 : i32, i32
  }
}

</mosaic_0001>

<bundles_post_ra>
// kernel: tpu_custom_call.1
= control target key start
LH: loop header
LB: loop body
LE: loop exit
PB: predicated region body
PF: predicated region fallthrough
CT: control target
= control target key end

     0   :  { %s9035_s0 = inlined_call_operand.hbm [shape: f32[3], index: 0, kind: input, shape index: {}]   ;;  %s9036_s1 = inlined_call_operand.hbm [shape: f32[16,1024], index: 1, kind: input, shape index: {}]   ;;  %s9037_s2 = inlined_call_operand.hbm [shape: f32[16,1024], index: 2, kind: input, shape index: {}]   ;;  %s9038_s3 = inlined_call_operand.hbm [shape: bf16[256,1024], index: 3, kind: input, shape index: {}]   ;;  %s9039_s4 = inlined_call_operand.hbm [shape: bf16[1024,512], index: 4, kind: input, shape index: {}]   ;;  %s9040_s5 = inlined_call_operand.hbm [shape: bf16[512,1024], index: 5, kind: input, shape index: {}]   ;;  %s9041_s6 = inlined_call_operand.hbm [shape: f32[16,256], index: 6, kind: input, shape index: {}]   ;;  %s9042_s7 = inlined_call_operand.vmem [shape: f32[1,512], index: 7, kind: input, shape index: {}]   ;;  %s9043_s8 = inlined_call_operand.vmem [shape: f32[1,1024], index: 8, kind: input, shape index: {}]   ;;  %s9044_s9 = inlined_call_operand.hbm [shape: f32[16,1024], index: 9, kind: output, shape index: {}]  }
   0x1   :  { %9061 = sst [smem:[#allocation26_spill]] %s9035_s0 }
   0x2   :  { %9062 = sst [smem:[#allocation27_spill]] %s9038_s3 }
   0x3   :  { %9063 = sst [smem:[#allocation28_spill]] %s9039_s4 }
   0x4   :  { %9064 = sst [smem:[#allocation29_spill]] %s9042_s7 }
   0x5   :  { %9065 = sst [smem:[#allocation30_spill]] %s9043_s8 }
   0x6   :  { %9066 = sst [smem:[#allocation31_spill]] %s9044_s9 }
   0x7   :  { %14 = vsyncpa [#allocation8], 0 }
   0x8   :  { %15 = vsyncpa [#allocation6], 0 }
   0x9   :  { %16 = vsyncpa [#allocation11], 0 }
   0xa   :  { %18 = vsyncpa [#allocation11 + $0x1], 0 }
   0xb   :  { %19 = vsyncpa [#allocation14], 0 }
   0xc   :  { %21 = vsyncpa [#allocation14 + $0x1], 0 }
   0xd   :  { %22 = vsyncpa [#allocation17], 0 }
   0xe   :  { %23 = vsyncpa [#allocation7], 0 }
   0xf   :  { %25 = vsyncpa [#allocation7 + $0x1], 0  ;;  %s8474_s30 = smov 0   ;;  %s8476_s10 = smov 0  }
  0x10   :  { %s8478_s11 = smov 0  }
  0x11 LB: > { %s8408_s12 = smov [#allocation12]   ;;  %s8490_s14 = sadd.s32 4294967295, %s8406_s11   ;;  %s8406_s11 = sphi %s8478_s11, %s31_s11   ;;  %s8402_s10 = sphi %s8476_s10, %s9104_s10   ;;  %s8398_s30 = sphi %s8474_s30, %s9103_s30  }
  0x12   : > { %s347_s13 = sshll.u32 %s8408_s12, 4  ;;  %p6530_p0 = scmp.ge.s32.totalorder %s8406_s11, 1  ;;  %s8500_s13 = int_to_ptr.vmem [resolvable:$true] %s347_s13 }
  0x13   : > { %p307_p1 = scmp.lt.s32.totalorder %s8406_s11, 3  ;;  %p9045_p2 = scmp.eq.s32.totalorder %s8490_s14, 0 }
  0x14   : > { %p7711_p7 = scmp.lt.s32.totalorder %s8406_s11, 2  ;;  %s9053_s18 = sand.u32 1, %s8406_s11  }
  0x15   : > { %p8496_p3 = pnand %p6530_p0, %p307_p1  ;;  %s9069_s3 = sld [smem:[#allocation27_spill]] }
  0x17   : > { %s9067_s16 = scalar_select %p8496_p3, 1, 0 }
  0x18   : > { %p7680_p4 = pneg %p8496_p3 }
  0x1a   : > { %p8507_p6 = pnand %p9045_p2, %p7680_p4 }
  0x1b   : > { %s8149_s21 = scalar_lea.hbm %s9069_s3, 16384 }
  0x1c   : > { %s9068_s17 = scalar_select %p8507_p6, 1, 0 }
  0x1d   : > { %p8150_p9 = scmp.ne.s32.totalorder %s9069_s3, %s8149_s21  ;;  %p8522_p10 = pneg %p8507_p6 }
  0x1e   : > { %p8156_p13 = scmp.lt.u32.totalorder %s8149_s21, %s9069_s3 }
  0x1f   : > { %s9070_s24 = scalar_select %p8522_p10, 1, 0 }
  0x20   : > { %p8152_p11 = pnand %p8522_p10, %p8150_p9 }
  0x22   : > { %p8153_p12 = pneg %p8152_p11 }
  0x24   : > { %p8158_p0 = pnand %p8156_p13, %p8153_p12 }
  0x26   : > { %8161 = shalt.err (!%p8158_p0)
}
  0x27   : > { %s8162_s27 = scalar_lea.vmem %s8500_s13, 16384  ;;  %p8170_p2 = scmp.lt.s32.totalorder %s8500_s13, %s8500_s13 }
  0x28   : > { %p8163_p1 = scmp.ne.s32.totalorder %s8500_s13, %s8162_s27  ;;  %p8171_p8 = scmp.lt.s32.totalorder %s8162_s27, %s8162_s27 }
  0x2a   : > { %p8165_p4 = pnand %p8163_p1, %p8522_p10  ;;  %p8172_p9 = por %p8171_p8, %p8170_p2 }
  0x2c   : > { %p8166_p5 = pneg %p8165_p4 }
  0x2e   : > { %p8173_p11 = pnand %p8172_p9, %p8166_p5 }
  0x30   : > { %8176 = shalt.err (!%p8173_p11)
}
  0x31   : > { %s9051_s28 = smov 512   ;;  %s9052_s29 = smov 32  }
  0x32   : > { %7689 = dma.hbm_to_vmem [thread:$0]  (!%p8507_p6), %s9069_s3, 16384, %s8500_s13, [#allocation11], %s9051_s28, %s9051_s28, %s9052_s29  }
  0x33   : > { %p9071_p12 = scmp.eq.s32.totalorder %s8406_s11, 0  ;;  %s8411_s21 = smov [#allocation13]  }
  0x34   : > { %s414_s22 = sshll.u32 %s8411_s21, 4  ;;  %s8556_s23 = scalar_lea.sflag [#allocation14], %s9053_s18  ;;  %s415_s22 = int_to_ptr.vmem [resolvable:$true] %s414_s22 }
  0x35   : > { %p8550_p2 = pnand %p9071_p12, %p7711_p7  ;;  %s9073_s4 = sld [smem:[#allocation28_spill]] }
  0x37   : > { %s9072_s20 = scalar_select %p8550_p2, 1, 0 }
  0x38   : > { %p8566_p7 = pneg %p8550_p2 }
  0x3a   : > { %s9074_s13 = scalar_select %p8566_p7, 1, 0 }
  0x3b   : > { %s8177_s27 = scalar_lea.hbm %s9073_s4, 32768 }
  0x3c   : > { %p8178_p5 = scmp.ne.s32.totalorder %s9073_s4, %s8177_s27  ;;  %p8184_p0 = scmp.lt.u32.totalorder %s8177_s27, %s9073_s4 }
  0x3e   : > { %p8180_p8 = pnand %p8566_p7, %p8178_p5 }
  0x40   : > { %p8181_p13 = pneg %p8180_p8 }
  0x42   : > { %p8186_p1 = pnand %p8184_p0, %p8181_p13 }
  0x44   : > { %8189 = shalt.err (!%p8186_p1)
}
  0x45   : > { %s8190_s25 = scalar_lea.vmem %s415_s22, 32768  ;;  %s8197_s15 = scalar_lea.vmem %s415_s22, 65536 }
  0x46   : > { %p8191_p4 = scmp.ne.s32.totalorder %s415_s22, %s8190_s25  ;;  %p8198_p12 = scmp.lt.s32.totalorder %s415_s22, %s415_s22 }
  0x47   : > { %p8199_p3 = scmp.lt.s32.totalorder %s8197_s15, %s8190_s25 }
  0x48   : > { %p8193_p9 = pnand %p8191_p4, %p8566_p7 }
  0x49   : > { %p8200_p6 = por %p8199_p3, %p8198_p12 }
  0x4a   : > { %p8194_p11 = pneg %p8193_p9 }
  0x4c   : > { %p8201_p10 = pnand %p8200_p6, %p8194_p11 }
  0x4e   : > { %8204 = shalt.err (!%p8201_p10)
}
  0x4f   : > { %s9059_s26 = smov 256   ;;  %s9060_s27 = smov 16  }
  0x50   : > { %7699 = dma.hbm_to_vmem [thread:$0]  (!%p8550_p2), %s9073_s4, 32768, %s415_s22, %s8556_s23, %s9059_s26, %s9059_s26, %s9060_s27  }
  0x51   : > { %s43_s21 = sadd.s32 1, %s8402_s10  ;;  %s8414_s25 = smov [#allocation9]  }
  0x52   : > { %p45_p5 = scmp.ge.s32.totalorder %s43_s21, 2  ;;  %s331_s15 = sshll.u32 %s8414_s25, 4  ;;  %s332_s15 = int_to_ptr.vmem [resolvable:$true] %s331_s15 }
  0x53   : > { %s9075_s0 = sld [smem:[#allocation26_spill]]  ;;  %p9076_p6 = scmp.ne.s32.totalorder %s9070_s24, 0 }
  0x59   : > { %s8205_s18 = scalar_lea.hbm %s9075_s0, 16 }
  0x5a   : > { %p8206_p3 = scmp.ne.s32.totalorder %s9075_s0, %s8205_s18  ;;  %p8212_p13 = scmp.lt.u32.totalorder %s8205_s18, %s9075_s0 }
  0x5c   : > { %p8208_p10 = pnand %p8206_p3, %p9076_p6 }
  0x5e   : > { %p8209_p8 = pneg %p8208_p10 }
  0x60   : > { %p8214_p0 = pnand %p8212_p13, %p8209_p8 }
  0x62   : > { %8217 = shalt.err (!%p8214_p0)
}
  0x63   : > { %s8415_s22 = smov [#allocation5]   ;;  %p9077_p1 = scmp.ne.s32.totalorder %s9068_s17, 0 }
  0x64   : > { %s9106_s21 = smov (%p45_p5, %s43_s21), 0  ;;  %s8218_s28 = scalar_lea.hbm %s9036_s1, 2048 }
  0x65   : > { %7683 = dma.hbm_to_smem (!%p9077_p1), %s9075_s0, 16, %s8415_s22, [#allocation8]  }
  0x66   : > { %p8219_p4 = scmp.ne.s32.totalorder %s9036_s1, %s8218_s28  ;;  %p8225_p12 = scmp.lt.u32.totalorder %s8218_s28, %s9036_s1 }
  0x68   : > { %p8221_p9 = pnand %p8219_p4, %p9076_p6 }
  0x6a   : > { %p8222_p11 = pneg %p8221_p9 }
  0x6c   : > { %p8227_p3 = pnand %p8225_p12, %p8222_p11 }
  0x6e   : > { %8230 = shalt.err (!%p8227_p3)
}
  0x6f   : > { %s8231_s25 = scalar_lea.vmem %s332_s15, 2048  ;;  %p8239_p13 = scmp.lt.s32.totalorder %s332_s15, %s332_s15 }
  0x70   : > { %p8232_p5 = scmp.ne.s32.totalorder %s332_s15, %s8231_s25  ;;  %p8240_p0 = scmp.lt.s32.totalorder %s8231_s25, %s8231_s25 }
  0x72   : > { %p8234_p10 = pnand %p8232_p5, %p9076_p6  ;;  %p8241_p2 = por %p8240_p0, %p8239_p13 }
  0x74   : > { %p8235_p8 = pneg %p8234_p10 }
  0x76   : > { %p8242_p7 = pnand %p8241_p2, %p8235_p8 }
  0x78   : > { %8245 = shalt.err (!%p8242_p7)
}
  0x79   : > { %s8416_s22 = smov 1024   ;;  %s8417_s12 = smov 64  }
  0x7a   : > { %7686 = dma.hbm_to_vmem [thread:$0]  (!%p9077_p1), %s9036_s1, 2048, %s332_s15, [#allocation6], %s8416_s22, %s8416_s22, %s8417_s12  }
  0x7b   : > { %s8418_s9 = smov [#allocation16]   ;;  %s8419_s29 = smov [#allocation10]  }
  0x7c   : > { %s360_s28 = sshll.u32 %s8418_s9, 4  ;;  %s390_s7 = sshll.u32 %s8419_s29, 4  ;;  %s361_s28 = int_to_ptr.vmem [resolvable:$true] %s360_s28  ;;  %s391_s7 = int_to_ptr.vmem [resolvable:$true] %s390_s7 }
  0x7d   : > { %s8246_s25 = scalar_lea.hbm %s9041_s6, 512 }
  0x7e   : > { %p8247_p2 = scmp.ne.s32.totalorder %s9041_s6, %s8246_s25  ;;  %p8253_p9 = scmp.lt.u32.totalorder %s8246_s25, %s9041_s6 }
  0x80   : > { %p8249_p7 = pnand %p8247_p2, %p9076_p6 }
  0x82   : > { %p8250_p4 = pneg %p8249_p7 }
  0x84   : > { %p8255_p11 = pnand %p8253_p9, %p8250_p4 }
  0x86   : > { %8258 = shalt.err (!%p8255_p11)
}
  0x87   : > { %s8259_s15 = scalar_lea.vmem %s361_s28, 512  ;;  %p8267_p10 = scmp.lt.s32.totalorder %s361_s28, %s361_s28 }
  0x88   : > { %p8260_p12 = scmp.ne.s32.totalorder %s361_s28, %s8259_s15  ;;  %p8268_p8 = scmp.lt.s32.totalorder %s8259_s15, %s8259_s15 }
  0x8a   : > { %p8262_p3 = pnand %p8260_p12, %p9076_p6  ;;  %p8269_p13 = por %p8268_p8, %p8267_p10 }
  0x8c   : > { %p8263_p5 = pneg %p8262_p3 }
  0x8e   : > { %p8270_p0 = pnand %p8269_p13, %p8263_p5 }
  0x90   : > { %8273 = shalt.err (!%p8270_p0)
}
  0x91   : > { %s9078_s26 = smov 16   ;;  %s9079_s27 = smov 256  }
  0x92   : > { %7692 = dma.hbm_to_vmem [thread:$0]  (!%p9077_p1), %s9041_s6, 512, %s361_s28, [#allocation17], %s9079_s27, %s9079_s27, %s9078_s26  }
  0x93   : > { %s9080_s24 = sand.u32 1, %s8406_s11   ;;  %s8274_s29 = scalar_lea.hbm %s9037_s2, 2048 }
  0x94   : > { %s378_s19 = scalar_lea.sflag [#allocation11], %s9080_s24  ;;  %p8275_p6 = scmp.ne.s32.totalorder %s9037_s2, %s8274_s29 }
  0x95   : > { %p9081_p2 = scmp.ne.s32.totalorder %s9074_s13, 0  ;;  %p8281_p9 = scmp.lt.u32.totalorder %s8274_s29, %s9037_s2 }
  0x97   : > { %p8277_p7 = pnand %p8275_p6, %p9081_p2 }
  0x99   : > { %p8278_p4 = pneg %p8277_p7 }
  0x9b   : > { %p8283_p11 = pnand %p8281_p9, %p8278_p4 }
  0x9d   : > { %8286 = shalt.err (!%p8283_p11)
}
  0x9e   : > { %s8287_s28 = scalar_lea.vmem %s391_s7, 2048  ;;  %s8294_s15 = scalar_lea.vmem %s391_s7, 4096 }
  0x9f   : > { %p8288_p1 = scmp.ne.s32.totalorder %s391_s7, %s8287_s28  ;;  %p8295_p5 = scmp.lt.s32.totalorder %s391_s7, %s391_s7 }
  0xa0   : > { %p8296_p10 = scmp.lt.s32.totalorder %s8294_s15, %s8287_s28 }
  0xa1   : > { %p8290_p12 = pnand %p8288_p1, %p9081_p2 }
  0xa2   : > { %p8297_p8 = por %p8296_p10, %p8295_p5 }
  0xa3   : > { %p8291_p3 = pneg %p8290_p12 }
  0xa5   : > { %p8298_p13 = pnand %p8297_p8, %p8291_p3 }
  0xa7   : > { %8301 = shalt.err (!%p8298_p13)
}
  0xa8   : > { %p9082_p0 = scmp.ne.s32.totalorder %s9072_s20, 0  ;;  %s8420_s0 = smov [#allocation15]  }
  0xa9   : > { %s436_s4 = sshll.u32 %s8420_s0, 4  ;;  %s8302_s9 = scalar_lea.hbm %s9040_s5, 32768  ;;  %s437_s4 = int_to_ptr.vmem [resolvable:$true] %s436_s4 }
  0xaa   : > { %7696 = dma.hbm_to_vmem [thread:$0]  (!%p9082_p0), %s9037_s2, 2048, %s391_s7, %s378_s19, %s8416_s22, %s8416_s22, %s8417_s12  }
  0xab   : > { %p8303_p6 = scmp.ne.s32.totalorder %s9040_s5, %s8302_s9  ;;  %p8309_p9 = scmp.lt.u32.totalorder %s8302_s9, %s9040_s5 }
  0xad   : > { %p8305_p7 = pnand %p8303_p6, %p9081_p2 }
  0xaf   : > { %p8306_p4 = pneg %p8305_p7 }
  0xb1   : > { %p8311_p11 = pnand %p8309_p9, %p8306_p4 }
  0xb3   : > { %8314 = shalt.err (!%p8311_p11)
}
  0xb4   : > { %s8315_s22 = scalar_lea.vmem %s437_s4, 32768  ;;  %s8322_s12 = scalar_lea.vmem %s437_s4, 65536 }
  0xb5   : > { %p8316_p1 = scmp.ne.s32.totalorder %s437_s4, %s8315_s22  ;;  %p8323_p5 = scmp.lt.s32.totalorder %s437_s4, %s437_s4 }
  0xb6   : > { %p8324_p10 = scmp.lt.s32.totalorder %s8322_s12, %s8315_s22 }
  0xb7   : > { %p8318_p12 = pnand %p8316_p1, %p9081_p2 }
  0xb8   : > { %p8325_p8 = por %p8324_p10, %p8323_p5 }
  0xb9   : > { %p8319_p3 = pneg %p8318_p12 }
  0xbb   : > { %p8326_p13 = pnand %p8325_p8, %p8319_p3 }
  0xbd   : > { %8329 = shalt.err (!%p8326_p13)
}
  0xbe   : > { %s9083_s7 = smov 32   ;;  %s9084_s19 = smov 512  }
  0xbf   : > { %7702 = dma.hbm_to_vmem [thread:$0]  (!%p9082_p0), %s9040_s5, 32768, %s437_s4, %s8556_s23, %s9084_s19, %s9084_s19, %s9083_s7  }
  0xc0   : > { %p9085_p6 = scmp.ne.s32.totalorder %s9067_s16, 0 }
  0xc1   : > { %p9086_p2 = scmp.eq.s32.totalorder (!%p9085_p6), %s8490_s14, 0 }
  0xc2   : > { %458 = sbr.rel (%p9085_p6) target bundleno = 1601 (0x641), region = 56 }
  0xc9   : > { %8369 = dma.done.wait (%p9086_p2), [#allocation8], 16   ;;  %p9087_p7 = pmov %p9086_p2 }
  0xca   : > { %p9088_p4 = pmov %p9086_p2 }
  0xcb   : > { %8371 = vsyncadd (%p9087_p7), [#allocation8], 4294967280 }
  0xcc   : > { %8373 = dma.done.wait (%p9088_p4), [#allocation6], 2048   ;;  %p9089_p9 = pmov %p9086_p2 }
  0xcd   : > { %s468_s20 = sand.u32 1, %s8490_s14   ;;  %p9090_p0 = pmov %p9086_p2 }
  0xce   : > { %8375 = vsyncadd (%p9089_p9), [#allocation6], 4294965248  ;;  %s469_s13 = scalar_lea.sflag [#allocation11], %s468_s20 }
  0xcf   : > { %8377 = dma.done.wait (%p9090_p0), %s469_s13, 2048   ;;  %p9091_p11 = pmov %p9090_p0 }
  0xd0   : > { %p9092_p1 = pmov %p9090_p0 }
  0xd1   : > { %8379 = vsyncadd (%p9091_p11), %s469_s13, 4294965248 }
  0xd2   : > { %8381 = dma.done.wait (%p9092_p1), [#allocation11], 16384   ;;  %p9093_p12 = pmov %p9090_p0 }
  0xd3   : > { %s482_s16 = scalar_lea.sflag [#allocation14], %s468_s20  ;;  %p9094_p3 = pmov %p9090_p0 }
  0xd4   : > { %8383 = vsyncadd (%p9093_p12), [#allocation11], 4294950912 }
  0xd5   : > { %8385 = dma.done.wait (%p9094_p3), %s482_s16, 65536   ;;  %p9095_p5 = pmov %p9090_p0 }
  0xd6   : > { %p9096_p10 = pmov %p9090_p0 }
  0xd7   : > { %8387 = vsyncadd (%p9095_p5), %s482_s16, 4294901760 }
  0xd8   : > { %8389 = dma.done.wait (%p9096_p10), [#allocation17], 512   ;;  %p9097_p8 = pmov %p9090_p0 }
  0xda   : > { %8391 = vsyncadd (%p9097_p8), [#allocation17], 4294966784 }
  0xdb   : > { %503 = sfence }
  0xdc   : > { %p6548_p13 = scmp.ne.s32.totalorder %s8398_s30, 0 }
  0xdd   : > { %v664_v0 = vld [vmem:[#allocation12] sm:$0xff] (!%p6548_p13)  ;;  %v597_v35 = vld [vmem:[#allocation9 + $0x8] sm:$0xff] (!%p6548_p13)  ;;  %s9098_s26 = sld [smem:[#allocation29_spill]] (!%p6548_p13) }
  0xde   : > { %571 = sbr.rel (%p6548_p13) target bundleno = 958 (0x3be), region = 88  ;;  %v668_v1 = vld [vmem:[#allocation12 + $0x20] sm:$0xff] (!%p6548_p13)  ;;  %v605_v36 = vld [vmem:[#allocation9 + $0x48] sm:$0xff] (!%p6548_p13) }
  0xdf   : > { %v6550_v2 = vcombine.high (!%p6548_p13), %v664_v0, %v668_v1  ;;  %v7765_v3 = vld [vmem:[#allocation13 + $0x4] ss:$16 sps:$4 sm:$0xff] (!%p6548_p13)   ;;  %v6549_v4 = vcombine.low (!%p6548_p13), %v664_v0, %v668_v1  ;;  %v7767_v5 = vld [vmem:[#allocation13] ss:$16 sps:$4 sm:$0xff] (!%p6548_p13)   ;;  %v621_v37 = vld [vmem:[#allocation10 + $0x8] sm:$0xff] (!%p6548_p13)  ;;  %v613_v39 = vpack.c.bf16 (!%p6548_p13), %v605_v36, %v597_v35 }
  0xe0   : > { %v7768_v6 = vld [vmem:[#allocation13 + $0x24] ss:$16 sps:$4 sm:$0xff] (!%p6548_p13)   ;;  %3156 = vmatprep.subr.bf16.mxu1 (!%p6548_p13), %v7765_v3  ;;  %v7770_v9 = vld [vmem:[#allocation13 + $0x20] ss:$16 sps:$4 sm:$0xff] (!%p6548_p13)   ;;  %v629_v38 = vld [vmem:[#allocation10 + $0x48] sm:$0xff] (!%p6548_p13)  ;;  %v637_v42 = vadd.f32 (!%p6548_p13), %v621_v37, %v597_v35 }
  0xe1   : > { %1432 = vmatprep.subr.bf16.mxu0 (!%p6548_p13), %v6550_v2  ;;  %v672_v7 = vld [vmem:[#allocation12 + $0x40] sm:$0xff] (!%p6548_p13)  ;;  %3157 = vmatpush1.bf16.msra.mxu1 (!%p6548_p13), %v7767_v5  ;;  %v645_v43 = vadd.f32 (!%p6548_p13), %v629_v38, %v605_v36 }
  0xe2   : > { %v676_v8 = vld [vmem:[#allocation12 + $0x60] sm:$0xff] (!%p6548_p13)  ;;  %1433 = vmatpush1.bf16.xpose.msra.mxu0 (!%p6548_p13), %v6549_v4  ;;  %3158 = vmatprep.subr.bf16.mxu1 (!%p6548_p13), %v7768_v6 }
  0xe3   : > { %v6558_v10 = vcombine.high (!%p6548_p13), %v672_v7, %v676_v8  ;;  %v7771_v11 = vld [vmem:[#allocation13 + $0x44] ss:$16 sps:$4 sm:$0xff] (!%p6548_p13)   ;;  %v6557_v14 = vcombine.low (!%p6548_p13), %v672_v7, %v676_v8  ;;  %v7773_v15 = vld [vmem:[#allocation13 + $0x40] ss:$16 sps:$4 sm:$0xff] (!%p6548_p13)   ;;  %1464 = vmatprep.mubr.bf16.mxu0 (!%p6548_p13), %v613_v39  ;;  %v8724_v47 = vpack.c.bf16 (!%p6548_p13), %v645_v43, %v637_v42 }
  0xe4   : > { %v680_v12 = vld [vmem:[#allocation12 + $0x80] sm:$0xff] (!%p6548_p13) }
  0xe5   : > { %1434 = vmatprep.subr.bf16.mxu0 %v6558_v10  ;;  %v684_v13 = vld [vmem:[#allocation12 + $0xa0] sm:$0xff]  ;;  %3159 = vmatpush1.bf16.msra.mxu1 %v7770_v9 }
  0xe6   : > { %3160 = vmatprep.subr.bf16.mxu1 %v7771_v11  ;;  %v7774_v16 = vld [vmem:[#allocation13 + $0x64] ss:$16 sps:$4 sm:$0xff]   ;;  %v6566_v17 = vcombine.high %v680_v12, %v684_v13  ;;  %v7776_v18 = vld [vmem:[#allocation13 + $0x60] ss:$16 sps:$4 sm:$0xff]   ;;  %v6565_v22 = vcombine.low %v680_v12, %v684_v13  ;;  %3188 = vmatprep.mubr.bf16.mxu1 %v8724_v47 }
  0xe7   : > { %v7777_v19 = vld [vmem:[#allocation13 + $0x84] ss:$16 sps:$4 sm:$0xff]   ;;  %v7779_v23 = vld [vmem:[#allocation13 + $0x80] ss:$16 sps:$4 sm:$0xff]  }
  0xe8   : > { %v688_v20 = vld [vmem:[#allocation12 + $0xc0] sm:$0xff] }
  0xe9   : > { %3161 = vmatpush1.bf16.msra.mxu1 %v7773_v15  ;;  %v692_v21 = vld [vmem:[#allocation12 + $0xe0] sm:$0xff]  ;;  %v8729_v15 = vld [vmem:[#allocation9 + $0x18] sm:$0xff] }
  0xea   : > { %1435 = vmatpush1.bf16.xpose.msra.mxu0 %v6557_v14  ;;  %3162 = vmatprep.subr.bf16.mxu1 %v7774_v16  ;;  %v7780_v24 = vld [vmem:[#allocation13 + $0xa4] ss:$16 sps:$4 sm:$0xff]   ;;  %v6574_v25 = vcombine.high %v688_v20, %v692_v21  ;;  %v7782_v26 = vld [vmem:[#allocation13 + $0xa0] ss:$16 sps:$4 sm:$0xff]   ;;  %v6573_v30 = vcombine.low %v688_v20, %v692_v21  ;;  %v631_v20 = vld [vmem:[#allocation10 + $0x58] sm:$0xff] }
  0xeb   : > { %1436 = vmatprep.subr.bf16.mxu0 %v6566_v17  ;;  %v7783_v27 = vld [vmem:[#allocation13 + $0xc4] ss:$16 sps:$4 sm:$0xff]   ;;  %v7785_v31 = vld [vmem:[#allocation13 + $0xc0] ss:$16 sps:$4 sm:$0xff]  }
  0xec   : > { %v696_v28 = vld [vmem:[#allocation12 + $0x100] sm:$0xff] }
  0xed   : > { %3163 = vmatpush1.bf16.msra.mxu1 %v7776_v18  ;;  %v700_v29 = vld [vmem:[#allocation12 + $0x120] sm:$0xff]  ;;  %v8733_v18 = vld [vmem:[#allocation9 + $0x58] sm:$0xff] }
  0xee   : > { %3164 = vmatprep.subr.bf16.mxu1 %v7777_v19  ;;  %v7786_v32 = vld [vmem:[#allocation13 + $0xe4] ss:$16 sps:$4 sm:$0xff]   ;;  %v6582_v33 = vcombine.high %v696_v28, %v700_v29  ;;  %v7788_v34 = vld [vmem:[#allocation13 + $0xe0] ss:$16 sps:$4 sm:$0xff]   ;;  %v6581_v49 = vcombine.low %v696_v28, %v700_v29  ;;  %v623_v19 = vld [vmem:[#allocation10 + $0x18] sm:$0xff] }
  0xef   : > { %v7789_v40 = vld [vmem:[#allocation13 + $0x104] ss:$16 sps:$4 sm:$0xff]   ;;  %v7791_v50 = vld [vmem:[#allocation13 + $0x100] ss:$16 sps:$4 sm:$0xff]  }
  0xf0   : > { %v704_v41 = vld [vmem:[#allocation12 + $0x140] sm:$0xff] }
  0xf1   : > { %3165 = vmatpush1.bf16.msra.mxu1 %v7779_v23  ;;  %v708_v44 = vld [vmem:[#allocation12 + $0x160] sm:$0xff] }
  0xf2   : > { %1437 = vmatpush1.bf16.xpose.msra.mxu0 %v6565_v22  ;;  %3166 = vmatprep.subr.bf16.mxu1 %v7780_v24  ;;  %v8720_v45 = vld [vmem:[#allocation9] sm:$0xff]  ;;  %v6590_v52 = vcombine.high %v704_v41, %v708_v44  ;;  %v6589_v57 = vcombine.low %v704_v41, %v708_v44 }
  0xf3   : > { %1438 = vmatprep.subr.bf16.mxu0 %v6574_v25  ;;  %v8722_v46 = vld [vmem:[#allocation9 + $0x40] sm:$0xff]  ;;  %v639_v25 = vadd.f32 %v623_v19, %v8729_v15 }
  0xf4   : > { %v612_v48 = vpack.c.bf16 %v8722_v46, %v8720_v45  ;;  %v7792_v51 = vld [vmem:[#allocation13 + $0x124] ss:$16 sps:$4 sm:$0xff]   ;;  %v7794_v53 = vld [vmem:[#allocation13 + $0x120] ss:$16 sps:$4 sm:$0xff]  }
  0xf5   : > { %3167 = vmatpush1.bf16.msra.mxu1 %v7782_v26  ;;  %v7795_v54 = vld [vmem:[#allocation13 + $0x144] ss:$16 sps:$4 sm:$0xff]   ;;  %v7797_v58 = vld [vmem:[#allocation13 + $0x140] ss:$16 sps:$4 sm:$0xff]   ;;  %v647_v26 = vadd.f32 %v631_v20, %v8733_v18 }
  0xf6   : > { %3168 = vmatprep.subr.bf16.mxu1 %v7783_v27  ;;  %v712_v55 = vld [vmem:[#allocation12 + $0x180] sm:$0xff] }
  0xf7   : > { %v716_v56 = vld [vmem:[#allocation12 + $0x1a0] sm:$0xff] }
  0xf8   : > { %v7798_v59 = vld [vmem:[#allocation13 + $0x164] ss:$16 sps:$4 sm:$0xff]   ;;  %v6598_v60 = vcombine.high %v712_v55, %v716_v56  ;;  %v7800_v61 = vld [vmem:[#allocation13 + $0x160] ss:$16 sps:$4 sm:$0xff]   ;;  %v6597_v1 = vcombine.low %v712_v55, %v716_v56 }
  0xf9   : > { %3169 = vmatpush1.bf16.msra.mxu1 %v7785_v31  ;;  %v7801_v62 = vld [vmem:[#allocation13 + $0x184] ss:$16 sps:$4 sm:$0xff]   ;;  %v7803_v2 = vld [vmem:[#allocation13 + $0x180] ss:$16 sps:$4 sm:$0xff]  }
  0xfa   : > { %1439 = vmatpush1.bf16.xpose.msra.mxu0 %v6573_v30  ;;  %3170 = vmatprep.subr.bf16.mxu1 %v7786_v32  ;;  %v720_v63 = vld [vmem:[#allocation12 + $0x1c0] sm:$0xff]  ;;  %v8739_v32 = vpack.c.bf16 %v647_v26, %v639_v25  ;;  %v665_v25 = vld [vmem:[#allocation12 + $0x8] sm:$0xff] }
  0xfb   : > { %1440 = vmatprep.subr.bf16.mxu0 %v6582_v33  ;;  %v724_v0 = vld [vmem:[#allocation12 + $0x1e0] sm:$0xff]  ;;  %v669_v26 = vld [vmem:[#allocation12 + $0x28] sm:$0xff] }
  0xfc   : > { %v7804_v3 = vld [vmem:[#allocation13 + $0x1a4] ss:$16 sps:$4 sm:$0xff]   ;;  %v6606_v4 = vcombine.high %v720_v63, %v724_v0  ;;  %v7806_v5 = vld [vmem:[#allocation13 + $0x1a0] ss:$16 sps:$4 sm:$0xff]   ;;  %v6605_v9 = vcombine.low %v720_v63, %v724_v0 }
  0xfd   : > { %3171 = vmatpush1.bf16.msra.mxu1 %v7788_v34  ;;  %v7807_v6 = vld [vmem:[#allocation13 + $0x1c4] ss:$16 sps:$4 sm:$0xff]   ;;  %v7809_v10 = vld [vmem:[#allocation13 + $0x1c0] ss:$16 sps:$4 sm:$0xff]  }
  0xfe   : > { %3172 = vmatprep.subr.bf16.mxu1 %v7789_v40  ;;  %v728_v7 = vld [vmem:[#allocation12 + $0x200] sm:$0xff] }
  0xff   : > { %v732_v8 = vld [vmem:[#allocation12 + $0x220] sm:$0xff] }
 0x100   : > { %v620_v11 = vld [vmem:[#allocation10] sm:$0xff]  ;;  %v6614_v14 = vcombine.high %v728_v7, %v732_v8  ;;  %v6613_v29 = vcombine.low %v728_v7, %v732_v8 }
 0x101   : > { %3173 = vmatpush1.bf16.msra.mxu1 %v7791_v50  ;;  %v628_v12 = vld [vmem:[#allocation10 + $0x40] sm:$0xff]  ;;  %v636_v16 = vadd.f32 %v620_v11, %v8720_v45 }
 0x102   : > { %1441 = vmatpush1.bf16.xpose.msra.mxu0 %v6581_v49  ;;  %3174 = vmatprep.subr.bf16.mxu1 %v7792_v51  ;;  %v7810_v13 = vld [vmem:[#allocation13 + $0x1e4] ss:$16 sps:$4 sm:$0xff]   ;;  %v644_v17 = vadd.f32 %v628_v12, %v8722_v46  ;;  %v7812_v21 = vld [vmem:[#allocation13 + $0x1e0] ss:$16 sps:$4 sm:$0xff]  }
 0x103   : > { %1442 = vmatprep.subr.bf16.mxu0 %v6590_v52  ;;  %v7815_v22 = vld [vmem:[#allocation13 + $0x204] ss:$16 sps:$4 sm:$0xff]   ;;  %v7813_v28 = vld [vmem:[#allocation13 + $0x200] ss:$16 sps:$4 sm:$0xff]  }
 0x104   : > { %v736_v23 = vld [vmem:[#allocation12 + $0x240] sm:$0xff]  ;;  %v8737_v27 = vpack.c.bf16 %v644_v17, %v636_v16 }
 0x105   : > { %3175 = vmatpush1.bf16.msra.mxu1 %v7794_v53  ;;  %v740_v24 = vld [vmem:[#allocation12 + $0x260] sm:$0xff] }
 0x106   : > { %3176 = vmatprep.subr.bf16.mxu1 %v7795_v54  ;;  %v7818_v30 = vld [vmem:[#allocation13 + $0x224] ss:$16 sps:$4 sm:$0xff]   ;;  %v6622_v31 = vcombine.high %v736_v23, %v740_v24  ;;  %v7816_v33 = vld [vmem:[#allocation13 + $0x220] ss:$16 sps:$4 sm:$0xff]   ;;  %v6621_v38 = vcombine.low %v736_v23, %v740_v24 }
 0x107   : > { %v7821_v34 = vld [vmem:[#allocation13 + $0x244] ss:$16 sps:$4 sm:$0xff]   ;;  %v7819_v37 = vld [vmem:[#allocation13 + $0x240] ss:$16 sps:$4 sm:$0xff]  }
 0x108   : > { %v744_v35 = vld [vmem:[#allocation12 + $0x280] sm:$0xff] }
 0x109   : > { %3177 = vmatpush1.bf16.msra.mxu1 %v7797_v58  ;;  %v748_v36 = vld [vmem:[#allocation12 + $0x2a0] sm:$0xff] }
 0x10a   : > { %1443 = vmatpush1.bf16.xpose.msra.mxu0 %v6589_v57  ;;  %3178 = vmatprep.subr.bf16.mxu1 %v7798_v59  ;;  %v7824_v39 = vld [vmem:[#allocation13 + $0x264] ss:$16 sps:$4 sm:$0xff]   ;;  %v6630_v40 = vcombine.high %v744_v35, %v748_v36  ;;  %v7822_v41 = vld [vmem:[#allocation13 + $0x260] ss:$16 sps:$4 sm:$0xff]   ;;  %v6629_v50 = vcombine.low %v744_v35, %v748_v36  ;;  %v6552_v36 = vcombine.high %v665_v25, %v669_v26 }
 0x10b   : > { %1444 = vmatprep.subr.bf16.mxu0 %v6598_v60  ;;  %v7827_v42 = vld [vmem:[#allocation13 + $0x284] ss:$16 sps:$4 sm:$0xff]   ;;  %v7825_v49 = vld [vmem:[#allocation13 + $0x280] ss:$16 sps:$4 sm:$0xff]  }
 0x10c   : > { %v752_v43 = vld [vmem:[#allocation12 + $0x2c0] sm:$0xff]  ;;  %v630_v35 = vld [vmem:[#allocation10 + $0x50] sm:$0xff] }
 0x10d   : > { %3179 = vmatpush1.bf16.msra.mxu1 %v7800_v61  ;;  %v756_v44 = vld [vmem:[#allocation12 + $0x2e0] sm:$0xff] }
 0x10e   : > { %3180 = vmatprep.subr.bf16.mxu1 %v7801_v62  ;;  %v7830_v51 = vld [vmem:[#allocation13 + $0x2a4] ss:$16 sps:$4 sm:$0xff]   ;;  %v6638_v52 = vcombine.high %v752_v43, %v756_v44  ;;  %v7828_v53 = vld [vmem:[#allocation13 + $0x2a0] ss:$16 sps:$4 sm:$0xff]   ;;  %v6637_v58 = vcombine.low %v752_v43, %v756_v44 }
 0x10f   : > { %v7833_v54 = vld [vmem:[#allocation13 + $0x2c4] ss:$16 sps:$4 sm:$0xff]   ;;  %v7831_v57 = vld [vmem:[#allocation13 + $0x2c0] ss:$16 sps:$4 sm:$0xff]  }
 0x110   : > { %v760_v55 = vld [vmem:[#allocation12 + $0x300] sm:$0xff] }
 0x111   : > { %3181 = vmatpush1.bf16.msra.mxu1 %v7803_v2  ;;  %v764_v56 = vld [vmem:[#allocation12 + $0x320] sm:$0xff] }
 0x112   : > { %1445 = vmatpush1.bf16.xpose.msra.mxu0 %v6597_v1  ;;  %3182 = vmatprep.subr.bf16.mxu1 %v7804_v3  ;;  %v7836_v59 = vld [vmem:[#allocation13 + $0x2e4] ss:$16 sps:$4 sm:$0xff]   ;;  %v6646_v60 = vcombine.high %v760_v55, %v764_v56  ;;  %v7834_v61 = vld [vmem:[#allocation13 + $0x2e0] ss:$16 sps:$4 sm:$0xff]   ;;  %v6645_v2 = vcombine.low %v760_v55, %v764_v56 }
 0x113   : > { %1446 = vmatprep.subr.bf16.mxu0 %v6606_v4  ;;  %v7839_v62 = vld [vmem:[#allocation13 + $0x304] ss:$16 sps:$4 sm:$0xff]   ;;  %v7837_v1 = vld [vmem:[#allocation13 + $0x300] ss:$16 sps:$4 sm:$0xff]  }
 0x114   : > { %v768_v63 = vld [vmem:[#allocation12 + $0x340] sm:$0xff] }
 0x115   : > { %3183 = vmatpush1.bf16.msra.mxu1 %v7806_v5  ;;  %v772_v0 = vld [vmem:[#allocation12 + $0x360] sm:$0xff] }
 0x116   : > { %3184 = vmatprep.subr.bf16.mxu1 %v7807_v6  ;;  %v7842_v3 = vld [vmem:[#allocation13 + $0x324] ss:$16 sps:$4 sm:$0xff]   ;;  %v6654_v4 = vcombine.high %v768_v63, %v772_v0  ;;  %v7840_v5 = vld [vmem:[#allocation13 + $0x320] ss:$16 sps:$4 sm:$0xff]  }
 0x117   : > { %v7845_v6 = vld [vmem:[#allocation13 + $0x344] ss:$16 sps:$4 sm:$0xff]   ;;  %v7849_v19 = vld [vmem:[#allocation13 + $0x380] ss:$16 sps:$4 sm:$0xff]  }
 0x118   : > { %v776_v7 = vld [vmem:[#allocation12 + $0x380] sm:$0xff] }
 0x119   : > { %3185 = vmatpush1.bf16.msra.mxu1 %v7809_v10  ;;  %v780_v8 = vld [vmem:[#allocation12 + $0x3a0] sm:$0xff]  ;;  %v6653_v10 = vcombine.low %v768_v63, %v772_v0  ;;  %v685_v63 = vld [vmem:[#allocation12 + $0xa8] sm:$0xff] }
 0x11a   : > { %1447 = vmatpush1.bf16.xpose.msra.mxu0 %v6605_v9  ;;  %3186 = vmatprep.subr.bf16.mxu1 %v7810_v13  ;;  %v7843_v9 = vld [vmem:[#allocation13 + $0x340] ss:$16 sps:$4 sm:$0xff]   ;;  %v7848_v11 = vld [vmem:[#allocation13 + $0x364] ss:$16 sps:$4 sm:$0xff]   ;;  %v6662_v12 = vcombine.high %v776_v7, %v780_v8  ;;  %v6661_v20 = vcombine.low %v776_v7, %v780_v8 }
 0x11b   : > { %1448 = vmatprep.subr.bf16.mxu0 %v6614_v14  ;;  %v7846_v13 = vld [vmem:[#allocation13 + $0x360] ss:$16 sps:$4 sm:$0xff]   ;;  %v7851_v14 = vld [vmem:[#allocation13 + $0x384] ss:$16 sps:$4 sm:$0xff]  }
 0x11c   : > { %v784_v16 = vld [vmem:[#allocation12 + $0x3c0] sm:$0xff] }
 0x11d   : > { %3187 = vmatpush1.bf16.msra.mxu1 %v7812_v21  ;;  %v788_v17 = vld [vmem:[#allocation12 + $0x3e0] sm:$0xff] }
 0x11e   : > { %3199 = vmatprep.subr.bf16.mxu1 %v7815_v22  ;;  %v7854_v21 = vld [vmem:[#allocation13 + $0x3a4] ss:$16 sps:$4 sm:$0xff]   ;;  %v6670_v22 = vcombine.high %v784_v16, %v788_v17  ;;  %v7852_v23 = vld [vmem:[#allocation13 + $0x3a0] ss:$16 sps:$4 sm:$0xff]  }
 0x11f   : > { %v7857_v24 = vld [vmem:[#allocation13 + $0x3c4] ss:$16 sps:$4 sm:$0xff]   ;;  %v7858_v43 = vld [vmem:[#allocation13 + $0x3e0] ss:$16 sps:$4 sm:$0xff]  }
 0x120   : > { %3189 = vmatmul.mubr.bf16.vlgmr.msra.gmra.mrb[0].mxu1 %v8737_v27  ;;  %v7863_v44 = vld [vmem:[#allocation13 + $0x404] ss:$16 sps:$4 sm:$0xff]   ;;  %v7861_v55 = vld [vmem:[#allocation13 + $0x400] ss:$16 sps:$4 sm:$0xff]  }
 0x121   : > { %3200 = vmatpush1.bf16.msra.mxu1 %v7813_v28  ;;  %3231 = vmatprep.mubr.bf16.mxu1 %v8739_v32  ;;  %v7855_v28 = vld [vmem:[#allocation13 + $0x3c0] ss:$16 sps:$4 sm:$0xff]   ;;  %v7866_v56 = vld [vmem:[#allocation13 + $0x424] ss:$16 sps:$4 sm:$0xff]  }
 0x122   : > { %1449 = vmatpush1.bf16.xpose.msra.mxu0 %v6613_v29  ;;  %3201 = vmatprep.subr.bf16.mxu1 %v7818_v30  ;;  %v8743_v29 = vld [vmem:[#allocation9 + $0x10] sm:$0xff] }
 0x123   : > { %1450 = vmatprep.subr.bf16.mxu0 %v6622_v31  ;;  %v7860_v30 = vld [vmem:[#allocation13 + $0x3e4] ss:$16 sps:$4 sm:$0xff]   ;;  %v6669_v31 = vcombine.low %v784_v16, %v788_v17  ;;  %v7870_v45 = vld [vmem:[#allocation13 + $0x460] ss:$16 sps:$4 sm:$0xff]  }
 0x124   : > { %v7875_v46 = vld [vmem:[#allocation13 + $0x484] ss:$16 sps:$4 sm:$0xff]   ;;  %v7876_v7 = vld [vmem:[#allocation13 + $0x4a0] ss:$16 sps:$4 sm:$0xff]  }
 0x125   : > { %3202 = vmatpush1.bf16.msra.mxu1 %v7816_v33  ;;  %v8745_v33 = vld [vmem:[#allocation9 + $0x50] sm:$0xff] }
 0x126   : > { %3203 = vmatprep.subr.bf16.mxu1 %v7821_v34  ;;  %v622_v34 = vld [vmem:[#allocation10 + $0x10] sm:$0xff] }
 0x127   : > { %v7881_v8 = vld [vmem:[#allocation13 + $0x4c4] ss:$16 sps:$4 sm:$0xff]   ;;  %v7882_v16 = vld [vmem:[#allocation13 + $0x4e0] ss:$16 sps:$4 sm:$0xff]  }
 0x128   : > { %v7887_v17 = vld [vmem:[#allocation13 + $0x504] ss:$16 sps:$4 sm:$0xff]  }
 0x129   : > { %3204 = vmatpush1.bf16.msra.mxu1 %v7819_v37  ;;  %v8747_v37 = vld [vmem:[#allocation9 + $0x28] sm:$0xff] }
 0x12a   : > { %1451 = vmatpush1.bf16.xpose.msra.mxu0 %v6621_v38  ;;  %3205 = vmatprep.subr.bf16.mxu1 %v7824_v39  ;;  %v8749_v38 = vld [vmem:[#allocation9 + $0x68] sm:$0xff] }
 0x12b   : > { %1452 = vmatprep.subr.bf16.mxu0 %v6630_v40  ;;  %v625_v39 = vld [vmem:[#allocation10 + $0x28] sm:$0xff] }
 0x12c   : > { %v633_v40 = vld [vmem:[#allocation10 + $0x68] sm:$0xff] }
 0x12d   : > { %3206 = vmatpush1.bf16.msra.mxu1 %v7822_v41  ;;  %v638_v41 = vadd.f32 %v622_v34, %v8743_v29  ;;  %v7891_v34 = vld [vmem:[#allocation13 + $0x540] ss:$16 sps:$4 sm:$0xff]  }
 0x12e   : > { %3207 = vmatprep.subr.bf16.mxu1 %v7827_v42  ;;  %v646_v42 = vadd.f32 %v630_v35, %v8745_v33  ;;  %v7896_v35 = vld [vmem:[#allocation13 + $0x564] ss:$16 sps:$4 sm:$0xff]  }
 0x131   : > { %3208 = vmatpush1.bf16.msra.mxu1 %v7825_v49  ;;  %v673_v49 = vld [vmem:[#allocation12 + $0x48] sm:$0xff] }
 0x132   : > { %1453 = vmatpush1.bf16.xpose.msra.mxu0 %v6629_v50  ;;  %3209 = vmatprep.subr.bf16.mxu1 %v7830_v51  ;;  %v677_v50 = vld [vmem:[#allocation12 + $0x68] sm:$0xff]  ;;  %v641_v51 = vadd.f32 %v625_v39, %v8747_v37  ;;  %v7894_v39 = vld [vmem:[#allocation13 + $0x560] ss:$16 sps:$4 sm:$0xff]  }
 0x133   : > { %1454 = vmatprep.subr.bf16.mxu0 %v6638_v52  ;;  %v649_v52 = vadd.f32 %v633_v40, %v8749_v38  ;;  %v6559_v0 = vcombine.low %v673_v49, %v677_v50  ;;  %v7899_v40 = vld [vmem:[#allocation13 + $0x584] ss:$16 sps:$4 sm:$0xff]  }
 0x135   : > { %3210 = vmatpush1.bf16.msra.mxu1 %v7828_v53  ;;  %v8755_v53 = vpack.c.bf16 %v646_v42, %v638_v41  ;;  %v721_v41 = vld [vmem:[#allocation12 + $0x1c8] sm:$0xff] }
 0x136   : > { %3211 = vmatprep.subr.bf16.mxu1 %v7833_v54  ;;  %v6551_v54 = vcombine.low %v665_v25, %v669_v26  ;;  %v7888_v25 = vld [vmem:[#allocation13 + $0x520] ss:$16 sps:$4 sm:$0xff]   ;;  %v7893_v26 = vld [vmem:[#allocation13 + $0x544] ss:$16 sps:$4 sm:$0xff]   ;;  %v725_v42 = vld [vmem:[#allocation12 + $0x1e8] sm:$0xff] }
 0x139   : > { %3212 = vmatpush1.bf16.msra.mxu1 %v7831_v57  ;;  %v6560_v57 = vcombine.high %v673_v49, %v677_v50  ;;  %v7902_v49 = vld [vmem:[#allocation13 + $0x5a4] ss:$16 sps:$4 sm:$0xff]   ;;  %v6608_v50 = vcombine.high %v721_v41, %v725_v42 }
 0x13a   : > { %1455 = vmatpush1.bf16.xpose.msra.mxu0 %v6637_v58  ;;  %3213 = vmatprep.subr.bf16.mxu1 %v7836_v59  ;;  %v7864_v58 = vld [vmem:[#allocation13 + $0x420] ss:$16 sps:$4 sm:$0xff]   ;;  %v8757_v59 = vpack.c.bf16 %v649_v52, %v641_v51  ;;  %v7905_v52 = vld [vmem:[#allocation13 + $0x5c4] ss:$16 sps:$4 sm:$0xff]  }
 0x13b   : > { %1456 = vmatprep.subr.bf16.mxu0 %v6646_v60  ;;  %v615_v60 = vpack.c.bf16 %v8733_v18, %v8729_v15  ;;  %v7872_v15 = vld [vmem:[#allocation13 + $0x464] ss:$16 sps:$4 sm:$0xff]   ;;  %v7900_v51 = vld [vmem:[#allocation13 + $0x5a0] ss:$16 sps:$4 sm:$0xff]  }
 0x13d   : > { %3214 = vmatpush1.bf16.msra.mxu1 %v7834_v61  ;;  %v7869_v61 = vld [vmem:[#allocation13 + $0x444] ss:$16 sps:$4 sm:$0xff]  }
 0x13e   : > { %3215 = vmatprep.subr.bf16.mxu1 %v7839_v62  ;;  %v681_v62 = vld [vmem:[#allocation12 + $0x88] sm:$0xff] }
 0x13f   : > { %v6568_v18 = vcombine.high %v681_v62, %v685_v63 }
 0x141   : > { %3216 = vmatpush1.bf16.msra.mxu1 %v7837_v1  ;;  %v7867_v1 = vld [vmem:[#allocation13 + $0x440] ss:$16 sps:$4 sm:$0xff]  }
 0x142   : > { %1457 = vmatpush1.bf16.xpose.msra.mxu0 %v6645_v2  ;;  %3217 = vmatprep.subr.bf16.mxu1 %v7842_v3  ;;  %v693_v2 = vld [vmem:[#allocation12 + $0xe8] sm:$0xff]  ;;  %v6567_v3 = vcombine.low %v681_v62, %v685_v63  ;;  %v632_v62 = vld [vmem:[#allocation10 + $0x60] sm:$0xff] }
 0x143   : > { %1458 = vmatprep.subr.bf16.mxu0 %v6654_v4  ;;  %v7873_v4 = vld [vmem:[#allocation13 + $0x480] ss:$16 sps:$4 sm:$0xff]   ;;  %v7908_v63 = vld [vmem:[#allocation13 + $0x5e4] ss:$16 sps:$4 sm:$0xff]  }
 0x145   : > { %3218 = vmatpush1.bf16.msra.mxu1 %v7840_v5  ;;  %v7878_v5 = vld [vmem:[#allocation13 + $0x4a4] ss:$16 sps:$4 sm:$0xff]  }
 0x146   : > { %3219 = vmatprep.subr.bf16.mxu1 %v7845_v6 }
 0x149   : > { %3220 = vmatpush1.bf16.msra.mxu1 %v7843_v9  ;;  %v697_v9 = vld [vmem:[#allocation12 + $0x108] sm:$0xff] }
 0x14a   : > { %1459 = vmatpush1.bf16.xpose.msra.mxu0 %v6653_v10  ;;  %3221 = vmatprep.subr.bf16.mxu1 %v7848_v11  ;;  %v701_v10 = vld [vmem:[#allocation12 + $0x128] sm:$0xff] }
 0x14b   : > { %1460 = vmatprep.subr.bf16.mxu0 %v6662_v12  ;;  %v7879_v12 = vld [vmem:[#allocation13 + $0x4c0] ss:$16 sps:$4 sm:$0xff]  }
 0x14d   : > { %3222 = vmatpush1.bf16.msra.mxu1 %v7846_v13  ;;  %v7884_v13 = vld [vmem:[#allocation13 + $0x4e4] ss:$16 sps:$4 sm:$0xff]  }
 0x14e   : > { %3223 = vmatprep.subr.bf16.mxu1 %v7851_v14  ;;  %v6584_v14 = vcombine.high %v697_v9, %v701_v10 }
 0x151   : > { %3224 = vmatpush1.bf16.msra.mxu1 %v7849_v19  ;;  %v705_v19 = vld [vmem:[#allocation12 + $0x148] sm:$0xff] }
 0x152   : > { %1461 = vmatpush1.bf16.xpose.msra.mxu0 %v6661_v20  ;;  %3225 = vmatprep.subr.bf16.mxu1 %v7854_v21  ;;  %v709_v20 = vld [vmem:[#allocation12 + $0x168] sm:$0xff]  ;;  %v6583_v21 = vcombine.low %v697_v9, %v701_v10  ;;  %v7909_v10 = vld [vmem:[#allocation13 + $0x600] ss:$16 sps:$4 sm:$0xff]  }
 0x153   : > { %1462 = vmatprep.subr.bf16.mxu0 %v6670_v22  ;;  %v7885_v22 = vld [vmem:[#allocation13 + $0x500] ss:$16 sps:$4 sm:$0xff]  }
 0x155   : > { %3226 = vmatpush1.bf16.msra.mxu1 %v7852_v23  ;;  %v7890_v23 = vld [vmem:[#allocation13 + $0x524] ss:$16 sps:$4 sm:$0xff]  }
 0x156   : > { %3227 = vmatprep.subr.bf16.mxu1 %v7857_v24  ;;  %v6592_v24 = vcombine.high %v705_v19, %v709_v20 }
 0x159   : > { %3228 = vmatpush1.bf16.msra.mxu1 %v7855_v28  ;;  %v713_v28 = vld [vmem:[#allocation12 + $0x188] sm:$0xff] }
 0x15a   : > { %1463 = vmatpush1.bf16.xpose.msra.mxu0 %v6669_v31  ;;  %3229 = vmatprep.subr.bf16.mxu1 %v7860_v30  ;;  %v717_v30 = vld [vmem:[#allocation12 + $0x1a8] sm:$0xff]  ;;  %v6591_v31 = vcombine.low %v705_v19, %v709_v20 }
 0x15b   : > { %1475 = vmatprep.subr.bf16.mxu0 %v6552_v36  ;;  %v6600_v36 = vcombine.high %v713_v28, %v717_v30  ;;  %v749_v19 = vld [vmem:[#allocation12 + $0x2a8] sm:$0xff] }
 0x15d   : > { %3230 = vmatpush1.bf16.msra.mxu1 %v7858_v43  ;;  %v6599_v43 = vcombine.low %v713_v28, %v717_v30  ;;  %v757_v28 = vld [vmem:[#allocation12 + $0x2e8] sm:$0xff] }
 0x15e   : > { %3242 = vmatprep.subr.bf16.mxu1 %v7863_v44  ;;  %v7897_v44 = vld [vmem:[#allocation13 + $0x580] ss:$16 sps:$4 sm:$0xff]  }
 0x160   : > { %3232 = vmatmul.mubr.bf16.vlgmr.msra.gmra.mrb[0].mxu1 %v8755_v53 }
 0x161   : > { %1465 = vmatmul.mubr.bf16.vlgmr.msra.gmra.mrb[0].mxu0 %v612_v48  ;;  %3243 = vmatpush1.bf16.msra.mxu1 %v7861_v55  ;;  %v689_v48 = vld [vmem:[#allocation12 + $0xc8] sm:$0xff] }
 0x162   : > { %1476 = vmatpush1.bf16.xpose.msra.mxu0 %v6551_v54  ;;  %3244 = vmatprep.subr.bf16.mxu1 %v7866_v56  ;;  %v6576_v6 = vcombine.high %v689_v48, %v693_v2  ;;  %v6575_v11 = vcombine.low %v689_v48, %v693_v2  ;;  %v729_v54 = vld [vmem:[#allocation12 + $0x208] sm:$0xff]  ;;  %v7903_v56 = vld [vmem:[#allocation13 + $0x5c0] ss:$16 sps:$4 sm:$0xff]   ;;  %v635_v48 = vld [vmem:[#allocation10 + $0x78] sm:$0xff] }
 0x163   : > { %1477 = vmatprep.subr.bf16.mxu0 %v6560_v57  ;;  %3274 = vmatprep.mubr.bf16.mxu1 %v8757_v59  ;;  %v733_v55 = vld [vmem:[#allocation12 + $0x228] sm:$0xff]  ;;  %v8766_v57 = vld [vmem:[#allocation9 + $0x20] sm:$0xff] }
 0x164   : > { %1507 = vmatprep.mubr.bf16.mxu0 %v615_v60  ;;  %v8768_v60 = vld [vmem:[#allocation9 + $0x60] sm:$0xff]  ;;  %v6615_v9 = vcombine.low %v729_v54, %v733_v55 }
 0x165   : > { %3245 = vmatpush1.bf16.msra.mxu1 %v7864_v58  ;;  %v6607_v58 = vcombine.low %v721_v41, %v725_v42  ;;  %v7906_v2 = vld [vmem:[#allocation13 + $0x5e0] ss:$16 sps:$4 sm:$0xff]   ;;  %v765_v41 = vld [vmem:[#allocation12 + $0x328] sm:$0xff] }
 0x166   : > { %3246 = vmatprep.subr.bf16.mxu1 %v7869_v61  ;;  %v624_v61 = vld [vmem:[#allocation10 + $0x20] sm:$0xff] }
 0x169   : > { %3247 = vmatpush1.bf16.msra.mxu1 %v7867_v1  ;;  %v8770_v1 = vld [vmem:[#allocation9 + $0x38] sm:$0xff] }
 0x16a   : > { %1478 = vmatpush1.bf16.xpose.msra.mxu0 %v6559_v0  ;;  %3248 = vmatprep.subr.bf16.mxu1 %v7872_v15  ;;  %v6616_v0 = vcombine.high %v729_v54, %v733_v55  ;;  %v640_v15 = vadd.f32 %v624_v61, %v8766_v57  ;;  %v773_v54 = vld [vmem:[#allocation12 + $0x368] sm:$0xff] }
 0x16b   : > { %1479 = vmatprep.subr.bf16.mxu0 %v6568_v18  ;;  %v648_v18 = vadd.f32 %v632_v62, %v8768_v60  ;;  %v7936_v62 = vld [vmem:[#allocation13 + $0x720] ss:$16 sps:$4 sm:$0xff]  }
 0x16d   : > { %3249 = vmatpush1.bf16.msra.mxu1 %v7870_v45  ;;  %v8774_v45 = vld [vmem:[#allocation9 + $0x78] sm:$0xff] }
 0x16e   : > { %3250 = vmatprep.subr.bf16.mxu1 %v7875_v46  ;;  %v627_v46 = vld [vmem:[#allocation10 + $0x38] sm:$0xff] }
 0x171   : > { %3251 = vmatpush1.bf16.msra.mxu1 %v7873_v4  ;;  %v737_v4 = vld [vmem:[#allocation12 + $0x248] sm:$0xff] }
 0x172   : > { %1480 = vmatpush1.bf16.xpose.msra.mxu0 %v6567_v3  ;;  %3252 = vmatprep.subr.bf16.mxu1 %v7878_v5  ;;  %v7911_v3 = vld [vmem:[#allocation13 + $0x604] ss:$16 sps:$4 sm:$0xff]   ;;  %v741_v5 = vld [vmem:[#allocation12 + $0x268] sm:$0xff] }
 0x173   : > { %1481 = vmatprep.subr.bf16.mxu0 %v6576_v6  ;;  %v643_v6 = vadd.f32 %v627_v46, %v8770_v1  ;;  %v6623_v20 = vcombine.low %v737_v4, %v741_v5  ;;  %v7939_v46 = vld [vmem:[#allocation13 + $0x740] ss:$16 sps:$4 sm:$0xff]  }
 0x175   : > { %3253 = vmatpush1.bf16.msra.mxu1 %v7876_v7  ;;  %v651_v7 = vadd.f32 %v635_v48, %v8774_v45  ;;  %v7944_v48 = vld [vmem:[#allocation13 + $0x764] ss:$16 sps:$4 sm:$0xff]  }
 0x176   : > { %3254 = vmatprep.subr.bf16.mxu1 %v7881_v8  ;;  %v8778_v8 = vpack.c.bf16 %v648_v18, %v640_v15  ;;  %v781_v15 = vld [vmem:[#allocation12 + $0x3a8] sm:$0xff] }
 0x179   : > { %3255 = vmatpush1.bf16.msra.mxu1 %v7879_v12  ;;  %v6624_v12 = vcombine.high %v737_v4, %v741_v5  ;;  %v7947_v4 = vld [vmem:[#allocation13 + $0x784] ss:$16 sps:$4 sm:$0xff]   ;;  %v785_v5 = vld [vmem:[#allocation12 + $0x3c8] sm:$0xff] }
 0x17a   : > { %1482 = vmatpush1.bf16.xpose.msra.mxu0 %v6575_v11  ;;  %3256 = vmatprep.subr.bf16.mxu1 %v7884_v13  ;;  %v7914_v11 = vld [vmem:[#allocation13 + $0x624] ss:$16 sps:$4 sm:$0xff]   ;;  %v8780_v13 = vpack.c.bf16 %v651_v7, %v643_v6  ;;  %v789_v6 = vld [vmem:[#allocation12 + $0x3e8] sm:$0xff] }
 0x17b   : > { %1483 = vmatprep.subr.bf16.mxu0 %v6584_v14  ;;  %v7912_v14 = vld [vmem:[#allocation13 + $0x620] ss:$16 sps:$4 sm:$0xff]  }
 0x17d   : > { %3257 = vmatpush1.bf16.msra.mxu1 %v7882_v16  ;;  %v7917_v16 = vld [vmem:[#allocation13 + $0x644] ss:$16 sps:$4 sm:$0xff]  }
 0x17e   : > { %3258 = vmatprep.subr.bf16.mxu1 %v7887_v17  ;;  %v745_v17 = vld [vmem:[#allocation12 + $0x288] sm:$0xff] }
 0x17f   : > { %v6631_v30 = vcombine.low %v745_v17, %v749_v19 }
 0x181   : > { %3259 = vmatpush1.bf16.msra.mxu1 %v7885_v22  ;;  %v7920_v22 = vld [vmem:[#allocation13 + $0x664] ss:$16 sps:$4 sm:$0xff]  }
 0x182   : > { %1484 = vmatpush1.bf16.xpose.msra.mxu0 %v6583_v21  ;;  %3260 = vmatprep.subr.bf16.mxu1 %v7890_v23  ;;  %v7915_v21 = vld [vmem:[#allocation13 + $0x640] ss:$16 sps:$4 sm:$0xff]   ;;  %v6632_v23 = vcombine.high %v745_v17, %v749_v19 }
 0x183   : > { %1485 = vmatprep.subr.bf16.mxu0 %v6592_v24  ;;  %v7918_v24 = vld [vmem:[#allocation13 + $0x660] ss:$16 sps:$4 sm:$0xff]  }
 0x184   : > { %v670_v17 = vld [vmem:[#allocation12 + $0x30] sm:$0xff] }
 0x185   : > { %3261 = vmatpush1.bf16.msra.mxu1 %v7888_v25  ;;  %v7923_v25 = vld [vmem:[#allocation13 + $0x684] ss:$16 sps:$4 sm:$0xff]   ;;  %v7951_v19 = vld [vmem:[#allocation13 + $0x7c0] ss:$16 sps:$4 sm:$0xff]  }
 0x186   : > { %3262 = vmatprep.subr.bf16.mxu1 %v7893_v26  ;;  %v753_v26 = vld [vmem:[#allocation12 + $0x2c8] sm:$0xff] }
 0x187   : > { %v6639_v42 = vcombine.low %v753_v26, %v757_v28 }
 0x189   : > { %3263 = vmatpush1.bf16.msra.mxu1 %v7891_v34  ;;  %v7926_v34 = vld [vmem:[#allocation13 + $0x6a4] ss:$16 sps:$4 sm:$0xff]  }
 0x18a   : > { %1486 = vmatpush1.bf16.xpose.msra.mxu0 %v6591_v31  ;;  %3264 = vmatprep.subr.bf16.mxu1 %v7896_v35  ;;  %v7921_v31 = vld [vmem:[#allocation13 + $0x680] ss:$16 sps:$4 sm:$0xff]   ;;  %v6640_v35 = vcombine.high %v753_v26, %v757_v28 }
 0x18b   : > { %1487 = vmatprep.subr.bf16.mxu0 %v6600_v36  ;;  %v7924_v36 = vld [vmem:[#allocation13 + $0x6a0] ss:$16 sps:$4 sm:$0xff]  }
 0x18d   : > { %3265 = vmatpush1.bf16.msra.mxu1 %v7894_v39  ;;  %v7929_v39 = vld [vmem:[#allocation13 + $0x6c4] ss:$16 sps:$4 sm:$0xff]  }
 0x18e   : > { %3266 = vmatprep.subr.bf16.mxu1 %v7899_v40  ;;  %v761_v40 = vld [vmem:[#allocation12 + $0x308] sm:$0xff] }
 0x18f   : > { %v6647_v55 = vcombine.low %v761_v40, %v765_v41 }
 0x191   : > { %3267 = vmatpush1.bf16.msra.mxu1 %v7897_v44  ;;  %v7932_v44 = vld [vmem:[#allocation13 + $0x6e4] ss:$16 sps:$4 sm:$0xff]  }
 0x192   : > { %1488 = vmatpush1.bf16.xpose.msra.mxu0 %v6599_v43  ;;  %3268 = vmatprep.subr.bf16.mxu1 %v7902_v49  ;;  %v7927_v43 = vld [vmem:[#allocation13 + $0x6c0] ss:$16 sps:$4 sm:$0xff]   ;;  %v6648_v49 = vcombine.high %v761_v40, %v765_v41  ;;  %v614_v40 = vpack.c.bf16 %v8745_v33, %v8743_v29 }
 0x193   : > { %1489 = vmatprep.subr.bf16.mxu0 %v6608_v50  ;;  %v7930_v50 = vld [vmem:[#allocation13 + $0x6e0] ss:$16 sps:$4 sm:$0xff]  }
 0x194   : > { %v686_v29 = vld [vmem:[#allocation12 + $0xb0] sm:$0xff] }
 0x195   : > { %3269 = vmatpush1.bf16.msra.mxu1 %v7900_v51  ;;  %v7935_v51 = vld [vmem:[#allocation13 + $0x704] ss:$16 sps:$4 sm:$0xff]  }
 0x196   : > { %3270 = vmatprep.subr.bf16.mxu1 %v7905_v52  ;;  %v769_v52 = vld [vmem:[#allocation12 + $0x348] sm:$0xff] }
 0x197   : > { %v6656_v61 = vcombine.high %v769_v52, %v773_v54  ;;  %v6655_v18 = vcombine.low %v769_v52, %v773_v54  ;;  %v682_v52 = vld [vmem:[#allocation12 + $0x90] sm:$0xff]  ;;  %v7963_v54 = vld [vmem:[#allocation13 + $0x48] ss:$16 sps:$4 sm:$0xff]  }
 0x199   : > { %3271 = vmatpush1.bf16.msra.mxu1 %v7903_v56  ;;  %v7933_v56 = vld [vmem:[#allocation13 + $0x700] ss:$16 sps:$4 sm:$0xff]  }
 0x19a   : > { %1490 = vmatpush1.bf16.xpose.msra.mxu0 %v6607_v58  ;;  %3272 = vmatprep.subr.bf16.mxu1 %v7908_v63  ;;  %v7938_v58 = vld [vmem:[#allocation13 + $0x724] ss:$16 sps:$4 sm:$0xff]  }
 0x19b   : > { %1491 = vmatprep.subr.bf16.mxu0 %v6616_v0  ;;  %v7941_v63 = vld [vmem:[#allocation13 + $0x744] ss:$16 sps:$4 sm:$0xff]   ;;  %v777_v0 = vld [vmem:[#allocation12 + $0x388] sm:$0xff] }
 0x19c   : > { %v6663_v7 = vcombine.low %v777_v0, %v781_v15 }
 0x19d   : > { %3273 = vmatpush1.bf16.msra.mxu1 %v7906_v2  ;;  %v6664_v2 = vcombine.high %v777_v0, %v781_v15  ;;  %v7972_v15 = vld [vmem:[#allocation13 + $0xa8] ss:$16 sps:$4 sm:$0xff]  }
 0x19e   : > { %3285 = vmatprep.subr.bf16.mxu1 %v7911_v3  ;;  %v7942_v3 = vld [vmem:[#allocation13 + $0x760] ss:$16 sps:$4 sm:$0xff]  }
 0x1a0   : > { %3275 = vmatmul.mubr.bf16.vlgmr.msra.gmra.mrb[0].mxu1 %v8778_v8 }
 0x1a1   : > { %3286 = vmatpush1.bf16.msra.mxu1 %v7909_v10  ;;  %3317 = vmatprep.mubr.bf16.mxu1 %v8780_v13  ;;  %v7950_v10 = vld [vmem:[#allocation13 + $0x7a4] ss:$16 sps:$4 sm:$0xff]  }
 0x1a2   : > { %1492 = vmatpush1.bf16.xpose.msra.mxu0 %v6615_v9  ;;  %3287 = vmatprep.subr.bf16.mxu1 %v7914_v11  ;;  %v7945_v9 = vld [vmem:[#allocation13 + $0x780] ss:$16 sps:$4 sm:$0xff]   ;;  %v6672_v11 = vcombine.high %v785_v5, %v789_v6 }
 0x1a3   : > { %1493 = vmatprep.subr.bf16.mxu0 %v6624_v12  ;;  %v7948_v12 = vld [vmem:[#allocation13 + $0x7a0] ss:$16 sps:$4 sm:$0xff]  }
 0x1a5   : > { %3288 = vmatpush1.bf16.msra.mxu1 %v7912_v14  ;;  %v7953_v14 = vld [vmem:[#allocation13 + $0x7c4] ss:$16 sps:$4 sm:$0xff]  }
 0x1a6   : > { %3289 = vmatprep.subr.bf16.mxu1 %v7917_v16  ;;  %v666_v16 = vld [vmem:[#allocation12 + $0x10] sm:$0xff] }
 0x1a7   : > { %v6554_v26 = vcombine.high %v666_v16, %v670_v17  ;;  %v6553_v41 = vcombine.low %v666_v16, %v670_v17  ;;  %v7984_v17 = vld [vmem:[#allocation13 + $0x128] ss:$16 sps:$4 sm:$0xff]  }
 0x1a9   : > { %3290 = vmatpush1.bf16.msra.mxu1 %v7915_v21  ;;  %v6671_v21 = vcombine.low %v785_v5, %v789_v6  ;;  %v7978_v6 = vld [vmem:[#allocation13 + $0xe8] ss:$16 sps:$4 sm:$0xff]  }
 0x1aa   : > { %1494 = vmatpush1.bf16.xpose.msra.mxu0 %v6623_v20  ;;  %3291 = vmatprep.subr.bf16.mxu1 %v7920_v22  ;;  %v8784_v20 = vld [vmem:[#allocation9 + $0x30] sm:$0xff] }
 0x1ab   : > { %1495 = vmatprep.subr.bf16.mxu0 %v6632_v23  ;;  %v8786_v22 = vld [vmem:[#allocation9 + $0x70] sm:$0xff] }
 0x1ac   : > { %v626_v23 = vld [vmem:[#allocation10 + $0x30] sm:$0xff] }
 0x1ad   : > { %3292 = vmatpush1.bf16.msra.mxu1 %v7918_v24  ;;  %v634_v24 = vld [vmem:[#allocation10 + $0x70] sm:$0xff]  ;;  %v642_v28 = vadd.f32 %v626_v23, %v8784_v20 }
 0x1ae   : > { %3293 = vmatprep.subr.bf16.mxu1 %v7923_v25  ;;  %v7956_v25 = vld [vmem:[#allocation13 + $0x7e4] ss:$16 sps:$4 sm:$0xff]  }
 0x1af   : > { %v718_v23 = vld [vmem:[#allocation12 + $0x1b0] sm:$0xff] }
 0x1b1   : > { %3294 = vmatpush1.bf16.msra.mxu1 %v7921_v31  ;;  %v7954_v31 = vld [vmem:[#allocation13 + $0x7e0] ss:$16 sps:$4 sm:$0xff]  }
 0x1b2   : > { %1496 = vmatpush1.bf16.xpose.msra.mxu0 %v6631_v30  ;;  %3295 = vmatprep.subr.bf16.mxu1 %v7926_v34  ;;  %v650_v30 = vadd.f32 %v634_v24, %v8786_v22  ;;  %v7959_v34 = vld [vmem:[#allocation13 + $0xc] ss:$16 sps:$4 sm:$0xff]  }
 0x1b3   : > { %1497 = vmatprep.subr.bf16.mxu0 %v6640_v35  ;;  %v674_v35 = vld [vmem:[#allocation12 + $0x50] sm:$0xff] }
 0x1b5   : > { %3296 = vmatpush1.bf16.msra.mxu1 %v7924_v36  ;;  %v678_v36 = vld [vmem:[#allocation12 + $0x70] sm:$0xff] }
 0x1b6   : > { %3297 = vmatprep.subr.bf16.mxu1 %v7929_v39  ;;  %v8790_v39 = vpack.c.bf16 %v650_v30, %v642_v28  ;;  %v6561_v33 = vcombine.low %v674_v35, %v678_v36  ;;  %v7990_v30 = vld [vmem:[#allocation13 + $0x168] ss:$16 sps:$4 sm:$0xff]  }
 0x1b9   : > { %3298 = vmatpush1.bf16.msra.mxu1 %v7927_v43  ;;  %v7962_v43 = vld [vmem:[#allocation13 + $0x2c] ss:$16 sps:$4 sm:$0xff]  }
 0x1ba   : > { %1498 = vmatpush1.bf16.xpose.msra.mxu0 %v6639_v42  ;;  %3299 = vmatprep.subr.bf16.mxu1 %v7932_v44  ;;  %v7957_v42 = vld [vmem:[#allocation13 + $0x8] ss:$16 sps:$4 sm:$0xff]   ;;  %v6562_v44 = vcombine.high %v674_v35, %v678_v36  ;;  %v726_v35 = vld [vmem:[#allocation12 + $0x1f0] sm:$0xff] }
 0x1bb   : > { %1499 = vmatprep.subr.bf16.mxu0 %v6648_v49  ;;  %v617_v49 = vpack.c.bf16 %v8749_v38, %v8747_v37  ;;  %v6570_v37 = vcombine.high %v682_v52, %v686_v29  ;;  %v7966_v38 = vld [vmem:[#allocation13 + $0x68] ss:$16 sps:$4 sm:$0xff]  }
 0x1bd   : > { %3300 = vmatpush1.bf16.msra.mxu1 %v7930_v50  ;;  %v7960_v50 = vld [vmem:[#allocation13 + $0x28] ss:$16 sps:$4 sm:$0xff]  }
 0x1be   : > { %3301 = vmatprep.subr.bf16.mxu1 %v7935_v51  ;;  %v7965_v51 = vld [vmem:[#allocation13 + $0x4c] ss:$16 sps:$4 sm:$0xff]  }
 0x1c1   : > { %3302 = vmatpush1.bf16.msra.mxu1 %v7933_v56  ;;  %v7971_v56 = vld [vmem:[#allocation13 + $0x8c] ss:$16 sps:$4 sm:$0xff]  }
 0x1c2   : > { %1500 = vmatpush1.bf16.xpose.msra.mxu0 %v6647_v55  ;;  %3303 = vmatprep.subr.bf16.mxu1 %v7938_v58  ;;  %v7968_v55 = vld [vmem:[#allocation13 + $0x6c] ss:$16 sps:$4 sm:$0xff]   ;;  %v690_v58 = vld [vmem:[#allocation12 + $0xd0] sm:$0xff] }
 0x1c3   : > { %1501 = vmatprep.subr.bf16.mxu0 %v6656_v61  ;;  %v694_v61 = vld [vmem:[#allocation12 + $0xf0] sm:$0xff] }
 0x1c4   : > { %v6578_v0 = vcombine.high %v690_v58, %v694_v61 }
 0x1c5   : > { %3304 = vmatpush1.bf16.msra.mxu1 %v7936_v62  ;;  %v6569_v62 = vcombine.low %v682_v52, %v686_v29  ;;  %v7999_v52 = vld [vmem:[#allocation13 + $0x1c8] ss:$16 sps:$4 sm:$0xff]   ;;  %v8004_v29 = vld [vmem:[#allocation13 + $0x1ec] ss:$16 sps:$4 sm:$0xff]  }
 0x1c6   : > { %3305 = vmatprep.subr.bf16.mxu1 %v7941_v63  ;;  %v7969_v63 = vld [vmem:[#allocation13 + $0x88] ss:$16 sps:$4 sm:$0xff]  }
 0x1c9   : > { %3306 = vmatpush1.bf16.msra.mxu1 %v7939_v46  ;;  %v698_v46 = vld [vmem:[#allocation12 + $0x110] sm:$0xff] }
 0x1ca   : > { %1502 = vmatpush1.bf16.xpose.msra.mxu0 %v6655_v18  ;;  %3307 = vmatprep.subr.bf16.mxu1 %v7944_v48  ;;  %v7977_v18 = vld [vmem:[#allocation13 + $0xcc] ss:$16 sps:$4 sm:$0xff]   ;;  %v702_v48 = vld [vmem:[#allocation12 + $0x130] sm:$0xff] }
 0x1cb   : > { %1503 = vmatprep.subr.bf16.mxu0 %v6664_v2  ;;  %v6577_v2 = vcombine.low %v690_v58, %v694_v61  ;;  %v6586_v5 = vcombine.high %v698_v46, %v702_v48  ;;  %v8005_v58 = vld [vmem:[#allocation13 + $0x208] ss:$16 sps:$4 sm:$0xff]   ;;  %v8010_v61 = vld [vmem:[#allocation13 + $0x22c] ss:$16 sps:$4 sm:$0xff]  }
 0x1cd   : > { %3308 = vmatpush1.bf16.msra.mxu1 %v7942_v3  ;;  %v7975_v3 = vld [vmem:[#allocation13 + $0xc8] ss:$16 sps:$4 sm:$0xff]  }
 0x1ce   : > { %3309 = vmatprep.subr.bf16.mxu1 %v7947_v4  ;;  %v7980_v4 = vld [vmem:[#allocation13 + $0xec] ss:$16 sps:$4 sm:$0xff]  }
 0x1d1   : > { %3310 = vmatpush1.bf16.msra.mxu1 %v7945_v9  ;;  %v706_v9 = vld [vmem:[#allocation12 + $0x150] sm:$0xff] }
 0x1d2   : > { %1504 = vmatpush1.bf16.xpose.msra.mxu0 %v6663_v7  ;;  %3311 = vmatprep.subr.bf16.mxu1 %v7950_v10  ;;  %v7983_v7 = vld [vmem:[#allocation13 + $0x10c] ss:$16 sps:$4 sm:$0xff]   ;;  %v710_v10 = vld [vmem:[#allocation12 + $0x170] sm:$0xff] }
 0x1d3   : > { %1505 = vmatprep.subr.bf16.mxu0 %v6672_v11  ;;  %v6585_v11 = vcombine.low %v698_v46, %v702_v48  ;;  %v6594_v16 = vcombine.high %v706_v9, %v710_v10  ;;  %v6593_v24 = vcombine.low %v706_v9, %v710_v10  ;;  %v8011_v46 = vld [vmem:[#allocation13 + $0x248] ss:$16 sps:$4 sm:$0xff]   ;;  %v8016_v48 = vld [vmem:[#allocation13 + $0x26c] ss:$16 sps:$4 sm:$0xff]  }
 0x1d4   : > { %v8022_v9 = vld [vmem:[#allocation13 + $0x2ac] ss:$16 sps:$4 sm:$0xff]   ;;  %v8020_v10 = vld [vmem:[#allocation13 + $0x2a8] ss:$16 sps:$4 sm:$0xff]  }
 0x1d5   : > { %3312 = vmatpush1.bf16.msra.mxu1 %v7948_v12  ;;  %v7981_v12 = vld [vmem:[#allocation13 + $0x108] ss:$16 sps:$4 sm:$0xff]  }
 0x1d6   : > { %3313 = vmatprep.subr.bf16.mxu1 %v7953_v14  ;;  %v7986_v14 = vld [vmem:[#allocation13 + $0x12c] ss:$16 sps:$4 sm:$0xff]  }
 0x1d9   : > { %3314 = vmatpush1.bf16.msra.mxu1 %v7951_v19  ;;  %v7989_v19 = vld [vmem:[#allocation13 + $0x14c] ss:$16 sps:$4 sm:$0xff]  }
 0x1da   : > { %1506 = vmatpush1.bf16.xpose.msra.mxu0 %v6671_v21  ;;  %3315 = vmatprep.subr.bf16.mxu1 %v7956_v25  ;;  %v714_v21 = vld [vmem:[#allocation12 + $0x190] sm:$0xff]  ;;  %v7987_v25 = vld [vmem:[#allocation13 + $0x148] ss:$16 sps:$4 sm:$0xff]  }
 0x1db   : > { %1518 = vmatprep.subr.bf16.mxu0 %v6554_v26  ;;  %v7992_v26 = vld [vmem:[#allocation13 + $0x16c] ss:$16 sps:$4 sm:$0xff]   ;;  %v6602_v28 = vcombine.high %v714_v21, %v718_v23  ;;  %v6601_v36 = vcombine.low %v714_v21, %v718_v23  ;;  %v8026_v23 = vld [vmem:[#allocation13 + $0x2e8] ss:$16 sps:$4 sm:$0xff]  }
 0x1dd   : > { %3316 = vmatpush1.bf16.msra.mxu1 %v7954_v31  ;;  %v7995_v31 = vld [vmem:[#allocation13 + $0x18c] ss:$16 sps:$4 sm:$0xff]  }
 0x1de   : > { %3328 = vmatprep.subr.bf16.mxu1 %v7959_v34  ;;  %v722_v34 = vld [vmem:[#allocation12 + $0x1d0] sm:$0xff] }
 0x1e0   : > { %3318 = vmatmul.mubr.bf16.vlgmr.msra.gmra.mrb[0].mxu1 %v8790_v39 }
 0x1e1   : > { %1508 = vmatmul.mubr.bf16.vlgmr.msra.gmra.mrb[0].mxu0 %v614_v40  ;;  %3329 = vmatpush1.bf16.msra.mxu1 %v7957_v42  ;;  %v7993_v40 = vld [vmem:[#allocation13 + $0x188] ss:$16 sps:$4 sm:$0xff]   ;;  %v6610_v42 = vcombine.high %v722_v34, %v726_v35 }
 0x1e2   : > { %1519 = vmatpush1.bf16.xpose.msra.mxu0 %v6553_v41  ;;  %3330 = vmatprep.subr.bf16.mxu1 %v7962_v43  ;;  %v7998_v41 = vld [vmem:[#allocation13 + $0x1ac] ss:$16 sps:$4 sm:$0xff]   ;;  %v7996_v43 = vld [vmem:[#allocation13 + $0x1a8] ss:$16 sps:$4 sm:$0xff]  }
 0x1e3   : > { %1520 = vmatprep.subr.bf16.mxu0 %v6562_v44  ;;  %3360 = vmatprep.mubr.bf16.mxu1 %v8724_v47  ;;  %v7974_v47 = vld [vmem:[#allocation13 + $0xac] ss:$16 sps:$4 sm:$0xff]  }
 0x1e4   : > { %1550 = vmatprep.mubr.bf16.mxu0 %v617_v49  ;;  %v8001_v44 = vld [vmem:[#allocation13 + $0x1cc] ss:$16 sps:$4 sm:$0xff]   ;;  %v730_v49 = vld [vmem:[#allocation12 + $0x210] sm:$0xff] }
 0x1e5   : > { %3331 = vmatpush1.bf16.msra.mxu1 %v7960_v50  ;;  %v734_v50 = vld [vmem:[#allocation12 + $0x230] sm:$0xff] }
 0x1e6   : > { %3332 = vmatprep.subr.bf16.mxu1 %v7965_v51  ;;  %v6609_v51 = vcombine.low %v722_v34, %v726_v35  ;;  %v8032_v35 = vld [vmem:[#allocation13 + $0x328] ss:$16 sps:$4 sm:$0xff]  }
 0x1e9   : > { %3333 = vmatpush1.bf16.msra.mxu1 %v7963_v54  ;;  %v8002_v54 = vld [vmem:[#allocation13 + $0x1e8] ss:$16 sps:$4 sm:$0xff]  }
 0x1ea   : > { %1521 = vmatpush1.bf16.xpose.msra.mxu0 %v6561_v33  ;;  %3334 = vmatprep.subr.bf16.mxu1 %v7968_v55  ;;  %v6618_v33 = vcombine.high %v730_v49, %v734_v50  ;;  %v8007_v55 = vld [vmem:[#allocation13 + $0x20c] ss:$16 sps:$4 sm:$0xff]  }
 0x1eb   : > { %1522 = vmatprep.subr.bf16.mxu0 %v6570_v37  ;;  %v738_v37 = vld [vmem:[#allocation12 + $0x250] sm:$0xff] }
 0x1ed   : > { %3335 = vmatpush1.bf16.msra.mxu1 %v7966_v38  ;;  %v742_v38 = vld [vmem:[#allocation12 + $0x270] sm:$0xff] }
 0x1ee   : > { %3336 = vmatprep.subr.bf16.mxu1 %v7971_v56  ;;  %v6617_v56 = vcombine.low %v730_v49, %v734_v50  ;;  %v8038_v50 = vld [vmem:[#allocation13 + $0x368] ss:$16 sps:$4 sm:$0xff]  }
 0x1f1   : > { %3337 = vmatpush1.bf16.msra.mxu1 %v7969_v63  ;;  %v8008_v63 = vld [vmem:[#allocation13 + $0x228] ss:$16 sps:$4 sm:$0xff]  }
 0x1f2   : > { %1523 = vmatpush1.bf16.xpose.msra.mxu0 %v6569_v62  ;;  %3338 = vmatprep.subr.bf16.mxu1 %v7974_v47  ;;  %v6626_v62 = vcombine.high %v738_v37, %v742_v38  ;;  %v8013_v47 = vld [vmem:[#allocation13 + $0x24c] ss:$16 sps:$4 sm:$0xff]  }
 0x1f3   : > { %1524 = vmatprep.subr.bf16.mxu0 %v6578_v0  ;;  %v746_v0 = vld [vmem:[#allocation12 + $0x290] sm:$0xff] }
 0x1f5   : > { %3339 = vmatpush1.bf16.msra.mxu1 %v7972_v15  ;;  %v750_v15 = vld [vmem:[#allocation12 + $0x2b0] sm:$0xff] }
 0x1f6   : > { %3340 = vmatprep.subr.bf16.mxu1 %v7977_v18  ;;  %v6625_v18 = vcombine.low %v738_v37, %v742_v38  ;;  %v8044_v38 = vld [vmem:[#allocation13 + $0x3a8] ss:$16 sps:$4 sm:$0xff]  }
 0x1f9   : > { %3341 = vmatpush1.bf16.msra.mxu1 %v7975_v3  ;;  %v8014_v3 = vld [vmem:[#allocation13 + $0x268] ss:$16 sps:$4 sm:$0xff]  }
 0x1fa   : > { %1525 = vmatpush1.bf16.xpose.msra.mxu0 %v6577_v2  ;;  %3342 = vmatprep.subr.bf16.mxu1 %v7980_v4  ;;  %v6634_v2 = vcombine.high %v746_v0, %v750_v15  ;;  %v754_v4 = vld [vmem:[#allocation12 + $0x2d0] sm:$0xff] }
 0x1fb   : > { %1526 = vmatprep.subr.bf16.mxu0 %v6586_v5  ;;  %v758_v5 = vld [vmem:[#allocation12 + $0x2f0] sm:$0xff] }
 0x1fd   : > { %3343 = vmatpush1.bf16.msra.mxu1 %v7978_v6  ;;  %v6633_v6 = vcombine.low %v746_v0, %v750_v15  ;;  %v8050_v15 = vld [vmem:[#allocation13 + $0x3e8] ss:$16 sps:$4 sm:$0xff]  }
 0x1fe   : > { %3344 = vmatprep.subr.bf16.mxu1 %v7983_v7  ;;  %v8017_v7 = vld [vmem:[#allocation13 + $0x288] ss:$16 sps:$4 sm:$0xff]  }
 0x201   : > { %3345 = vmatpush1.bf16.msra.mxu1 %v7981_v12  ;;  %v762_v12 = vld [vmem:[#allocation12 + $0x310] sm:$0xff] }
 0x202   : > { %1527 = vmatpush1.bf16.xpose.msra.mxu0 %v6585_v11  ;;  %3346 = vmatprep.subr.bf16.mxu1 %v7986_v14  ;;  %v8025_v11 = vld [vmem:[#allocation13 + $0x2cc] ss:$16 sps:$4 sm:$0xff]   ;;  %v766_v14 = vld [vmem:[#allocation12 + $0x330] sm:$0xff] }
 0x203   : > { %1528 = vmatprep.subr.bf16.mxu0 %v6594_v16  ;;  %v6641_v16 = vcombine.low %v754_v4, %v758_v5  ;;  %v6650_v21 = vcombine.high %v762_v12, %v766_v14 }
 0x205   : > { %3347 = vmatpush1.bf16.msra.mxu1 %v7984_v17  ;;  %v8023_v17 = vld [vmem:[#allocation13 + $0x2c8] ss:$16 sps:$4 sm:$0xff]  }
 0x206   : > { %3348 = vmatprep.subr.bf16.mxu1 %v7989_v19  ;;  %v8028_v19 = vld [vmem:[#allocation13 + $0x2ec] ss:$16 sps:$4 sm:$0xff]  }
 0x209   : > { %3349 = vmatpush1.bf16.msra.mxu1 %v7987_v25  ;;  %v770_v25 = vld [vmem:[#allocation12 + $0x350] sm:$0xff] }
 0x20a   : > { %1529 = vmatpush1.bf16.xpose.msra.mxu0 %v6593_v24  ;;  %3350 = vmatprep.subr.bf16.mxu1 %v7992_v26  ;;  %v8031_v24 = vld [vmem:[#allocation13 + $0x30c] ss:$16 sps:$4 sm:$0xff]   ;;  %v774_v26 = vld [vmem:[#allocation12 + $0x370] sm:$0xff] }
 0x20b   : > { %1530 = vmatprep.subr.bf16.mxu0 %v6602_v28  ;;  %v6649_v28 = vcombine.low %v762_v12, %v766_v14  ;;  %v6658_v34 = vcombine.high %v770_v25, %v774_v26  ;;  %v691_v12 = vld [vmem:[#allocation12 + $0xd8] sm:$0xff] }
 0x20c   : > { %v695_v14 = vld [vmem:[#allocation12 + $0xf8] sm:$0xff] }
 0x20d   : > { %3351 = vmatpush1.bf16.msra.mxu1 %v7990_v30  ;;  %v8029_v30 = vld [vmem:[#allocation13 + $0x308] ss:$16 sps:$4 sm:$0xff]  }
 0x20e   : > { %3352 = vmatprep.subr.bf16.mxu1 %v7995_v31  ;;  %v8034_v31 = vld [vmem:[#allocation13 + $0x32c] ss:$16 sps:$4 sm:$0xff]  }
 0x211   : > { %3353 = vmatpush1.bf16.msra.mxu1 %v7993_v40  ;;  %v778_v40 = vld [vmem:[#allocation12 + $0x390] sm:$0xff] }
 0x212   : > { %1531 = vmatpush1.bf16.xpose.msra.mxu0 %v6601_v36  ;;  %3354 = vmatprep.subr.bf16.mxu1 %v7998_v41  ;;  %v8037_v36 = vld [vmem:[#allocation13 + $0x34c] ss:$16 sps:$4 sm:$0xff]   ;;  %v782_v41 = vld [vmem:[#allocation12 + $0x3b0] sm:$0xff] }
 0x213   : > { %1532 = vmatprep.subr.bf16.mxu0 %v6610_v42  ;;  %v6657_v42 = vcombine.low %v770_v25, %v774_v26  ;;  %v6666_v49 = vcombine.high %v778_v40, %v782_v41  ;;  %v703_v25 = vld [vmem:[#allocation12 + $0x138] sm:$0xff]  ;;  %v6579_v26 = vcombine.low %v691_v12, %v695_v14 }
 0x215   : > { %3355 = vmatpush1.bf16.msra.mxu1 %v7996_v43  ;;  %v8035_v43 = vld [vmem:[#allocation13 + $0x348] ss:$16 sps:$4 sm:$0xff]  }
 0x216   : > { %3356 = vmatprep.subr.bf16.mxu1 %v8001_v44  ;;  %v8040_v44 = vld [vmem:[#allocation13 + $0x36c] ss:$16 sps:$4 sm:$0xff]  }
 0x219   : > { %3357 = vmatpush1.bf16.msra.mxu1 %v7999_v52  ;;  %v786_v52 = vld [vmem:[#allocation12 + $0x3d0] sm:$0xff] }
 0x21a   : > { %1533 = vmatpush1.bf16.xpose.msra.mxu0 %v6609_v51  ;;  %3358 = vmatprep.subr.bf16.mxu1 %v8004_v29  ;;  %v8043_v51 = vld [vmem:[#allocation13 + $0x38c] ss:$16 sps:$4 sm:$0xff]   ;;  %v790_v29 = vld [vmem:[#allocation12 + $0x3f0] sm:$0xff] }
 0x21b   : > { %1534 = vmatprep.subr.bf16.mxu0 %v6618_v33  ;;  %v6665_v33 = vcombine.low %v778_v40, %v782_v41  ;;  %v6674_v37 = vcombine.high %v786_v52, %v790_v29  ;;  %v711_v40 = vld [vmem:[#allocation12 + $0x178] sm:$0xff] }
 0x21d   : > { %3359 = vmatpush1.bf16.msra.mxu1 %v8002_v54  ;;  %v8041_v54 = vld [vmem:[#allocation13 + $0x388] ss:$16 sps:$4 sm:$0xff]  }
 0x21e   : > { %3371 = vmatprep.subr.bf16.mxu1 %v8007_v55  ;;  %v8046_v55 = vld [vmem:[#allocation13 + $0x3ac] ss:$16 sps:$4 sm:$0xff]  }
 0x220   : > { %3361 = vmatmul.mubr.bf16.vlgmr.msra.gmra.mrb[4].mxu1 %v8737_v27  ;;  %v8019_v27 = vld [vmem:[#allocation13 + $0x28c] ss:$16 sps:$4 sm:$0xff]  }
 0x221   : > { %3372 = vmatpush1.bf16.msra.mxu1 %v8005_v58  ;;  %3403 = vmatprep.mubr.bf16.mxu1 %v8739_v32  ;;  %v6642_v32 = vcombine.high %v754_v4, %v758_v5  ;;  %v667_v58 = vld [vmem:[#allocation12 + $0x18] sm:$0xff] }
 0x222   : > { %1535 = vmatpush1.bf16.xpose.msra.mxu0 %v6617_v56  ;;  %3373 = vmatprep.subr.bf16.mxu1 %v8010_v61  ;;  %v8049_v56 = vld [vmem:[#allocation13 + $0x3cc] ss:$16 sps:$4 sm:$0xff]  }
 0x223   : > { %1536 = vmatprep.subr.bf16.mxu0 %v6626_v62  ;;  %v671_v61 = vld [vmem:[#allocation12 + $0x38] sm:$0xff]  ;;  %v6673_v62 = vcombine.low %v786_v52, %v790_v29 }
 0x224   : > { %v6556_v0 = vcombine.high %v667_v58, %v671_v61  ;;  %v8058_v4 = vld [vmem:[#allocation13 + $0x42c] ss:$16 sps:$4 sm:$0xff]  }
 0x225   : > { %3374 = vmatpush1.bf16.msra.mxu1 %v8008_v63  ;;  %v8047_v63 = vld [vmem:[#allocation13 + $0x3c8] ss:$16 sps:$4 sm:$0xff]  }
 0x226   : > { %3375 = vmatprep.subr.bf16.mxu1 %v8013_v47  ;;  %v8052_v47 = vld [vmem:[#allocation13 + $0x3ec] ss:$16 sps:$4 sm:$0xff]  }
 0x227   : > { %v719_v52 = vld [vmem:[#allocation12 + $0x1b8] sm:$0xff] }
 0x229   : > { %3376 = vmatpush1.bf16.msra.mxu1 %v8011_v46  ;;  %v675_v46 = vld [vmem:[#allocation12 + $0x58] sm:$0xff] }
 0x22a   : > { %1537 = vmatpush1.bf16.xpose.msra.mxu0 %v6625_v18  ;;  %3377 = vmatprep.subr.bf16.mxu1 %v8016_v48  ;;  %v8055_v18 = vld [vmem:[#allocation13 + $0x40c] ss:$16 sps:$4 sm:$0xff]  }
 0x22b   : > { %1538 = vmatprep.subr.bf16.mxu0 %v6634_v2  ;;  %v679_v48 = vld [vmem:[#allocation12 + $0x78] sm:$0xff]  ;;  %v616_v2 = vpack.c.bf16 %v8768_v60, %v8766_v57 }
 0x22c   : > { %v6564_v5 = vcombine.high %v675_v46, %v679_v48  ;;  %v687_v57 = vld [vmem:[#allocation12 + $0xb8] sm:$0xff]  ;;  %v6563_v60 = vcombine.low %v675_v46, %v679_v48 }
 0x22d   : > { %3378 = vmatpush1.bf16.msra.mxu1 %v8014_v3  ;;  %v6555_v3 = vcombine.low %v667_v58, %v671_v61  ;;  %v727_v58 = vld [vmem:[#allocation12 + $0x1f8] sm:$0xff] }
 0x22e   : > { %3379 = vmatprep.subr.bf16.mxu1 %v8019_v27  ;;  %v8053_v27 = vld [vmem:[#allocation13 + $0x408] ss:$16 sps:$4 sm:$0xff]  }
 0x22f   : > { %v735_v46 = vld [vmem:[#allocation12 + $0x238] sm:$0xff] }
 0x231   : > { %3380 = vmatpush1.bf16.msra.mxu1 %v8017_v7  ;;  %v8056_v7 = vld [vmem:[#allocation13 + $0x428] ss:$16 sps:$4 sm:$0xff]  }
 0x232   : > { %1539 = vmatpush1.bf16.xpose.msra.mxu0 %v6633_v6  ;;  %3381 = vmatprep.subr.bf16.mxu1 %v8022_v9  ;;  %v619_v6 = vpack.c.bf16 %v8774_v45, %v8770_v1  ;;  %v8061_v9 = vld [vmem:[#allocation13 + $0x44c] ss:$16 sps:$4 sm:$0xff]  }
 0x233   : > { %1540 = vmatprep.subr.bf16.mxu0 %v6642_v32  ;;  %v683_v32 = vld [vmem:[#allocation12 + $0x98] sm:$0xff] }
 0x234   : > { %v6572_v1 = vcombine.high %v683_v32, %v687_v57  ;;  %v8067_v45 = vld [vmem:[#allocation13 + $0x48c] ss:$16 sps:$4 sm:$0xff]  }
 0x235   : > { %3382 = vmatpush1.bf16.msra.mxu1 %v8020_v10  ;;  %v8059_v10 = vld [vmem:[#allocation13 + $0x448] ss:$16 sps:$4 sm:$0xff]  }
 0x236   : > { %3383 = vmatprep.subr.bf16.mxu1 %v8025_v11  ;;  %v8064_v11 = vld [vmem:[#allocation13 + $0x46c] ss:$16 sps:$4 sm:$0xff]  }
 0x239   : > { %3384 = vmatpush1.bf16.msra.mxu1 %v8023_v17  ;;  %v8065_v17 = vld [vmem:[#allocation13 + $0x488] ss:$16 sps:$4 sm:$0xff]  }
 0x23a   : > { %1541 = vmatpush1.bf16.xpose.msra.mxu0 %v6641_v16  ;;  %3385 = vmatprep.subr.bf16.mxu1 %v8028_v19  ;;  %v6571_v16 = vcombine.low %v683_v32, %v687_v57  ;;  %v6580_v19 = vcombine.high %v691_v12, %v695_v14  ;;  %v8101_v32 = vld [vmem:[#allocation13 + $0x608] ss:$16 sps:$4 sm:$0xff]   ;;  %v8106_v57 = vld [vmem:[#allocation13 + $0x62c] ss:$16 sps:$4 sm:$0xff]  }
 0x23b   : > { %1542 = vmatprep.subr.bf16.mxu0 %v6650_v21  ;;  %v8068_v21 = vld [vmem:[#allocation13 + $0x4a8] ss:$16 sps:$4 sm:$0xff]  }
 0x23c   : > { %v8107_v14 = vld [vmem:[#allocation13 + $0x648] ss:$16 sps:$4 sm:$0xff]  }
 0x23d   : > { %3386 = vmatpush1.bf16.msra.mxu1 %v8026_v23  ;;  %v8073_v23 = vld [vmem:[#allocation13 + $0x4cc] ss:$16 sps:$4 sm:$0xff]  }
 0x23e   : > { %3387 = vmatprep.subr.bf16.mxu1 %v8031_v24  ;;  %v699_v24 = vld [vmem:[#allocation12 + $0x118] sm:$0xff] }
 0x23f   : > { %v6587_v41 = vcombine.low %v699_v24, %v703_v25 }
 0x241   : > { %3388 = vmatpush1.bf16.msra.mxu1 %v8029_v30  ;;  %v8076_v30 = vld [vmem:[#allocation13 + $0x4ec] ss:$16 sps:$4 sm:$0xff]  }
 0x242   : > { %1543 = vmatpush1.bf16.xpose.msra.mxu0 %v6649_v28  ;;  %3389 = vmatprep.subr.bf16.mxu1 %v8034_v31  ;;  %v8071_v28 = vld [vmem:[#allocation13 + $0x4c8] ss:$16 sps:$4 sm:$0xff]   ;;  %v6588_v31 = vcombine.high %v699_v24, %v703_v25 }
 0x243   : > { %1544 = vmatprep.subr.bf16.mxu0 %v6658_v34  ;;  %v8074_v34 = vld [vmem:[#allocation13 + $0x4e8] ss:$16 sps:$4 sm:$0xff]  }
 0x244   : > { %v8113_v25 = vld [vmem:[#allocation13 + $0x688] ss:$16 sps:$4 sm:$0xff]  }
 0x245   : > { %3390 = vmatpush1.bf16.msra.mxu1 %v8032_v35  ;;  %v8079_v35 = vld [vmem:[#allocation13 + $0x50c] ss:$16 sps:$4 sm:$0xff]  }
 0x246   : > { %3391 = vmatprep.subr.bf16.mxu1 %v8037_v36  ;;  %v707_v36 = vld [vmem:[#allocation12 + $0x158] sm:$0xff] }
 0x247   : > { %v6595_v29 = vcombine.low %v707_v36, %v711_v40 }
 0x249   : > { %3392 = vmatpush1.bf16.msra.mxu1 %v8035_v43  ;;  %v8082_v43 = vld [vmem:[#allocation13 + $0x52c] ss:$16 sps:$4 sm:$0xff]  }
 0x24a   : > { %1545 = vmatpush1.bf16.xpose.msra.mxu0 %v6657_v42  ;;  %3393 = vmatprep.subr.bf16.mxu1 %v8040_v44  ;;  %v8077_v42 = vld [vmem:[#allocation13 + $0x508] ss:$16 sps:$4 sm:$0xff]   ;;  %v6596_v44 = vcombine.high %v707_v36, %v711_v40  ;;  %v8121_v40 = vld [vmem:[#allocation13 + $0x6cc] ss:$16 sps:$4 sm:$0xff]  }
 0x24b   : > { %1546 = vmatprep.subr.bf16.mxu0 %v6666_v49  ;;  %v8080_v49 = vld [vmem:[#allocation13 + $0x528] ss:$16 sps:$4 sm:$0xff]  }
 0x24c   : > { %v8116_v36 = vld [vmem:[#allocation13 + $0x6a8] ss:$16 sps:$4 sm:$0xff]  }
 0x24d   : > { %3394 = vmatpush1.bf16.msra.mxu1 %v8038_v50  ;;  %v8085_v50 = vld [vmem:[#allocation13 + $0x54c] ss:$16 sps:$4 sm:$0xff]  }
 0x24e   : > { %3395 = vmatprep.subr.bf16.mxu1 %v8043_v51  ;;  %v715_v51 = vld [vmem:[#allocation12 + $0x198] sm:$0xff] }
 0x24f   : > { %v6603_v61 = vcombine.low %v715_v51, %v719_v52 }
 0x251   : > { %3396 = vmatpush1.bf16.msra.mxu1 %v8041_v54  ;;  %v8088_v54 = vld [vmem:[#allocation13 + $0x56c] ss:$16 sps:$4 sm:$0xff]  }
 0x252   : > { %1547 = vmatpush1.bf16.xpose.msra.mxu0 %v6665_v33  ;;  %3397 = vmatprep.subr.bf16.mxu1 %v8046_v55  ;;  %v8083_v33 = vld [vmem:[#allocation13 + $0x548] ss:$16 sps:$4 sm:$0xff]   ;;  %v6604_v55 = vcombine.high %v715_v51, %v719_v52 }
 0x253   : > { %1548 = vmatprep.subr.bf16.mxu0 %v6674_v37  ;;  %v8086_v37 = vld [vmem:[#allocation13 + $0x568] ss:$16 sps:$4 sm:$0xff]  }
 0x255   : > { %3398 = vmatpush1.bf16.msra.mxu1 %v8044_v38  ;;  %v8091_v38 = vld [vmem:[#allocation13 + $0x58c] ss:$16 sps:$4 sm:$0xff]  }
 0x256   : > { %3399 = vmatprep.subr.bf16.mxu1 %v8049_v56  ;;  %v723_v56 = vld [vmem:[#allocation12 + $0x1d8] sm:$0xff] }
 0x257   : > { %v6611_v48 = vcombine.low %v723_v56, %v727_v58 }
 0x259   : > { %3400 = vmatpush1.bf16.msra.mxu1 %v8047_v63  ;;  %v8094_v63 = vld [vmem:[#allocation13 + $0x5ac] ss:$16 sps:$4 sm:$0xff]  }
 0x25a   : > { %1549 = vmatpush1.bf16.xpose.msra.mxu0 %v6673_v62  ;;  %3401 = vmatprep.subr.bf16.mxu1 %v8052_v47  ;;  %v8089_v62 = vld [vmem:[#allocation13 + $0x588] ss:$16 sps:$4 sm:$0xff]   ;;  %v6612_v47 = vcombine.high %v723_v56, %v727_v58 }
 0x25b   : > { %1561 = vmatprep.subr.bf16.mxu0 %v6556_v0  ;;  %v8092_v0 = vld [vmem:[#allocation13 + $0x5a8] ss:$16 sps:$4 sm:$0xff]  }
 0x25d   : > { %3402 = vmatpush1.bf16.msra.mxu1 %v8050_v15  ;;  %v8097_v15 = vld [vmem:[#allocation13 + $0x5cc] ss:$16 sps:$4 sm:$0xff]  }
 0x25e   : > { %3414 = vmatprep.subr.bf16.mxu1 %v8055_v18  ;;  %v731_v18 = vld [vmem:[#allocation12 + $0x218] sm:$0xff] }
 0x260   : > { %3404 = vmatmul.mubr.bf16.vlgmr.msra.gmra.mrb[4].mxu1 %v8755_v53  ;;  %v8062_v53 = vld [vmem:[#allocation13 + $0x468] ss:$16 sps:$4 sm:$0xff]  }
 0x261   : > { %1551 = vmatmul.mubr.bf16.vlgmr.msra.gmra.mrb[0].mxu0 %v616_v2  ;;  %3415 = vmatpush1.bf16.msra.mxu1 %v8053_v27  ;;  %v8095_v2 = vld [vmem:[#allocation13 + $0x5c8] ss:$16 sps:$4 sm:$0xff]   ;;  %v6620_v27 = vcombine.high %v731_v18, %v735_v46 }
 0x262   : > { %1562 = vmatpush1.bf16.xpose.msra.mxu0 %v6555_v3  ;;  %3416 = vmatprep.subr.bf16.mxu1 %v8058_v4  ;;  %v8100_v3 = vld [vmem:[#allocation13 + $0x5ec] ss:$16 sps:$4 sm:$0xff]   ;;  %v8098_v4 = vld [vmem:[#allocation13 + $0x5e8] ss:$16 sps:$4 sm:$0xff]  }
 0x263   : > { %1563 = vmatprep.subr.bf16.mxu0 %v6564_v5  ;;  %3446 = vmatprep.mubr.bf16.mxu1 %v8757_v59  ;;  %v8070_v59 = vld [vmem:[#allocation13 + $0x4ac] ss:$16 sps:$4 sm:$0xff]  }
 0x264   : > { %1593 = vmatprep.mubr.bf16.mxu0 %v619_v6  ;;  %v8103_v5 = vld [vmem:[#allocation13 + $0x60c] ss:$16 sps:$4 sm:$0xff]  }
 0x265   : > { %3417 = vmatpush1.bf16.msra.mxu1 %v8056_v7  ;;  %v739_v6 = vld [vmem:[#allocation12 + $0x258] sm:$0xff] }
 0x266   : > { %3418 = vmatprep.subr.bf16.mxu1 %v8061_v9  ;;  %v743_v7 = vld [vmem:[#allocation12 + $0x278] sm:$0xff]  ;;  %v6619_v9 = vcombine.low %v731_v18, %v735_v46 }
 0x267   : > { %v6627_v12 = vcombine.low %v739_v6, %v743_v7  ;;  %v771_v18 = vld [vmem:[#allocation12 + $0x358] sm:$0xff] }
 0x268   : > { %v775_v46 = vld [vmem:[#allocation12 + $0x378] sm:$0xff] }
 0x269   : > { %3419 = vmatpush1.bf16.msra.mxu1 %v8059_v10  ;;  %v8104_v10 = vld [vmem:[#allocation13 + $0x628] ss:$16 sps:$4 sm:$0xff]  }
 0x26a   : > { %1564 = vmatpush1.bf16.xpose.msra.mxu0 %v6563_v60  ;;  %3420 = vmatprep.subr.bf16.mxu1 %v8064_v11  ;;  %v6628_v60 = vcombine.high %v739_v6, %v743_v7  ;;  %v8109_v11 = vld [vmem:[#allocation13 + $0x64c] ss:$16 sps:$4 sm:$0xff]  }
 0x26b   : > { %1565 = vmatprep.subr.bf16.mxu0 %v6572_v1  ;;  %v747_v1 = vld [vmem:[#allocation12 + $0x298] sm:$0xff] }
 0x26c   : > { %v779_v6 = vld [vmem:[#allocation12 + $0x398] sm:$0xff] }
 0x26d   : > { %3421 = vmatpush1.bf16.msra.mxu1 %v8062_v53  ;;  %v751_v53 = vld [vmem:[#allocation12 + $0x2b8] sm:$0xff] }
 0x26e   : > { %3422 = vmatprep.subr.bf16.mxu1 %v8067_v45  ;;  %v3529_v45 = vlaneseq  ;;  %v783_v7 = vld [vmem:[#allocation12 + $0x3b8] sm:$0xff] }
 0x271   : > { %3423 = vmatpush1.bf16.msra.mxu1 %v8065_v17  ;;  %v6636_v17 = vcombine.high %v747_v1, %v751_v53 }
 0x272   : > { %1566 = vmatpush1.bf16.xpose.msra.mxu0 %v6571_v16  ;;  %3424 = vmatprep.subr.bf16.mxu1 %v8070_v59  ;;  %v8112_v16 = vld [vmem:[#allocation13 + $0x66c] ss:$16 sps:$4 sm:$0xff]   ;;  %v8808_v59 = vshrl.u32 %v3529_v45, 7  ;;  %v6667_v45 = vcombine.low %v779_v6, %v783_v7 }
 0x273   : > { %1567 = vmatprep.subr.bf16.mxu0 %v6580_v19  ;;  %v8115_v19 = vld [vmem:[#allocation13 + $0x68c] ss:$16 sps:$4 sm:$0xff]  }
 0x274   : > { %v3531_v24 = vsub.s32 0, %v8808_v59 }
 0x275   : > { %3425 = vmatpush1.bf16.msra.mxu1 %v8068_v21  ;;  %v755_v21 = vld [vmem:[#allocation12 + $0x2d8] sm:$0xff] }
 0x276   : > { %3426 = vmatprep.subr.bf16.mxu1 %v8073_v23  ;;  %v759_v23 = vld [vmem:[#allocation12 + $0x2f8] sm:$0xff] }
 0x277   : > { %v6643_v52 = vcombine.low %v755_v21, %v759_v23 }
 0x279   : > { %3427 = vmatpush1.bf16.msra.mxu1 %v8071_v28  ;;  %v3535_v28 = vsub.s32 1, %v8808_v59 }
 0x27a   : > { %1568 = vmatpush1.bf16.xpose.msra.mxu0 %v6579_v26  ;;  %3428 = vmatprep.subr.bf16.mxu1 %v8076_v30  ;;  %v8814_v26 = vld [vmem:[%s9098_s26] sm:$0xf]  ;;  %v8118_v30 = vld [vmem:[#allocation13 + $0x6ac] ss:$16 sps:$4 sm:$0xff]  }
 0x27b   : > { %1569 = vmatprep.subr.bf16.mxu0 %v6588_v31  ;;  %v6644_v31 = vcombine.high %v755_v21, %v759_v23  ;;  %v8143_v21 = vld [vmem:[#allocation13 + $0x7c8] ss:$16 sps:$4 sm:$0xff]   ;;  %v8148_v23 = vld [vmem:[#allocation13 + $0x7ec] ss:$16 sps:$4 sm:$0xff]  }
 0x27d   : > { %3429 = vmatpush1.bf16.msra.mxu1 %v8074_v34  ;;  %v3532_v34 = vrot.slane %v8814_v26, %v3531_v24  ;;  %v8146_v24 = vld [vmem:[#allocation13 + $0x7e8] ss:$16 sps:$4 sm:$0xff]  }
 0x27e   : > { %3430 = vmatprep.subr.bf16.mxu1 %v8079_v35  ;;  %v3536_v35 = vrot.slane %v8814_v26, %v3535_v28  ;;  %v576_v28 = vld [vmem:[#allocation16] sm:$0xff] }
 0x281   : > { %3431 = vmatpush1.bf16.msra.mxu1 %v8077_v42  ;;  %v763_v42 = vld [vmem:[#allocation12 + $0x318] sm:$0xff] }
 0x282   : > { %1570 = vmatpush1.bf16.xpose.msra.mxu0 %v6587_v41  ;;  %3432 = vmatprep.subr.bf16.mxu1 %v8082_v43  ;;  %v767_v43 = vld [vmem:[#allocation12 + $0x338] sm:$0xff] }
 0x283   : > { %1571 = vmatprep.subr.bf16.mxu0 %v6596_v44 }
 0x285   : > { %3433 = vmatpush1.bf16.msra.mxu1 %v8080_v49 }
 0x286   : > { %3434 = vmatprep.subr.bf16.mxu1 %v8085_v50 }
 0x289   : > { %3435 = vmatpush1.bf16.msra.mxu1 %v8083_v33 }
 0x28a   : > { %1572 = vmatpush1.bf16.xpose.msra.mxu0 %v6595_v29  ;;  %3436 = vmatprep.subr.bf16.mxu1 %v8088_v54  ;;  %v8119_v29 = vld [vmem:[#allocation13 + $0x6c8] ss:$16 sps:$4 sm:$0xff]  }
 0x28b   : > { %1573 = vmatprep.subr.bf16.mxu0 %v6604_v55  ;;  %v8124_v55 = vld [vmem:[#allocation13 + $0x6ec] ss:$16 sps:$4 sm:$0xff]  }
 0x28d   : > { %3437 = vmatpush1.bf16.msra.mxu1 %v8086_v37  ;;  %v6652_v37 = vcombine.high %v763_v42, %v767_v43 }
 0x28e   : > { %3438 = vmatprep.subr.bf16.mxu1 %v8091_v38 }
 0x291   : > { %3439 = vmatpush1.bf16.msra.mxu1 %v8089_v62 }
 0x292   : > { %1574 = vmatpush1.bf16.xpose.msra.mxu0 %v6603_v61  ;;  %3440 = vmatprep.subr.bf16.mxu1 %v8094_v63  ;;  %v8122_v63 = vld [vmem:[#allocation13 + $0x6e8] ss:$16 sps:$4 sm:$0xff]  }
 0x293   : > { %1575 = vmatprep.subr.bf16.mxu0 %v6612_v47 }
 0x295   : > { %3441 = vmatpush1.bf16.msra.mxu1 %v8092_v0  ;;  %v8127_v0 = vld [vmem:[#allocation13 + $0x70c] ss:$16 sps:$4 sm:$0xff]  }
 0x296   : > { %3442 = vmatprep.subr.bf16.mxu1 %v8097_v15 }
 0x299   : > { %3443 = vmatpush1.bf16.msra.mxu1 %v8095_v2  ;;  %v8125_v2 = vld [vmem:[#allocation13 + $0x708] ss:$16 sps:$4 sm:$0xff]  }
 0x29a   : > { %1576 = vmatpush1.bf16.xpose.msra.mxu0 %v6611_v48  ;;  %3444 = vmatprep.subr.bf16.mxu1 %v8100_v3  ;;  %v6651_v48 = vcombine.low %v763_v42, %v767_v43  ;;  %v8130_v3 = vld [vmem:[#allocation13 + $0x72c] ss:$16 sps:$4 sm:$0xff]  }
 0x29b   : > { %1577 = vmatprep.subr.bf16.mxu0 %v6620_v27  ;;  %v6660_v27 = vcombine.high %v771_v18, %v775_v46 }
 0x29d   : > { %3445 = vmatpush1.bf16.msra.mxu1 %v8098_v4  ;;  %v8128_v4 = vld [vmem:[#allocation13 + $0x728] ss:$16 sps:$4 sm:$0xff]  }
 0x29e   : > { %3457 = vmatprep.subr.bf16.mxu1 %v8103_v5  ;;  %v8133_v5 = vld [vmem:[#allocation13 + $0x74c] ss:$16 sps:$4 sm:$0xff]  }
 0x2a0   : > { %3447 = vmatmul.mubr.bf16.vlgmr.msra.gmra.mrb[4].mxu1 %v8778_v8  ;;  %v8110_v8 = vld [vmem:[#allocation13 + $0x668] ss:$16 sps:$4 sm:$0xff]  }
 0x2a1   : > { %3458 = vmatpush1.bf16.msra.mxu1 %v8101_v32  ;;  %3489 = vmatprep.mubr.bf16.mxu1 %v8780_v13  ;;  %v6635_v13 = vcombine.low %v747_v1, %v751_v53  ;;  %v8131_v32 = vld [vmem:[#allocation13 + $0x748] ss:$16 sps:$4 sm:$0xff]  }
 0x2a2   : > { %1578 = vmatpush1.bf16.xpose.msra.mxu0 %v6619_v9  ;;  %3459 = vmatprep.subr.bf16.mxu1 %v8106_v57  ;;  %v6659_v9 = vcombine.low %v771_v18, %v775_v46  ;;  %v8136_v57 = vld [vmem:[#allocation13 + $0x76c] ss:$16 sps:$4 sm:$0xff]  }
 0x2a3   : > { %1579 = vmatprep.subr.bf16.mxu0 %v6628_v60  ;;  %v6668_v60 = vcombine.high %v779_v6, %v783_v7  ;;  %v787_v1 = vld [vmem:[#allocation12 + $0x3d8] sm:$0xff] }
 0x2a4   : > { %v791_v53 = vld [vmem:[#allocation12 + $0x3f8] sm:$0xff] }
 0x2a5   : > { %3460 = vmatpush1.bf16.msra.mxu1 %v8104_v10  ;;  %v8134_v10 = vld [vmem:[#allocation13 + $0x768] ss:$16 sps:$4 sm:$0xff]  }
 0x2a6   : > { %3461 = vmatprep.subr.bf16.mxu1 %v8109_v11  ;;  %v8139_v11 = vld [vmem:[#allocation13 + $0x78c] ss:$16 sps:$4 sm:$0xff]  }
 0x2a9   : > { %3462 = vmatpush1.bf16.msra.mxu1 %v8107_v14  ;;  %v8142_v14 = vld [vmem:[#allocation13 + $0x7ac] ss:$16 sps:$4 sm:$0xff]  }
 0x2aa   : > { %1580 = vmatpush1.bf16.xpose.msra.mxu0 %v6627_v12  ;;  %3463 = vmatprep.subr.bf16.mxu1 %v8112_v16  ;;  %v8137_v12 = vld [vmem:[#allocation13 + $0x788] ss:$16 sps:$4 sm:$0xff]   ;;  %v6676_v16 = vcombine.high %v787_v1, %v791_v53 }
 0x2ab   : > { %1581 = vmatprep.subr.bf16.mxu0 %v6636_v17  ;;  %v8140_v17 = vld [vmem:[#allocation13 + $0x7a8] ss:$16 sps:$4 sm:$0xff]  }
 0x2ad   : > { %3464 = vmatpush1.bf16.msra.mxu1 %v8110_v8  ;;  %v8145_v8 = vld [vmem:[#allocation13 + $0x7cc] ss:$16 sps:$4 sm:$0xff]  }
 0x2ae   : > { %3465 = vmatprep.subr.bf16.mxu1 %v8115_v19  ;;  %v6675_v19 = vcombine.low %v787_v1, %v791_v53 }
 0x2b1   : > { %3466 = vmatpush1.bf16.msra.mxu1 %v8113_v25  ;;  %v3539_v25 = vsub.s32 2, %v8808_v59 }
 0x2b2   : > { %1582 = vmatpush1.bf16.xpose.msra.mxu0 %v6635_v13  ;;  %3467 = vmatprep.subr.bf16.mxu1 %v8118_v30  ;;  %v618_v13 = vpack.c.bf16 %v8786_v22, %v8784_v20  ;;  %v3543_v30 = vsub.s32 3, %v8808_v59 }
 0x2b3   : > { %1583 = vmatprep.subr.bf16.mxu0 %v6644_v31  ;;  %v3319_v41 = vpop.f32.mrb[0].mxu1  ;;  %v577_v31 = vld [vmem:[#allocation16 + $0x8] sm:$0xff] }
 0x2b4   : > { %v3549_v44 = vadd.f32 %v3532_v34, %v3319_v41  ;;  %v3321_v49 = vpop.f32.mrb[1].mxu1  ;;  %v581_v41 = vsub.f32 0.0, %v577_v31  ;;  %v3544_v42 = vrot.slane %v8814_v26, %v3543_v30 }
 0x2b5   : > { %v3550_v50 = vadd.f32 %v3536_v35, %v3321_v49  ;;  %v3323_v51 = vpop.f32.mrb[2].mxu1  ;;  %3468 = vmatpush1.bf16.msra.mxu1 %v8116_v36  ;;  %v3540_v36 = vrot.slane %v8814_v26, %v3539_v25 }
 0x2b6   : > { %v3553_v33 = vadd.f32 %v3532_v34, %v3323_v51  ;;  %v3325_v54 = vpop.f32.mrb[3].mxu1  ;;  %3469 = vmatprep.subr.bf16.mxu1 %v8121_v40  ;;  %v3557_v56 = vmax.f32 %v3549_v44, 0.0  ;;  %v578_v34 = vld [vmem:[#allocation16 + $0x10] sm:$0xff]  ;;  %v579_v40 = vld [vmem:[#allocation16 + $0x18] sm:$0xff] }
 0x2b7   : > { %v3554_v38 = vadd.f32 %v3536_v35, %v3325_v54  ;;  %v3558_v61 = vmax.f32 %v3550_v50, 0.0  ;;  %v580_v35 = vsub.f32 0.0, %v576_v28  ;;  %v582_v43 = vsub.f32 0.0, %v578_v34 }
 0x2b8   : > { %v3561_v58 = vmax.f32 %v3553_v33, 0.0  ;;  %v583_v44 = vsub.f32 0.0, %v579_v40 }
 0x2b9   : > { %v3562_v62 = vmax.f32 %v3554_v38, 0.0  ;;  %3470 = vmatpush1.bf16.msra.mxu1 %v8119_v29 }
 0x2ba   : > { %1584 = vmatpush1.bf16.xpose.msra.mxu0 %v6643_v52  ;;  %v3565_v47 = vpack.c.bf16 %v3561_v58, %v3557_v56  ;;  %3471 = vmatprep.subr.bf16.mxu1 %v8124_v55 }
 0x2bb   : > { %1585 = vmatprep.subr.bf16.mxu0 %v6652_v37  ;;  %v3566_v15 = vpack.c.bf16 %v3562_v62, %v3558_v61 }
 0x2bc   : > { %3569 = vst [vmem:[#allocation4] sm:$0xff] %v3565_v47 }
 0x2bd   : > { %3570 = vst [vmem:[#allocation4 + $0x8] sm:$0xff] %v3566_v15  ;;  %3472 = vmatpush1.bf16.msra.mxu1 %v8122_v63 }
 0x2be   : > { %3473 = vmatprep.subr.bf16.mxu1 %v8127_v0 }
 0x2c1   : > { %3474 = vmatpush1.bf16.msra.mxu1 %v8125_v2 }
 0x2c2   : > { %1586 = vmatpush1.bf16.xpose.msra.mxu0 %v6651_v48  ;;  %3475 = vmatprep.subr.bf16.mxu1 %v8130_v3 }
 0x2c3   : > { %1587 = vmatprep.subr.bf16.mxu0 %v6660_v27 }
 0x2c5   : > { %3476 = vmatpush1.bf16.msra.mxu1 %v8128_v4 }
 0x2c6   : > { %3477 = vmatprep.subr.bf16.mxu1 %v8133_v5 }
 0x2c9   : > { %3478 = vmatpush1.bf16.msra.mxu1 %v8131_v32 }
 0x2ca   : > { %1588 = vmatpush1.bf16.xpose.msra.mxu0 %v6659_v9  ;;  %3479 = vmatprep.subr.bf16.mxu1 %v8136_v57 }
 0x2cb   : > { %1589 = vmatprep.subr.bf16.mxu0 %v6668_v60 }
 0x2cd   : > { %3480 = vmatpush1.bf16.msra.mxu1 %v8134_v10 }
 0x2ce   : > { %3481 = vmatprep.subr.bf16.mxu1 %v8139_v11 }
 0x2d1   : > { %3482 = vmatpush1.bf16.msra.mxu1 %v8137_v12 }
 0x2d2   : > { %1590 = vmatpush1.bf16.xpose.msra.mxu0 %v6667_v45  ;;  %3483 = vmatprep.subr.bf16.mxu1 %v8142_v14 }
 0x2d3   : > { %1591 = vmatprep.subr.bf16.mxu0 %v6676_v16 }
 0x2d5   : > { %3484 = vmatpush1.bf16.msra.mxu1 %v8140_v17 }
 0x2d6   : > { %3485 = vmatprep.subr.bf16.mxu1 %v8145_v8 }
 0x2d9   : > { %3486 = vmatpush1.bf16.msra.mxu1 %v8143_v21 }
 0x2da   : > { %1592 = vmatpush1.bf16.xpose.msra.mxu0 %v6675_v19  ;;  %3487 = vmatprep.subr.bf16.mxu1 %v8148_v23 }
 0x2dd   : > { %3488 = vmatpush1.bf16.msra.mxu1 %v8146_v24 }
 0x2e0   : > { %3490 = vmatmul.mubr.bf16.vlgmr.msra.gmra.mrb[4].mxu1 %v8790_v39 }
 0x2e1   : > { %1594 = vmatmul.mubr.bf16.vlgmr.msra.gmra.mrb[0].mxu0 %v618_v13 }
 0x3b3   : > { %v3491_v22 = vpop.f32.mrb[4].mxu1 }
 0x3b4   : > { %v1595_v20 = vpop.f32.mrb[0].mxu0  ;;  %v3551_v39 = vadd.f32 %v3540_v36, %v3491_v22  ;;  %v3493_v51 = vpop.f32.mrb[5].mxu1 }
 0x3b5   : > { %v1604_v49 = vadd.f32 %v1595_v20, %v580_v35  ;;  %v1597_v50 = vpop.f32.mrb[1].mxu0  ;;  %v3552_v29 = vadd.f32 %v3544_v42, %v3493_v51  ;;  %v3495_v33 = vpop.f32.mrb[6].mxu1 }
 0x3b6   : > { %v1605_v52 = vadd.f32 %v1597_v50, %v581_v41  ;;  %v1599_v59 = vpop.f32.mrb[2].mxu0  ;;  %v3555_v55 = vadd.f32 %v3540_v36, %v3495_v33  ;;  %v3497_v38 = vpop.f32.mrb[7].mxu1  ;;  %v3559_v58 = vmax.f32 %v3551_v39, 0.0 }
 0x3b7   : > { %1608 = vst [vmem:[#allocation2] sm:$0xff] %v1604_v49  ;;  %v1606_v54 = vadd.f32 %v1599_v59, %v582_v43  ;;  %v1601_v37 = vpop.f32.mrb[3].mxu0  ;;  %v3556_v26 = vadd.f32 %v3544_v42, %v3497_v38  ;;  %v3560_v62 = vmax.f32 %v3552_v29, 0.0 }
 0x3b8   : > { %1609 = vst [vmem:[#allocation2 + $0x8] sm:$0xff] %v1605_v52  ;;  %v1607_v56 = vadd.f32 %v1601_v37, %v583_v44  ;;  %v3563_v61 = vmax.f32 %v3555_v55, 0.0 }
 0x3b9   : > { %1610 = vst [vmem:[#allocation2 + $0x10] sm:$0xff] %v1606_v54  ;;  %v3564_v63 = vmax.f32 %v3556_v26, 0.0 }
 0x3ba   : > { %1611 = vst [vmem:[#allocation2 + $0x18] sm:$0xff] %v1607_v56  ;;  %v3567_v47 = vpack.c.bf16 %v3563_v61, %v3559_v58 }
 0x3bb   : > { %v3568_v0 = vpack.c.bf16 %v3564_v63, %v3560_v62 }
 0x3bc   : > { %3571 = vst [vmem:[#allocation4 + $0x10] sm:$0xff] %v3567_v47 }
 0x3bd   : > { %3572 = vst [vmem:[#allocation4 + $0x18] sm:$0xff] %v3568_v0 }
 0x3be PF: > { %p6933_p6 = scmp.ne.s32.totalorder %s8398_s30, 1 }
 0x3bf   : > { %v3584_v15 = vld [vmem:[#allocation12] sm:$0xff] (!%p6933_p6)  ;;  %v3585_v46 = vld [vmem:[#allocation12 + $0x8] sm:$0xff] (!%p6933_p6)  ;;  %s3577_s30 = sld [smem:[#allocation5]] (!%p6933_p6)  ;;  %s6934_s27 = sld [smem:[#allocation5 + $0x1]] (!%p6933_p6) }
 0x3c0   : > { %3576 = sbr.rel (%p6933_p6) target bundleno = 1571 (0x623), region = 100  ;;  %v3588_v18 = vld [vmem:[#allocation12 + $0x20] sm:$0xff] (!%p6933_p6)  ;;  %v3589_v2 = vld [vmem:[#allocation12 + $0x28] sm:$0xff] (!%p6933_p6)  ;;  %s8911_s0 = sld [smem:[#allocation5 + $0x2]] (!%p6933_p6) }
 0x3c1   : > { %v7520_v48 = vcombine.high (!%p6933_p6), %v3584_v15, %v3588_v18  ;;  %v7521_v3 = vcombine.low (!%p6933_p6), %v3584_v15, %v3588_v18  ;;  %v3592_v27 = vld [vmem:[#allocation12 + $0x40] sm:$0xff] (!%p6933_p6)  ;;  %v7552_v5 = vcombine.high (!%p6933_p6), %v3585_v46, %v3589_v2  ;;  %v7553_v6 = vcombine.low (!%p6933_p6), %v3585_v46, %v3589_v2  ;;  %v3593_v9 = vld [vmem:[#allocation12 + $0x48] sm:$0xff] (!%p6933_p6)  ;;  %s9099_s3 = sld [smem:[#allocation30_spill]] (!%p6933_p6) }
 0x3c2   : > { %v3596_v4 = vld [vmem:[#allocation12 + $0x60] sm:$0xff] (!%p6933_p6)  ;;  %v3597_v32 = vld [vmem:[#allocation12 + $0x68] sm:$0xff] (!%p6933_p6) }
 0x3c3   : > { %v7522_v7 = vcombine.high (!%p6933_p6), %v3592_v27, %v3596_v4  ;;  %v3600_v57 = vld [vmem:[#allocation12 + $0x80] sm:$0xff] (!%p6933_p6)  ;;  %7197 = vmatprep.subr.bf16.mxu0 (!%p6933_p6), %v7520_v48  ;;  %v7554_v60 = vcombine.high (!%p6933_p6), %v3593_v9, %v3597_v32  ;;  %v3601_v11 = vld [vmem:[#allocation12 + $0x88] sm:$0xff] (!%p6933_p6)  ;;  %7261 = vmatprep.subr.bf16.mxu1 (!%p6933_p6), %v7552_v5  ;;  %v7523_v53 = vcombine.low (!%p6933_p6), %v3592_v27, %v3596_v4 }
 0x3c4   : > { %v3604_v10 = vld [vmem:[#allocation12 + $0xa0] sm:$0xff] (!%p6933_p6)  ;;  %v3605_v1 = vld [vmem:[#allocation12 + $0xa8] sm:$0xff] (!%p6933_p6)  ;;  %7199 = vmatpush1.bf16.msra.mxu0 (!%p6933_p6), %v7521_v3  ;;  %7263 = vmatpush1.bf16.msra.mxu1 (!%p6933_p6), %v7553_v6  ;;  %v7555_v45 = vcombine.low (!%p6933_p6), %v3593_v9, %v3597_v32 }
 0x3c5   : > { %7201 = vmatprep.subr.bf16.mxu0 (!%p6933_p6), %v7522_v7  ;;  %v7524_v12 = vcombine.high (!%p6933_p6), %v3600_v57, %v3604_v10  ;;  %7265 = vmatprep.subr.bf16.mxu1 (!%p6933_p6), %v7554_v60  ;;  %v7556_v14 = vcombine.high (!%p6933_p6), %v3601_v11, %v3605_v1  ;;  %v3608_v16 = vld [vmem:[#allocation12 + $0xc0] sm:$0xff] (!%p6933_p6)  ;;  %v3609_v8 = vld [vmem:[#allocation12 + $0xc8] sm:$0xff] (!%p6933_p6)  ;;  %v7525_v21 = vcombine.low (!%p6933_p6), %v3600_v57, %v3604_v10 }
 0x3c6   : > { %v3612_v17 = vld [vmem:[#allocation12 + $0xe0] sm:$0xff] (!%p6933_p6)  ;;  %v3613_v19 = vld [vmem:[#allocation12 + $0xe8] sm:$0xff] (!%p6933_p6)  ;;  %v7557_v23 = vcombine.low (!%p6933_p6), %v3601_v11, %v3605_v1 }
 0x3c7   : > { %v7526_v24 = vcombine.high %v3608_v16, %v3612_v17  ;;  %v7558_v13 = vcombine.high %v3609_v8, %v3613_v19  ;;  %v3616_v25 = vld [vmem:[#allocation12 + $0x100] sm:$0xff]  ;;  %v3617_v30 = vld [vmem:[#allocation12 + $0x108] sm:$0xff]  ;;  %v7527_v34 = vcombine.low %v3608_v16, %v3612_v17  ;;  %v7559_v35 = vcombine.low %v3609_v8, %v3613_v19 }
 0x3c8   : > { %7203 = vmatpush1.bf16.msra.mxu0 %v7523_v53  ;;  %7267 = vmatpush1.bf16.msra.mxu1 %v7555_v45  ;;  %v3620_v28 = vld [vmem:[#allocation12 + $0x120] sm:$0xff]  ;;  %v3621_v31 = vld [vmem:[#allocation12 + $0x128] sm:$0xff] }
 0x3c9   : > { %7205 = vmatprep.subr.bf16.mxu0 %v7524_v12  ;;  %7269 = vmatprep.subr.bf16.mxu1 %v7556_v14  ;;  %v7528_v36 = vcombine.high %v3616_v25, %v3620_v28  ;;  %v7560_v40 = vcombine.high %v3617_v30, %v3621_v31  ;;  %v3624_v41 = vld [vmem:[#allocation12 + $0x140] sm:$0xff]  ;;  %v3625_v43 = vld [vmem:[#allocation12 + $0x148] sm:$0xff]  ;;  %v7529_v22 = vcombine.low %v3616_v25, %v3620_v28 }
 0x3ca   : > { %v3628_v42 = vld [vmem:[#allocation12 + $0x160] sm:$0xff]  ;;  %v3629_v20 = vld [vmem:[#allocation12 + $0x168] sm:$0xff]  ;;  %v7561_v44 = vcombine.low %v3617_v30, %v3621_v31 }
 0x3cb   : > { %v7530_v49 = vcombine.high %v3624_v41, %v3628_v42  ;;  %v7562_v39 = vcombine.high %v3625_v43, %v3629_v20  ;;  %v3632_v50 = vld [vmem:[#allocation12 + $0x180] sm:$0xff]  ;;  %v3633_v52 = vld [vmem:[#allocation12 + $0x188] sm:$0xff]  ;;  %v7531_v59 = vcombine.low %v3624_v41, %v3628_v42  ;;  %v7563_v33 = vcombine.low %v3625_v43, %v3629_v20 }
 0x3cc   : > { %7207 = vmatpush1.bf16.msra.mxu0 %v7525_v21  ;;  %7271 = vmatpush1.bf16.msra.mxu1 %v7557_v23  ;;  %v3636_v51 = vld [vmem:[#allocation12 + $0x1a0] sm:$0xff]  ;;  %v3637_v29 = vld [vmem:[#allocation12 + $0x1a8] sm:$0xff] }
 0x3cd   : > { %7209 = vmatprep.subr.bf16.mxu0 %v7526_v24  ;;  %7273 = vmatprep.subr.bf16.mxu1 %v7558_v13  ;;  %v7532_v54 = vcombine.high %v3632_v50, %v3636_v51  ;;  %v8827_v55 = vld [vmem:[#allocation2 + $0x8] sm:$0xff]  ;;  %v7564_v37 = vcombine.high %v3633_v52, %v3637_v29  ;;  %v3640_v38 = vld [vmem:[#allocation12 + $0x1c0] sm:$0xff]  ;;  %v7533_v61 = vcombine.low %v3632_v50, %v3636_v51 }
 0x3ce   : > { %v3644_v56 = vld [vmem:[#allocation12 + $0x1e0] sm:$0xff]  ;;  %4032 = vmatprep.mubr.f32.mxu0 %v8827_v55  ;;  %v3641_v26 = vld [vmem:[#allocation12 + $0x1c8] sm:$0xff]  ;;  %4109 = vmatprep.mubr.f32.mxu1 %v8827_v55  ;;  %v7565_v62 = vcombine.low %v3633_v52, %v3637_v29 }
 0x3cf   : > { %v3645_v58 = vld [vmem:[#allocation12 + $0x1e8] sm:$0xff]  ;;  %v7534_v63 = vcombine.high %v3640_v38, %v3644_v56  ;;  %v3648_v0 = vld [vmem:[#allocation12 + $0x200] sm:$0xff]  ;;  %v7535_v48 = vcombine.low %v3640_v38, %v3644_v56 }
 0x3d0   : > { %7211 = vmatpush1.bf16.msra.mxu0 %v7527_v34  ;;  %7275 = vmatpush1.bf16.msra.mxu1 %v7559_v35  ;;  %v7566_v47 = vcombine.high %v3641_v26, %v3645_v58  ;;  %v3652_v15 = vld [vmem:[#allocation12 + $0x220] sm:$0xff]  ;;  %v3649_v18 = vld [vmem:[#allocation12 + $0x208] sm:$0xff]  ;;  %v7567_v2 = vcombine.low %v3641_v26, %v3645_v58 }
 0x3d1   : > { %7213 = vmatprep.subr.bf16.mxu0 %v7528_v36  ;;  %7277 = vmatprep.subr.bf16.mxu1 %v7560_v40  ;;  %v3653_v46 = vld [vmem:[#allocation12 + $0x228] sm:$0xff]  ;;  %v7536_v3 = vcombine.high %v3648_v0, %v3652_v15  ;;  %v3656_v4 = vld [vmem:[#allocation12 + $0x240] sm:$0xff]  ;;  %v7537_v9 = vcombine.low %v3648_v0, %v3652_v15  ;;  %v3586_v15 = vld [vmem:[#allocation12 + $0x10] sm:$0xff] }
 0x3d2   : > { %v7568_v27 = vcombine.high %v3649_v18, %v3653_v46  ;;  %v3660_v5 = vld [vmem:[#allocation12 + $0x260] sm:$0xff]  ;;  %v3657_v6 = vld [vmem:[#allocation12 + $0x248] sm:$0xff]  ;;  %v7569_v32 = vcombine.low %v3649_v18, %v3653_v46  ;;  %v3590_v18 = vld [vmem:[#allocation12 + $0x30] sm:$0xff] }
 0x3d3   : > { %v3661_v7 = vld [vmem:[#allocation12 + $0x268] sm:$0xff]  ;;  %v7538_v57 = vcombine.high %v3656_v4, %v3660_v5  ;;  %v3664_v10 = vld [vmem:[#allocation12 + $0x280] sm:$0xff]  ;;  %v7539_v45 = vcombine.low %v3656_v4, %v3660_v5  ;;  %v3587_v46 = vld [vmem:[#allocation12 + $0x18] sm:$0xff] }
 0x3d4   : > { %7215 = vmatpush1.bf16.msra.mxu0 %v7529_v22  ;;  %7279 = vmatpush1.bf16.msra.mxu1 %v7561_v44  ;;  %v7570_v60 = vcombine.high %v3657_v6, %v3661_v7  ;;  %v3668_v11 = vld [vmem:[#allocation12 + $0x2a0] sm:$0xff]  ;;  %v3665_v1 = vld [vmem:[#allocation12 + $0x288] sm:$0xff]  ;;  %v7571_v12 = vcombine.low %v3657_v6, %v3661_v7  ;;  %v3594_v5 = vld [vmem:[#allocation12 + $0x50] sm:$0xff] }
 0x3d5   : > { %7217 = vmatprep.subr.bf16.mxu0 %v7530_v49  ;;  %7281 = vmatprep.subr.bf16.mxu1 %v7562_v39  ;;  %v3669_v53 = vld [vmem:[#allocation12 + $0x2a8] sm:$0xff]  ;;  %v7540_v14 = vcombine.high %v3664_v10, %v3668_v11  ;;  %v3672_v17 = vld [vmem:[#allocation12 + $0x2c0] sm:$0xff]  ;;  %v7541_v23 = vcombine.low %v3664_v10, %v3668_v11  ;;  %v3598_v6 = vld [vmem:[#allocation12 + $0x70] sm:$0xff] }
 0x3d6   : > { %v7572_v16 = vcombine.high %v3665_v1, %v3669_v53  ;;  %v3676_v8 = vld [vmem:[#allocation12 + $0x2e0] sm:$0xff]  ;;  %v3673_v19 = vld [vmem:[#allocation12 + $0x2c8] sm:$0xff]  ;;  %v7573_v24 = vcombine.low %v3665_v1, %v3669_v53  ;;  %v3595_v7 = vld [vmem:[#allocation12 + $0x58] sm:$0xff]  ;;  %v7586_v10 = vcombine.high %v3594_v5, %v3598_v6 }
 0x3d7   : > { %v3677_v21 = vld [vmem:[#allocation12 + $0x2e8] sm:$0xff]  ;;  %v7542_v13 = vcombine.high %v3672_v17, %v3676_v8  ;;  %v3680_v28 = vld [vmem:[#allocation12 + $0x300] sm:$0xff]  ;;  %v7543_v35 = vcombine.low %v3672_v17, %v3676_v8  ;;  %v3602_v1 = vld [vmem:[#allocation12 + $0x90] sm:$0xff] }
 0x3d8   : > { %7219 = vmatpush1.bf16.msra.mxu0 %v7531_v59  ;;  %7283 = vmatpush1.bf16.msra.mxu1 %v7563_v33  ;;  %v7574_v25 = vcombine.high %v3673_v19, %v3677_v21  ;;  %v3684_v30 = vld [vmem:[#allocation12 + $0x320] sm:$0xff]  ;;  %v3681_v31 = vld [vmem:[#allocation12 + $0x308] sm:$0xff]  ;;  %v7575_v36 = vcombine.low %v3673_v19, %v3677_v21  ;;  %v3606_v53 = vld [vmem:[#allocation12 + $0xb0] sm:$0xff] }
 0x3d9   : > { %7221 = vmatprep.subr.bf16.mxu0 %v7532_v54  ;;  %7285 = vmatprep.subr.bf16.mxu1 %v7564_v37  ;;  %v3685_v34 = vld [vmem:[#allocation12 + $0x328] sm:$0xff]  ;;  %v7544_v40 = vcombine.high %v3680_v28, %v3684_v30  ;;  %v3688_v42 = vld [vmem:[#allocation12 + $0x340] sm:$0xff]  ;;  %v7545_v44 = vcombine.low %v3680_v28, %v3684_v30  ;;  %v8837_v17 = vld [vmem:[#allocation2 + $0x10] sm:$0xff]  ;;  %v7588_v19 = vcombine.high %v3602_v1, %v3606_v53 }
 0x3da   : > { %v7576_v41 = vcombine.high %v3681_v31, %v3685_v34  ;;  %v3692_v43 = vld [vmem:[#allocation12 + $0x360] sm:$0xff]  ;;  %v3689_v20 = vld [vmem:[#allocation12 + $0x348] sm:$0xff]  ;;  %v7577_v49 = vcombine.low %v3681_v31, %v3685_v34  ;;  %v7589_v28 = vcombine.low %v3602_v1, %v3606_v53 }
 0x3db   : > { %v3693_v22 = vld [vmem:[#allocation12 + $0x368] sm:$0xff]  ;;  %v7546_v39 = vcombine.high %v3688_v42, %v3692_v43  ;;  %v3696_v51 = vld [vmem:[#allocation12 + $0x380] sm:$0xff]  ;;  %v7547_v33 = vcombine.low %v3688_v42, %v3692_v43 }
 0x3dc   : > { %7223 = vmatpush1.bf16.msra.mxu0 %v7533_v61  ;;  %7287 = vmatpush1.bf16.msra.mxu1 %v7565_v62  ;;  %v7578_v50 = vcombine.high %v3689_v20, %v3693_v22  ;;  %v3700_v52 = vld [vmem:[#allocation12 + $0x3a0] sm:$0xff]  ;;  %v3697_v29 = vld [vmem:[#allocation12 + $0x388] sm:$0xff]  ;;  %v7579_v54 = vcombine.low %v3689_v20, %v3693_v22 }
 0x3dd   : > { %7225 = vmatprep.subr.bf16.mxu0 %v7534_v63  ;;  %7289 = vmatprep.subr.bf16.mxu1 %v7566_v47  ;;  %v3701_v59 = vld [vmem:[#allocation12 + $0x3a8] sm:$0xff]  ;;  %v7548_v37 = vcombine.high %v3696_v51, %v3700_v52  ;;  %v3704_v56 = vld [vmem:[#allocation12 + $0x3c0] sm:$0xff]  ;;  %v7549_v62 = vcombine.low %v3696_v51, %v3700_v52 }
 0x3de   : > { %v7580_v38 = vcombine.high %v3697_v29, %v3701_v59  ;;  %v3708_v26 = vld [vmem:[#allocation12 + $0x3e0] sm:$0xff]  ;;  %v3705_v58 = vld [vmem:[#allocation12 + $0x3c8] sm:$0xff]  ;;  %v7581_v63 = vcombine.low %v3697_v29, %v3701_v59  ;;  %v3634_v59 = vld [vmem:[#allocation12 + $0x190] sm:$0xff] }
 0x3df   : > { %v3709_v61 = vld [vmem:[#allocation12 + $0x3e8] sm:$0xff]  ;;  %v7550_v47 = vcombine.high %v3704_v56, %v3708_v26 }
 0x3e0   : > { %7227 = vmatpush1.bf16.msra.mxu0 %v7535_v48  ;;  %7291 = vmatpush1.bf16.msra.mxu1 %v7567_v2  ;;  %v7582_v0 = vcombine.high %v3705_v58, %v3709_v61  ;;  %v3591_v48 = vld [vmem:[#allocation12 + $0x38] sm:$0xff]  ;;  %v7551_v2 = vcombine.low %v3704_v56, %v3708_v26 }
 0x3e1   : > { %7229 = vmatprep.subr.bf16.mxu0 %v7536_v3  ;;  %7293 = vmatprep.subr.bf16.mxu1 %v7568_v27  ;;  %v7583_v3 = vcombine.low %v3705_v58, %v3709_v61  ;;  %v7584_v27 = vcombine.high %v3586_v15, %v3590_v18  ;;  %v7616_v4 = vcombine.high %v3587_v46, %v3591_v48  ;;  %v3642_v61 = vld [vmem:[#allocation12 + $0x1d0] sm:$0xff] }
 0x3e4   : > { %7231 = vmatpush1.bf16.msra.mxu0 %v7537_v9  ;;  %7295 = vmatpush1.bf16.msra.mxu1 %v7569_v32  ;;  %v3599_v9 = vld [vmem:[#allocation12 + $0x78] sm:$0xff]  ;;  %v8831_v32 = vld [vmem:[#allocation2] sm:$0xff] }
 0x3e5   : > { %7233 = vmatprep.subr.bf16.mxu0 %v7538_v57  ;;  %7297 = vmatprep.subr.bf16.mxu1 %v7570_v60  ;;  %v7585_v57 = vcombine.low %v3586_v15, %v3590_v18  ;;  %v7617_v60 = vcombine.low %v3587_v46, %v3591_v48  ;;  %v7618_v11 = vcombine.high %v3595_v7, %v3599_v9  ;;  %v3650_v48 = vld [vmem:[#allocation12 + $0x210] sm:$0xff] }
 0x3e6   : > { %v7619_v8 = vcombine.low %v3595_v7, %v3599_v9  ;;  %v3658_v9 = vld [vmem:[#allocation12 + $0x250] sm:$0xff] }
 0x3e8   : > { %7235 = vmatpush1.bf16.msra.mxu0 %v7539_v45  ;;  %7299 = vmatpush1.bf16.msra.mxu1 %v7571_v12  ;;  %v3603_v45 = vld [vmem:[#allocation12 + $0x98] sm:$0xff] }
 0x3e9   : > { %7237 = vmatprep.subr.bf16.mxu0 %v7540_v14  ;;  %7301 = vmatprep.subr.bf16.mxu1 %v7572_v16  ;;  %v3607_v12 = vld [vmem:[#allocation12 + $0xb8] sm:$0xff]  ;;  %v7587_v16 = vcombine.low %v3594_v5, %v3598_v6 }
 0x3ea   : > { %v8834_v14 = vld [vmem:[#allocation2 + $0x18] sm:$0xff]  ;;  %v7620_v21 = vcombine.high %v3603_v45, %v3607_v12  ;;  %v7621_v30 = vcombine.low %v3603_v45, %v3607_v12  ;;  %v3666_v12 = vld [vmem:[#allocation12 + $0x290] sm:$0xff] }
 0x3ec   : > { %7239 = vmatpush1.bf16.msra.mxu0 %v7541_v23  ;;  %7303 = vmatpush1.bf16.msra.mxu1 %v7573_v24  ;;  %v3610_v23 = vld [vmem:[#allocation12 + $0xd0] sm:$0xff] }
 0x3ed   : > { %7241 = vmatprep.subr.bf16.mxu0 %v7542_v13  ;;  %7305 = vmatprep.subr.bf16.mxu1 %v7574_v25  ;;  %v3614_v24 = vld [vmem:[#allocation12 + $0xf0] sm:$0xff]  ;;  %v3611_v13 = vld [vmem:[#allocation12 + $0xd8] sm:$0xff] }
 0x3ee   : > { %v3615_v25 = vld [vmem:[#allocation12 + $0xf8] sm:$0xff]  ;;  %v7590_v31 = vcombine.high %v3610_v23, %v3614_v24  ;;  %v7591_v42 = vcombine.low %v3610_v23, %v3614_v24 }
 0x3ef   : > { %v7622_v34 = vcombine.high %v3611_v13, %v3615_v25  ;;  %v7623_v43 = vcombine.low %v3611_v13, %v3615_v25  ;;  %v3674_v25 = vld [vmem:[#allocation12 + $0x2d0] sm:$0xff] }
 0x3f0   : > { %7243 = vmatpush1.bf16.msra.mxu0 %v7543_v35  ;;  %7307 = vmatpush1.bf16.msra.mxu1 %v7575_v36  ;;  %v3618_v35 = vld [vmem:[#allocation12 + $0x110] sm:$0xff] }
 0x3f1   : > { %7245 = vmatprep.subr.bf16.mxu0 %v7544_v40  ;;  %7309 = vmatprep.subr.bf16.mxu1 %v7576_v41  ;;  %v3622_v36 = vld [vmem:[#allocation12 + $0x130] sm:$0xff]  ;;  %v3619_v40 = vld [vmem:[#allocation12 + $0x118] sm:$0xff] }
 0x3f2   : > { %v3623_v41 = vld [vmem:[#allocation12 + $0x138] sm:$0xff]  ;;  %v7592_v20 = vcombine.high %v3618_v35, %v3622_v36  ;;  %v7593_v51 = vcombine.low %v3618_v35, %v3622_v36 }
 0x3f3   : > { %v7624_v22 = vcombine.high %v3619_v40, %v3623_v41  ;;  %v7625_v52 = vcombine.low %v3619_v40, %v3623_v41  ;;  %v3682_v41 = vld [vmem:[#allocation12 + $0x310] sm:$0xff] }
 0x3f4   : > { %7247 = vmatpush1.bf16.msra.mxu0 %v7545_v44  ;;  %7311 = vmatpush1.bf16.msra.mxu1 %v7577_v49  ;;  %v3626_v44 = vld [vmem:[#allocation12 + $0x150] sm:$0xff] }
 0x3f5   : > { %7249 = vmatprep.subr.bf16.mxu0 %v7546_v39  ;;  %7313 = vmatprep.subr.bf16.mxu1 %v7578_v50  ;;  %v3630_v49 = vld [vmem:[#allocation12 + $0x170] sm:$0xff]  ;;  %v3627_v39 = vld [vmem:[#allocation12 + $0x158] sm:$0xff] }
 0x3f6   : > { %v3631_v50 = vld [vmem:[#allocation12 + $0x178] sm:$0xff]  ;;  %v7594_v29 = vcombine.high %v3626_v44, %v3630_v49 }
 0x3f7   : > { %v7627_v56 = vcombine.low %v3627_v39, %v3631_v50 }
 0x3f8   : > { %7251 = vmatpush1.bf16.msra.mxu0 %v7547_v33  ;;  %7315 = vmatpush1.bf16.msra.mxu1 %v7579_v54  ;;  %v3638_v33 = vld [vmem:[#allocation12 + $0x1b0] sm:$0xff]  ;;  %v3635_v54 = vld [vmem:[#allocation12 + $0x198] sm:$0xff] }
 0x3f9   : > { %7253 = vmatprep.subr.bf16.mxu0 %v7548_v37  ;;  %7317 = vmatprep.subr.bf16.mxu1 %v7580_v38  ;;  %v3639_v37 = vld [vmem:[#allocation12 + $0x1b8] sm:$0xff]  ;;  %v7595_v38 = vcombine.low %v3626_v44, %v3630_v49  ;;  %v7596_v26 = vcombine.high %v3634_v59, %v3638_v33 }
 0x3fa   : > { %v7628_v58 = vcombine.high %v3635_v54, %v3639_v37  ;;  %v7629_v15 = vcombine.low %v3635_v54, %v3639_v37  ;;  %v3698_v37 = vld [vmem:[#allocation12 + $0x390] sm:$0xff] }
 0x3fc   : > { %7255 = vmatpush1.bf16.msra.mxu0 %v7549_v62  ;;  %7319 = vmatpush1.bf16.msra.mxu1 %v7581_v63  ;;  %v3646_v62 = vld [vmem:[#allocation12 + $0x1f0] sm:$0xff]  ;;  %v3643_v63 = vld [vmem:[#allocation12 + $0x1d8] sm:$0xff] }
 0x3fd   : > { %7257 = vmatprep.subr.bf16.mxu0 %v7550_v47  ;;  %7321 = vmatprep.subr.bf16.mxu1 %v7582_v0  ;;  %v3647_v47 = vld [vmem:[#allocation12 + $0x1f8] sm:$0xff]  ;;  %v7597_v0 = vcombine.low %v3634_v59, %v3638_v33  ;;  %v7598_v18 = vcombine.high %v3642_v61, %v3646_v62 }
 0x3fe   : > { %v7630_v46 = vcombine.high %v3643_v63, %v3647_v47  ;;  %v7631_v5 = vcombine.low %v3643_v63, %v3647_v47  ;;  %v3706_v47 = vld [vmem:[#allocation12 + $0x3d0] sm:$0xff] }
 0x400   : > { %7259 = vmatpush1.bf16.msra.mxu0 %v7551_v2  ;;  %7323 = vmatpush1.bf16.msra.mxu1 %v7583_v3  ;;  %v3654_v2 = vld [vmem:[#allocation12 + $0x230] sm:$0xff]  ;;  %v3651_v3 = vld [vmem:[#allocation12 + $0x218] sm:$0xff] }
 0x401   : > { %7325 = vmatprep.subr.bf16.mxu0 %v7584_v27  ;;  %7389 = vmatprep.subr.bf16.mxu1 %v7616_v4  ;;  %v3655_v27 = vld [vmem:[#allocation12 + $0x238] sm:$0xff]  ;;  %v7599_v4 = vcombine.low %v3642_v61, %v3646_v62  ;;  %v7600_v6 = vcombine.high %v3650_v48, %v3654_v2 }
 0x402   : > { %v7632_v7 = vcombine.high %v3651_v3, %v3655_v27  ;;  %v7633_v1 = vcombine.low %v3651_v3, %v3655_v27  ;;  %v4280_v27 = vld [vmem:[#allocation15] sm:$0xff] }
 0x403   : > { %4033 = vmatmul.mubr.f32.vlgmr.msra.gmra.mrb[0].mxu0 %v8831_v32  ;;  %4110 = vmatmul.mubr.f32.vlgmr.msra.gmra.mrb[0].mxu1 %v8831_v32 }
 0x404   : > { %7327 = vmatpush1.bf16.msra.mxu0 %v7585_v57  ;;  %7391 = vmatpush1.bf16.msra.mxu1 %v7617_v60  ;;  %v3662_v57 = vld [vmem:[#allocation12 + $0x270] sm:$0xff]  ;;  %v3659_v60 = vld [vmem:[#allocation12 + $0x258] sm:$0xff] }
 0x405   : > { %7329 = vmatprep.subr.bf16.mxu0 %v7586_v10  ;;  %7393 = vmatprep.subr.bf16.mxu1 %v7618_v11  ;;  %v3663_v10 = vld [vmem:[#allocation12 + $0x278] sm:$0xff]  ;;  %v7601_v11 = vcombine.low %v3650_v48, %v3654_v2  ;;  %v7602_v53 = vcombine.high %v3658_v9, %v3662_v57 }
 0x406   : > { %4038 = vmatprep.mubr.f32.mxu0 %v8834_v14  ;;  %4115 = vmatprep.mubr.f32.mxu1 %v8834_v14  ;;  %v7634_v45 = vcombine.high %v3659_v60, %v3663_v10  ;;  %v7635_v23 = vcombine.low %v3659_v60, %v3663_v10  ;;  %v4288_v10 = vld [vmem:[#allocation15 + $0x40] sm:$0xff] }
 0x407   : > { %4039 = vmatmul.mubr.f32.gmra.mrb[2].mxu0 %v8837_v17  ;;  %4116 = vmatmul.mubr.f32.gmra.mrb[2].mxu1 %v8837_v17 }
 0x408   : > { %7331 = vmatpush1.bf16.msra.mxu0 %v7587_v16  ;;  %7395 = vmatpush1.bf16.msra.mxu1 %v7619_v8  ;;  %v3670_v16 = vld [vmem:[#allocation12 + $0x2b0] sm:$0xff]  ;;  %v3667_v8 = vld [vmem:[#allocation12 + $0x298] sm:$0xff] }
 0x409   : > { %7333 = vmatprep.subr.bf16.mxu0 %v7588_v19  ;;  %7397 = vmatprep.subr.bf16.mxu1 %v7620_v21  ;;  %v3671_v19 = vld [vmem:[#allocation12 + $0x2b8] sm:$0xff]  ;;  %v7603_v21 = vcombine.low %v3658_v9, %v3662_v57  ;;  %v7604_v24 = vcombine.high %v3666_v12, %v3670_v16 }
 0x40a   : > { %4186 = vmatprep.mubr.f32.mxu0 %v8827_v55  ;;  %4263 = vmatprep.mubr.f32.mxu1 %v8827_v55  ;;  %v7626_v55 = vcombine.high %v3627_v39, %v3631_v50  ;;  %v7636_v13 = vcombine.high %v3667_v8, %v3671_v19  ;;  %v7637_v35 = vcombine.low %v3667_v8, %v3671_v19  ;;  %v3690_v50 = vld [vmem:[#allocation12 + $0x350] sm:$0xff]  ;;  %v4296_v19 = vld [vmem:[#allocation15 + $0x80] sm:$0xff] }
 0x40c   : > { %7335 = vmatpush1.bf16.msra.mxu0 %v7589_v28  ;;  %7399 = vmatpush1.bf16.msra.mxu1 %v7621_v30  ;;  %v3678_v28 = vld [vmem:[#allocation12 + $0x2f0] sm:$0xff]  ;;  %v3675_v30 = vld [vmem:[#allocation12 + $0x2d8] sm:$0xff] }
 0x40d   : > { %7337 = vmatprep.subr.bf16.mxu0 %v7590_v31  ;;  %7401 = vmatprep.subr.bf16.mxu1 %v7622_v34  ;;  %v3679_v31 = vld [vmem:[#allocation12 + $0x2f8] sm:$0xff]  ;;  %v7605_v34 = vcombine.low %v3666_v12, %v3670_v16  ;;  %v7606_v36 = vcombine.high %v3674_v25, %v3678_v28 }
 0x40e   : > { %v7638_v40 = vcombine.high %v3675_v30, %v3679_v31  ;;  %v7639_v44 = vcombine.low %v3675_v30, %v3679_v31  ;;  %v4304_v31 = vld [vmem:[#allocation15 + $0xc0] sm:$0xff] }
 0x410   : > { %7339 = vmatpush1.bf16.msra.mxu0 %v7591_v42  ;;  %7403 = vmatpush1.bf16.msra.mxu1 %v7623_v43  ;;  %v3686_v42 = vld [vmem:[#allocation12 + $0x330] sm:$0xff]  ;;  %v3683_v43 = vld [vmem:[#allocation12 + $0x318] sm:$0xff] }
 0x411   : > { %7341 = vmatprep.subr.bf16.mxu0 %v7592_v20  ;;  %7405 = vmatprep.subr.bf16.mxu1 %v7624_v22  ;;  %v3687_v20 = vld [vmem:[#allocation12 + $0x338] sm:$0xff]  ;;  %v7607_v22 = vcombine.low %v3674_v25, %v3678_v28  ;;  %v7608_v49 = vcombine.high %v3682_v41, %v3686_v42 }
 0x412   : > { %v7640_v39 = vcombine.high %v3683_v43, %v3687_v20  ;;  %v7641_v59 = vcombine.low %v3683_v43, %v3687_v20  ;;  %v4312_v20 = vld [vmem:[#allocation15 + $0x100] sm:$0xff] }
 0x414   : > { %7343 = vmatpush1.bf16.msra.mxu0 %v7593_v51  ;;  %7407 = vmatpush1.bf16.msra.mxu1 %v7625_v52  ;;  %v3694_v51 = vld [vmem:[#allocation12 + $0x370] sm:$0xff]  ;;  %v3691_v52 = vld [vmem:[#allocation12 + $0x358] sm:$0xff] }
 0x415   : > { %7345 = vmatprep.subr.bf16.mxu0 %v7594_v29  ;;  %7409 = vmatprep.subr.bf16.mxu1 %v7626_v55  ;;  %v3695_v29 = vld [vmem:[#allocation12 + $0x378] sm:$0xff]  ;;  %v7609_v55 = vcombine.low %v3682_v41, %v3686_v42  ;;  %v7610_v33 = vcombine.high %v3690_v50, %v3694_v51 }
 0x416   : > { %v7642_v54 = vcombine.high %v3691_v52, %v3695_v29  ;;  %v7643_v61 = vcombine.low %v3691_v52, %v3695_v29  ;;  %v4324_v52 = vld [vmem:[#allocation15 + $0x160] sm:$0xff]  ;;  %v4321_v29 = vld [vmem:[#allocation15 + $0x148] sm:$0xff] }
 0x418   : > { %7347 = vmatpush1.bf16.msra.mxu0 %v7595_v38  ;;  %7411 = vmatpush1.bf16.msra.mxu1 %v7627_v56  ;;  %v3702_v38 = vld [vmem:[#allocation12 + $0x3b0] sm:$0xff]  ;;  %v3699_v56 = vld [vmem:[#allocation12 + $0x398] sm:$0xff] }
 0x419   : > { %7349 = vmatprep.subr.bf16.mxu0 %v7596_v26  ;;  %7413 = vmatprep.subr.bf16.mxu1 %v7628_v58  ;;  %v3703_v26 = vld [vmem:[#allocation12 + $0x3b8] sm:$0xff]  ;;  %v7611_v58 = vcombine.low %v3690_v50, %v3694_v51  ;;  %v7612_v62 = vcombine.high %v3698_v37, %v3702_v38  ;;  %v4320_v51 = vld [vmem:[#allocation15 + $0x140] sm:$0xff] }
 0x41a   : > { %v7644_v63 = vcombine.high %v3699_v56, %v3703_v26  ;;  %v7645_v48 = vcombine.low %v3699_v56, %v3703_v26  ;;  %v4332_v56 = vld [vmem:[#allocation15 + $0x1a0] sm:$0xff]  ;;  %v4329_v26 = vld [vmem:[#allocation15 + $0x188] sm:$0xff] }
 0x41c   : > { %7351 = vmatpush1.bf16.msra.mxu0 %v7597_v0  ;;  %7415 = vmatpush1.bf16.msra.mxu1 %v7629_v15  ;;  %v3710_v0 = vld [vmem:[#allocation12 + $0x3f0] sm:$0xff]  ;;  %v3707_v15 = vld [vmem:[#allocation12 + $0x3d8] sm:$0xff] }
 0x41d   : > { %7353 = vmatprep.subr.bf16.mxu0 %v7598_v18  ;;  %7417 = vmatprep.subr.bf16.mxu1 %v7630_v46  ;;  %v3711_v18 = vld [vmem:[#allocation12 + $0x3f8] sm:$0xff]  ;;  %v7613_v46 = vcombine.low %v3698_v37, %v3702_v38  ;;  %v7614_v2 = vcombine.high %v3706_v47, %v3710_v0  ;;  %v4328_v38 = vld [vmem:[#allocation15 + $0x180] sm:$0xff] }
 0x41e   : > { %v7646_v3 = vcombine.high %v3707_v15, %v3711_v18  ;;  %v7647_v9 = vcombine.low %v3707_v15, %v3711_v18  ;;  %v4340_v15 = vld [vmem:[#allocation15 + $0x1e0] sm:$0xff]  ;;  %v4337_v18 = vld [vmem:[#allocation15 + $0x1c8] sm:$0xff] }
 0x420   : > { %7355 = vmatpush1.bf16.msra.mxu0 %v7599_v4  ;;  %7419 = vmatpush1.bf16.msra.mxu1 %v7631_v5  ;;  %v4284_v4 = vld [vmem:[#allocation15 + $0x20] sm:$0xff]  ;;  %v4281_v5 = vld [vmem:[#allocation15 + $0x8] sm:$0xff] }
 0x421   : > { %7357 = vmatprep.subr.bf16.mxu0 %v7600_v6  ;;  %7421 = vmatprep.subr.bf16.mxu1 %v7632_v7  ;;  %v4285_v6 = vld [vmem:[#allocation15 + $0x28] sm:$0xff]  ;;  %v7615_v7 = vcombine.low %v3706_v47, %v3710_v0  ;;  %v6937_v57 = vcombine.high %v4280_v27, %v4284_v4  ;;  %v4336_v0 = vld [vmem:[#allocation15 + $0x1c0] sm:$0xff] }
 0x422   : > { %v6939_v60 = vcombine.high %v4281_v5, %v4285_v6  ;;  %v6938_v12 = vcombine.low %v4281_v5, %v4285_v6  ;;  %v4348_v5 = vld [vmem:[#allocation15 + $0x220] sm:$0xff]  ;;  %v4345_v6 = vld [vmem:[#allocation15 + $0x208] sm:$0xff] }
 0x424   : > { %7359 = vmatpush1.bf16.msra.mxu0 %v7601_v11  ;;  %7423 = vmatpush1.bf16.msra.mxu1 %v7633_v1  ;;  %v4292_v11 = vld [vmem:[#allocation15 + $0x60] sm:$0xff]  ;;  %v4289_v1 = vld [vmem:[#allocation15 + $0x48] sm:$0xff] }
 0x425   : > { %7361 = vmatprep.subr.bf16.mxu0 %v7602_v53  ;;  %7425 = vmatprep.subr.bf16.mxu1 %v7634_v45  ;;  %v4293_v53 = vld [vmem:[#allocation15 + $0x68] sm:$0xff]  ;;  %v6936_v45 = vcombine.low %v4280_v27, %v4284_v4  ;;  %v6945_v16 = vcombine.high %v4288_v10, %v4292_v11  ;;  %v4344_v4 = vld [vmem:[#allocation15 + $0x200] sm:$0xff] }
 0x426   : > { %v6947_v8 = vcombine.high %v4289_v1, %v4293_v53  ;;  %v6946_v25 = vcombine.low %v4289_v1, %v4293_v53  ;;  %v4356_v1 = vld [vmem:[#allocation15 + $0x260] sm:$0xff]  ;;  %v4353_v53 = vld [vmem:[#allocation15 + $0x248] sm:$0xff] }
 0x428   : > { %7363 = vmatpush1.bf16.msra.mxu0 %v7603_v21  ;;  %7427 = vmatpush1.bf16.msra.mxu1 %v7635_v23  ;;  %v4300_v21 = vld [vmem:[#allocation15 + $0xa0] sm:$0xff]  ;;  %v4297_v23 = vld [vmem:[#allocation15 + $0x88] sm:$0xff] }
 0x429   : > { %7365 = vmatprep.subr.bf16.mxu0 %v7604_v24  ;;  %7429 = vmatprep.subr.bf16.mxu1 %v7636_v13  ;;  %v4301_v24 = vld [vmem:[#allocation15 + $0xa8] sm:$0xff]  ;;  %v6944_v13 = vcombine.low %v4288_v10, %v4292_v11  ;;  %v6953_v28 = vcombine.high %v4296_v19, %v4300_v21  ;;  %v4352_v11 = vld [vmem:[#allocation15 + $0x240] sm:$0xff] }
 0x42a   : > { %v6955_v30 = vcombine.high %v4297_v23, %v4301_v24  ;;  %v6954_v41 = vcombine.low %v4297_v23, %v4301_v24  ;;  %v4364_v23 = vld [vmem:[#allocation15 + $0x2a0] sm:$0xff]  ;;  %v4361_v24 = vld [vmem:[#allocation15 + $0x288] sm:$0xff] }
 0x42c   : > { %7367 = vmatpush1.bf16.msra.mxu0 %v7605_v34  ;;  %7431 = vmatpush1.bf16.msra.mxu1 %v7637_v35  ;;  %v4308_v34 = vld [vmem:[#allocation15 + $0xe0] sm:$0xff]  ;;  %v4305_v35 = vld [vmem:[#allocation15 + $0xc8] sm:$0xff] }
 0x42d   : > { %7369 = vmatprep.subr.bf16.mxu0 %v7606_v36  ;;  %7433 = vmatprep.subr.bf16.mxu1 %v7638_v40  ;;  %v4309_v36 = vld [vmem:[#allocation15 + $0xe8] sm:$0xff]  ;;  %v6961_v42 = vcombine.high %v4304_v31, %v4308_v34 }
 0x42e   : > { %v8850_v40 = vld [vmem:[#allocation4 + $0x8] sm:$0xff]  ;;  %v6963_v43 = vcombine.high %v4305_v35, %v4309_v36 }
 0x430   : > { %7371 = vmatpush1.bf16.msra.mxu0 %v7607_v22  ;;  %7435 = vmatpush1.bf16.msra.mxu1 %v7639_v44  ;;  %v4316_v22 = vld [vmem:[#allocation15 + $0x120] sm:$0xff]  ;;  %v4313_v44 = vld [vmem:[#allocation15 + $0x108] sm:$0xff] }
 0x431   : > { %7373 = vmatprep.subr.bf16.mxu0 %v7608_v49  ;;  %7437 = vmatprep.subr.bf16.mxu1 %v7640_v39  ;;  %v6960_v49 = vcombine.low %v4304_v31, %v4308_v34  ;;  %v6962_v39 = vcombine.low %v4305_v35, %v4309_v36  ;;  %v4368_v34 = vld [vmem:[#allocation15 + $0x2c0] sm:$0xff]  ;;  %v4369_v36 = vld [vmem:[#allocation15 + $0x2c8] sm:$0xff] }
 0x432   : > { %v4372_v35 = vld [vmem:[#allocation15 + $0x2e0] sm:$0xff] }
 0x434   : > { %7375 = vmatpush1.bf16.msra.mxu0 %v7609_v55  ;;  %7439 = vmatpush1.bf16.msra.mxu1 %v7641_v59  ;;  %v4325_v55 = vld [vmem:[#allocation15 + $0x168] sm:$0xff]  ;;  %v6968_v59 = vcombine.low %v4312_v20, %v4316_v22 }
 0x435   : > { %7377 = vmatprep.subr.bf16.mxu0 %v7610_v33  ;;  %7441 = vmatprep.subr.bf16.mxu1 %v7642_v54  ;;  %v6977_v54 = vcombine.high %v4320_v51, %v4324_v52  ;;  %v6979_v37 = vcombine.high %v4321_v29, %v4325_v55 }
 0x438   : > { %7379 = vmatpush1.bf16.msra.mxu0 %v7611_v58  ;;  %7443 = vmatpush1.bf16.msra.mxu1 %v7643_v61  ;;  %v4333_v58 = vld [vmem:[#allocation15 + $0x1a8] sm:$0xff]  ;;  %v6976_v61 = vcombine.low %v4320_v51, %v4324_v52  ;;  %v4384_v52 = vld [vmem:[#allocation15 + $0x340] sm:$0xff] }
 0x439   : > { %7381 = vmatprep.subr.bf16.mxu0 %v7612_v62  ;;  %7445 = vmatprep.subr.bf16.mxu1 %v7644_v63  ;;  %v6978_v62 = vcombine.low %v4321_v29, %v4325_v55  ;;  %v6985_v63 = vcombine.high %v4328_v38, %v4332_v56  ;;  %v6987_v47 = vcombine.high %v4329_v26, %v4333_v58  ;;  %v4388_v29 = vld [vmem:[#allocation15 + $0x360] sm:$0xff]  ;;  %v4385_v55 = vld [vmem:[#allocation15 + $0x348] sm:$0xff] }
 0x43c   : > { %7383 = vmatpush1.bf16.msra.mxu0 %v7613_v46  ;;  %7447 = vmatpush1.bf16.msra.mxu1 %v7645_v48  ;;  %v4341_v46 = vld [vmem:[#allocation15 + $0x1e8] sm:$0xff]  ;;  %v6984_v48 = vcombine.low %v4328_v38, %v4332_v56  ;;  %v4392_v56 = vld [vmem:[#allocation15 + $0x380] sm:$0xff] }
 0x43d   : > { %7385 = vmatprep.subr.bf16.mxu0 %v7614_v2  ;;  %7449 = vmatprep.subr.bf16.mxu1 %v7646_v3  ;;  %v6986_v2 = vcombine.low %v4329_v26, %v4333_v58  ;;  %v6993_v3 = vcombine.high %v4336_v0, %v4340_v15  ;;  %v6995_v27 = vcombine.high %v4337_v18, %v4341_v46  ;;  %v4396_v26 = vld [vmem:[#allocation15 + $0x3a0] sm:$0xff]  ;;  %v4393_v58 = vld [vmem:[#allocation15 + $0x388] sm:$0xff] }
 0x440   : > { %7387 = vmatpush1.bf16.msra.mxu0 %v7615_v7  ;;  %7451 = vmatpush1.bf16.msra.mxu1 %v7647_v9  ;;  %v4349_v7 = vld [vmem:[#allocation15 + $0x228] sm:$0xff]  ;;  %v6992_v9 = vcombine.low %v4336_v0, %v4340_v15  ;;  %v4400_v15 = vld [vmem:[#allocation15 + $0x3c0] sm:$0xff] }
 0x441   : > { %5858 = vmatprep.subr.bf16.mxu0 %v6937_v57  ;;  %5944 = vmatprep.subr.bf16.mxu1 %v6939_v60  ;;  %v6994_v57 = vcombine.low %v4337_v18, %v4341_v46  ;;  %v7001_v60 = vcombine.high %v4344_v4, %v4348_v5  ;;  %v7003_v10 = vcombine.high %v4345_v6, %v4349_v7  ;;  %v4404_v18 = vld [vmem:[#allocation15 + $0x3e0] sm:$0xff]  ;;  %v4401_v46 = vld [vmem:[#allocation15 + $0x3c8] sm:$0xff] }
 0x443   : > { %4187 = vmatmul.mubr.f32.vlgmr.msra.gmra.mrb[4].mxu0 %v8831_v32  ;;  %4264 = vmatmul.mubr.f32.vlgmr.msra.gmra.mrb[4].mxu1 %v8831_v32  ;;  %v6952_v32 = vcombine.low %v4296_v19, %v4300_v21  ;;  %v4360_v21 = vld [vmem:[#allocation15 + $0x280] sm:$0xff] }
 0x444   : > { %5859 = vmatpush1.bf16.msra.mxu0 %v6936_v45  ;;  %5945 = vmatpush1.bf16.msra.mxu1 %v6938_v12  ;;  %v4357_v45 = vld [vmem:[#allocation15 + $0x268] sm:$0xff]  ;;  %v7000_v12 = vcombine.low %v4344_v4, %v4348_v5  ;;  %v4408_v5 = vld [vmem:[#allocation15 + $0x400] sm:$0xff] }
 0x445   : > { %5860 = vmatprep.subr.bf16.mxu0 %v6945_v16  ;;  %5946 = vmatprep.subr.bf16.mxu1 %v6947_v8  ;;  %v7002_v16 = vcombine.low %v4345_v6, %v4349_v7  ;;  %v7009_v8 = vcombine.high %v4352_v11, %v4356_v1  ;;  %v7011_v19 = vcombine.high %v4353_v53, %v4357_v45  ;;  %v4412_v6 = vld [vmem:[#allocation15 + $0x420] sm:$0xff]  ;;  %v4409_v7 = vld [vmem:[#allocation15 + $0x408] sm:$0xff] }
 0x446   : > { %4192 = vmatprep.mubr.f32.mxu0 %v8834_v14  ;;  %4269 = vmatprep.mubr.f32.mxu1 %v8834_v14  ;;  %v4317_v14 = vld [vmem:[#allocation15 + $0x128] sm:$0xff] }
 0x447   : > { %4193 = vmatmul.mubr.f32.gmra.mrb[6].mxu0 %v8837_v17  ;;  %4270 = vmatmul.mubr.f32.gmra.mrb[6].mxu1 %v8837_v17  ;;  %v6969_v17 = vcombine.high %v4312_v20, %v4316_v22  ;;  %v6971_v50 = vcombine.high %v4313_v44, %v4317_v14  ;;  %v6970_v33 = vcombine.low %v4313_v44, %v4317_v14  ;;  %v4376_v22 = vld [vmem:[#allocation15 + $0x300] sm:$0xff]  ;;  %v4377_v14 = vld [vmem:[#allocation15 + $0x308] sm:$0xff] }
 0x448   : > { %5861 = vmatpush1.bf16.msra.mxu0 %v6944_v13  ;;  %5947 = vmatpush1.bf16.msra.mxu1 %v6946_v25  ;;  %v4365_v13 = vld [vmem:[#allocation15 + $0x2a8] sm:$0xff]  ;;  %v7008_v25 = vcombine.low %v4352_v11, %v4356_v1  ;;  %v4380_v44 = vld [vmem:[#allocation15 + $0x320] sm:$0xff] }
 0x449   : > { %5862 = vmatprep.subr.bf16.mxu0 %v6953_v28  ;;  %5948 = vmatprep.subr.bf16.mxu1 %v6955_v30  ;;  %v7010_v28 = vcombine.low %v4353_v53, %v4357_v45  ;;  %v7017_v30 = vcombine.high %v4360_v21, %v4364_v23  ;;  %v7019_v31 = vcombine.high %v4361_v24, %v4365_v13  ;;  %v4416_v1 = vld [vmem:[#allocation15 + $0x440] sm:$0xff]  ;;  %v4417_v45 = vld [vmem:[#allocation15 + $0x448] sm:$0xff] }
 0x44a   : > { %5890 = vmatprep.mubr.bf16.mxu0 %v8850_v40  ;;  %5976 = vmatprep.mubr.bf16.mxu1 %v8850_v40  ;;  %v4420_v53 = vld [vmem:[#allocation15 + $0x460] sm:$0xff] }
 0x44c   : > { %5863 = vmatpush1.bf16.msra.mxu0 %v6952_v32  ;;  %5949 = vmatpush1.bf16.msra.mxu1 %v6954_v41  ;;  %v4373_v32 = vld [vmem:[#allocation15 + $0x2e8] sm:$0xff]  ;;  %v7016_v41 = vcombine.low %v4360_v21, %v4364_v23  ;;  %v7073_v21 = vcombine.high %v4416_v1, %v4420_v53 }
 0x44d   : > { %5864 = vmatprep.subr.bf16.mxu0 %v6961_v42  ;;  %5950 = vmatprep.subr.bf16.mxu1 %v6963_v43  ;;  %v7018_v42 = vcombine.low %v4361_v24, %v4365_v13  ;;  %v7025_v43 = vcombine.high %v4368_v34, %v4372_v35  ;;  %v7027_v20 = vcombine.high %v4369_v36, %v4373_v32  ;;  %v4424_v24 = vld [vmem:[#allocation15 + $0x480] sm:$0xff] }
 0x44e   : > { %v4428_v13 = vld [vmem:[#allocation15 + $0x4a0] sm:$0xff] }
 0x450   : > { %5865 = vmatpush1.bf16.msra.mxu0 %v6960_v49  ;;  %5951 = vmatpush1.bf16.msra.mxu1 %v6962_v39  ;;  %v4381_v49 = vld [vmem:[#allocation15 + $0x328] sm:$0xff]  ;;  %v7024_v39 = vcombine.low %v4368_v34, %v4372_v35  ;;  %v7081_v35 = vcombine.high %v4424_v24, %v4428_v13 }
 0x451   : > { %5866 = vmatprep.subr.bf16.mxu0 %v6969_v17  ;;  %5952 = vmatprep.subr.bf16.mxu1 %v6971_v50  ;;  %v7026_v17 = vcombine.low %v4369_v36, %v4373_v32  ;;  %v7033_v50 = vcombine.high %v4376_v22, %v4380_v44  ;;  %v7035_v51 = vcombine.high %v4377_v14, %v4381_v49  ;;  %v4432_v32 = vld [vmem:[#allocation15 + $0x4c0] sm:$0xff] }
 0x454   : > { %5867 = vmatpush1.bf16.msra.mxu0 %v6968_v59  ;;  %5953 = vmatpush1.bf16.msra.mxu1 %v6970_v33  ;;  %v4389_v59 = vld [vmem:[#allocation15 + $0x368] sm:$0xff]  ;;  %v7032_v33 = vcombine.low %v4376_v22, %v4380_v44 }
 0x455   : > { %5868 = vmatprep.subr.bf16.mxu0 %v6977_v54  ;;  %5954 = vmatprep.subr.bf16.mxu1 %v6979_v37  ;;  %v7034_v54 = vcombine.low %v4377_v14, %v4381_v49  ;;  %v7041_v37 = vcombine.high %v4384_v52, %v4388_v29  ;;  %v7043_v38 = vcombine.high %v4385_v55, %v4389_v59  ;;  %v4440_v49 = vld [vmem:[#allocation15 + $0x500] sm:$0xff] }
 0x458   : > { %5869 = vmatpush1.bf16.msra.mxu0 %v6976_v61  ;;  %5955 = vmatpush1.bf16.msra.mxu1 %v6978_v62  ;;  %v4397_v61 = vld [vmem:[#allocation15 + $0x3a8] sm:$0xff]  ;;  %v7040_v62 = vcombine.low %v4384_v52, %v4388_v29 }
 0x459   : > { %5870 = vmatprep.subr.bf16.mxu0 %v6985_v63  ;;  %5956 = vmatprep.subr.bf16.mxu1 %v6987_v47  ;;  %v7042_v63 = vcombine.low %v4385_v55, %v4389_v59  ;;  %v7049_v47 = vcombine.high %v4392_v56, %v4396_v26  ;;  %v7051_v0 = vcombine.high %v4393_v58, %v4397_v61  ;;  %v4448_v59 = vld [vmem:[#allocation15 + $0x540] sm:$0xff] }
 0x45c   : > { %5871 = vmatpush1.bf16.msra.mxu0 %v6984_v48  ;;  %5957 = vmatpush1.bf16.msra.mxu1 %v6986_v2  ;;  %v4405_v48 = vld [vmem:[#allocation15 + $0x3e8] sm:$0xff]  ;;  %v7048_v2 = vcombine.low %v4392_v56, %v4396_v26 }
 0x45d   : > { %5872 = vmatprep.subr.bf16.mxu0 %v6993_v3  ;;  %5958 = vmatprep.subr.bf16.mxu1 %v6995_v27  ;;  %v7050_v3 = vcombine.low %v4393_v58, %v4397_v61  ;;  %v7057_v27 = vcombine.high %v4400_v15, %v4404_v18  ;;  %v7059_v4 = vcombine.high %v4401_v46, %v4405_v48  ;;  %v4456_v61 = vld [vmem:[#allocation15 + $0x580] sm:$0xff] }
 0x460   : > { %5873 = vmatpush1.bf16.msra.mxu0 %v6992_v9  ;;  %5959 = vmatpush1.bf16.msra.mxu1 %v6994_v57  ;;  %v4413_v9 = vld [vmem:[#allocation15 + $0x428] sm:$0xff]  ;;  %v7056_v57 = vcombine.low %v4400_v15, %v4404_v18 }
 0x461   : > { %5874 = vmatprep.subr.bf16.mxu0 %v7001_v60  ;;  %5960 = vmatprep.subr.bf16.mxu1 %v7003_v10  ;;  %v7058_v60 = vcombine.low %v4401_v46, %v4405_v48  ;;  %v7065_v10 = vcombine.high %v4408_v5, %v4412_v6  ;;  %v7067_v11 = vcombine.high %v4409_v7, %v4413_v9  ;;  %v4464_v48 = vld [vmem:[#allocation15 + $0x5c0] sm:$0xff] }
 0x464   : > { %5875 = vmatpush1.bf16.msra.mxu0 %v7000_v12  ;;  %5961 = vmatpush1.bf16.msra.mxu1 %v7002_v16  ;;  %v4421_v12 = vld [vmem:[#allocation15 + $0x468] sm:$0xff]  ;;  %v7064_v16 = vcombine.low %v4408_v5, %v4412_v6 }
 0x465   : > { %5876 = vmatprep.subr.bf16.mxu0 %v7009_v8  ;;  %5962 = vmatprep.subr.bf16.mxu1 %v7011_v19  ;;  %v8855_v8 = vld [vmem:[#allocation4] sm:$0xff]  ;;  %v7066_v19 = vcombine.low %v4409_v7, %v4413_v9  ;;  %v7075_v23 = vcombine.high %v4417_v45, %v4421_v12  ;;  %v7074_v34 = vcombine.low %v4417_v45, %v4421_v12 }
 0x466   : > { %v4472_v9 = vld [vmem:[#allocation15 + $0x600] sm:$0xff] }
 0x467   : > { %v4480_v12 = vld [vmem:[#allocation15 + $0x640] sm:$0xff] }
 0x468   : > { %5877 = vmatpush1.bf16.msra.mxu0 %v7008_v25  ;;  %5963 = vmatpush1.bf16.msra.mxu1 %v7010_v28  ;;  %v4425_v25 = vld [vmem:[#allocation15 + $0x488] sm:$0xff] }
 0x469   : > { %5878 = vmatprep.subr.bf16.mxu0 %v7017_v30  ;;  %5964 = vmatprep.subr.bf16.mxu1 %v7019_v31  ;;  %v4429_v28 = vld [vmem:[#allocation15 + $0x4a8] sm:$0xff]  ;;  %v8858_v30 = vld [vmem:[#allocation4 + $0x18] sm:$0xff]  ;;  %v7072_v31 = vcombine.low %v4416_v1, %v4420_v53 }
 0x46a   : > { %v7083_v36 = vcombine.high %v4425_v25, %v4429_v28  ;;  %v7082_v22 = vcombine.low %v4425_v25, %v4429_v28  ;;  %v4488_v28 = vld [vmem:[#allocation15 + $0x680] sm:$0xff] }
 0x46c   : > { %5879 = vmatpush1.bf16.msra.mxu0 %v7016_v41  ;;  %5965 = vmatpush1.bf16.msra.mxu1 %v7018_v42  ;;  %v4436_v41 = vld [vmem:[#allocation15 + $0x4e0] sm:$0xff]  ;;  %v4433_v42 = vld [vmem:[#allocation15 + $0x4c8] sm:$0xff] }
 0x46d   : > { %5880 = vmatprep.subr.bf16.mxu0 %v7025_v43  ;;  %5966 = vmatprep.subr.bf16.mxu1 %v7027_v20  ;;  %v4437_v43 = vld [vmem:[#allocation15 + $0x4e8] sm:$0xff]  ;;  %v7080_v20 = vcombine.low %v4424_v24, %v4428_v13  ;;  %v7089_v44 = vcombine.high %v4432_v32, %v4436_v41 }
 0x46e   : > { %v7091_v14 = vcombine.high %v4433_v42, %v4437_v43  ;;  %v7090_v52 = vcombine.low %v4433_v42, %v4437_v43  ;;  %v4496_v43 = vld [vmem:[#allocation15 + $0x6c0] sm:$0xff] }
 0x470   : > { %5881 = vmatpush1.bf16.msra.mxu0 %v7024_v39  ;;  %5967 = vmatpush1.bf16.msra.mxu1 %v7026_v17  ;;  %v4444_v39 = vld [vmem:[#allocation15 + $0x520] sm:$0xff]  ;;  %v4441_v17 = vld [vmem:[#allocation15 + $0x508] sm:$0xff] }
 0x471   : > { %5882 = vmatprep.subr.bf16.mxu0 %v7033_v50  ;;  %5968 = vmatprep.subr.bf16.mxu1 %v7035_v51  ;;  %v4445_v50 = vld [vmem:[#allocation15 + $0x528] sm:$0xff]  ;;  %v7088_v51 = vcombine.low %v4432_v32, %v4436_v41  ;;  %v7097_v29 = vcombine.high %v4440_v49, %v4444_v39 }
 0x472   : > { %v7099_v55 = vcombine.high %v4441_v17, %v4445_v50  ;;  %v7098_v56 = vcombine.low %v4441_v17, %v4445_v50  ;;  %v4504_v50 = vld [vmem:[#allocation15 + $0x700] sm:$0xff] }
 0x474   : > { %5883 = vmatpush1.bf16.msra.mxu0 %v7032_v33  ;;  %5969 = vmatpush1.bf16.msra.mxu1 %v7034_v54  ;;  %v4452_v33 = vld [vmem:[#allocation15 + $0x560] sm:$0xff]  ;;  %v4449_v54 = vld [vmem:[#allocation15 + $0x548] sm:$0xff] }
 0x475   : > { %5884 = vmatprep.subr.bf16.mxu0 %v7041_v37  ;;  %5970 = vmatprep.subr.bf16.mxu1 %v7043_v38  ;;  %v4453_v37 = vld [vmem:[#allocation15 + $0x568] sm:$0xff]  ;;  %v7096_v38 = vcombine.low %v4440_v49, %v4444_v39  ;;  %v7105_v26 = vcombine.high %v4448_v59, %v4452_v33 }
 0x476   : > { %v7107_v58 = vcombine.high %v4449_v54, %v4453_v37  ;;  %v7106_v15 = vcombine.low %v4449_v54, %v4453_v37  ;;  %v4512_v37 = vld [vmem:[#allocation15 + $0x740] sm:$0xff] }
 0x478   : > { %5885 = vmatpush1.bf16.msra.mxu0 %v7040_v62  ;;  %5971 = vmatpush1.bf16.msra.mxu1 %v7042_v63  ;;  %v4460_v62 = vld [vmem:[#allocation15 + $0x5a0] sm:$0xff]  ;;  %v4457_v63 = vld [vmem:[#allocation15 + $0x588] sm:$0xff] }
 0x479   : > { %5886 = vmatprep.subr.bf16.mxu0 %v7049_v47  ;;  %5972 = vmatprep.subr.bf16.mxu1 %v7051_v0  ;;  %v4461_v47 = vld [vmem:[#allocation15 + $0x5a8] sm:$0xff]  ;;  %v7104_v0 = vcombine.low %v4448_v59, %v4452_v33  ;;  %v7113_v18 = vcombine.high %v4456_v61, %v4460_v62 }
 0x47a   : > { %v7115_v46 = vcombine.high %v4457_v63, %v4461_v47  ;;  %v7114_v5 = vcombine.low %v4457_v63, %v4461_v47  ;;  %v4520_v47 = vld [vmem:[#allocation15 + $0x780] sm:$0xff] }
 0x47c   : > { %5887 = vmatpush1.bf16.msra.mxu0 %v7048_v2  ;;  %5973 = vmatpush1.bf16.msra.mxu1 %v7050_v3  ;;  %v4468_v2 = vld [vmem:[#allocation15 + $0x5e0] sm:$0xff]  ;;  %v4465_v3 = vld [vmem:[#allocation15 + $0x5c8] sm:$0xff] }
 0x47d   : > { %5888 = vmatprep.subr.bf16.mxu0 %v7057_v27  ;;  %5974 = vmatprep.subr.bf16.mxu1 %v7059_v4  ;;  %v4469_v27 = vld [vmem:[#allocation15 + $0x5e8] sm:$0xff]  ;;  %v7112_v4 = vcombine.low %v4456_v61, %v4460_v62  ;;  %v7121_v6 = vcombine.high %v4464_v48, %v4468_v2 }
 0x47e   : > { %v7123_v7 = vcombine.high %v4465_v3, %v4469_v27  ;;  %v7122_v1 = vcombine.low %v4465_v3, %v4469_v27  ;;  %v4528_v27 = vld [vmem:[#allocation15 + $0x7c0] sm:$0xff] }
 0x480   : > { %5889 = vmatpush1.bf16.msra.mxu0 %v7056_v57  ;;  %5975 = vmatpush1.bf16.msra.mxu1 %v7058_v60  ;;  %v4476_v57 = vld [vmem:[#allocation15 + $0x620] sm:$0xff]  ;;  %v4473_v60 = vld [vmem:[#allocation15 + $0x608] sm:$0xff] }
 0x481   : > { %5901 = vmatprep.subr.bf16.mxu0 %v7065_v10  ;;  %5987 = vmatprep.subr.bf16.mxu1 %v7067_v11  ;;  %v4477_v10 = vld [vmem:[#allocation15 + $0x628] sm:$0xff]  ;;  %v7120_v11 = vcombine.low %v4464_v48, %v4468_v2  ;;  %v7129_v53 = vcombine.high %v4472_v9, %v4476_v57 }
 0x482   : > { %v7131_v45 = vcombine.high %v4473_v60, %v4477_v10  ;;  %v7130_v24 = vcombine.low %v4473_v60, %v4477_v10  ;;  %v4282_v10 = vld [vmem:[#allocation15 + $0x10] sm:$0xff] }
 0x483   : > { %5891 = vmatmul.mubr.bf16.vlgmr.msra.gmra.mrb[8].mxu0 %v8855_v8  ;;  %5977 = vmatmul.mubr.bf16.vlgmr.msra.gmra.mrb[8].mxu1 %v8855_v8 }
 0x484   : > { %5902 = vmatpush1.bf16.msra.mxu0 %v7064_v16  ;;  %5988 = vmatpush1.bf16.msra.mxu1 %v7066_v19  ;;  %v4484_v16 = vld [vmem:[#allocation15 + $0x660] sm:$0xff]  ;;  %v4481_v19 = vld [vmem:[#allocation15 + $0x648] sm:$0xff] }
 0x485   : > { %5903 = vmatprep.subr.bf16.mxu0 %v7073_v21  ;;  %5989 = vmatprep.subr.bf16.mxu1 %v7075_v23  ;;  %v4485_v21 = vld [vmem:[#allocation15 + $0x668] sm:$0xff]  ;;  %v7128_v23 = vcombine.low %v4472_v9, %v4476_v57  ;;  %v7137_v13 = vcombine.high %v4480_v12, %v4484_v16 }
 0x486   : > { %5933 = vmatprep.mubr.bf16.mxu0 %v8858_v30  ;;  %6019 = vmatprep.mubr.bf16.mxu1 %v8858_v30  ;;  %v7139_v25 = vcombine.high %v4481_v19, %v4485_v21  ;;  %v7138_v32 = vcombine.low %v4481_v19, %v4485_v21  ;;  %v4290_v21 = vld [vmem:[#allocation15 + $0x50] sm:$0xff] }
 0x488   : > { %5904 = vmatpush1.bf16.msra.mxu0 %v7072_v31  ;;  %5990 = vmatpush1.bf16.msra.mxu1 %v7074_v34  ;;  %v4492_v31 = vld [vmem:[#allocation15 + $0x6a0] sm:$0xff]  ;;  %v4489_v34 = vld [vmem:[#allocation15 + $0x688] sm:$0xff] }
 0x489   : > { %5905 = vmatprep.subr.bf16.mxu0 %v7081_v35  ;;  %5991 = vmatprep.subr.bf16.mxu1 %v7083_v36  ;;  %v4493_v35 = vld [vmem:[#allocation15 + $0x6a8] sm:$0xff]  ;;  %v7136_v36 = vcombine.low %v4480_v12, %v4484_v16  ;;  %v7145_v41 = vcombine.high %v4488_v28, %v4492_v31 }
 0x48a   : > { %v7147_v42 = vcombine.high %v4489_v34, %v4493_v35  ;;  %v7146_v49 = vcombine.low %v4489_v34, %v4493_v35 }
 0x48c   : > { %5906 = vmatpush1.bf16.msra.mxu0 %v7080_v20  ;;  %5992 = vmatpush1.bf16.msra.mxu1 %v7082_v22  ;;  %v4500_v20 = vld [vmem:[#allocation15 + $0x6e0] sm:$0xff]  ;;  %v4497_v22 = vld [vmem:[#allocation15 + $0x6c8] sm:$0xff] }
 0x48d   : > { %5907 = vmatprep.subr.bf16.mxu0 %v7089_v44  ;;  %5993 = vmatprep.subr.bf16.mxu1 %v7091_v14  ;;  %v4501_v44 = vld [vmem:[#allocation15 + $0x6e8] sm:$0xff]  ;;  %v7144_v14 = vcombine.low %v4488_v28, %v4492_v31  ;;  %v7153_v39 = vcombine.high %v4496_v43, %v4500_v20 }
 0x48e   : > { %v7155_v17 = vcombine.high %v4497_v22, %v4501_v44  ;;  %v7154_v59 = vcombine.low %v4497_v22, %v4501_v44 }
 0x490   : > { %5908 = vmatpush1.bf16.msra.mxu0 %v7088_v51  ;;  %5994 = vmatpush1.bf16.msra.mxu1 %v7090_v52  ;;  %v4508_v51 = vld [vmem:[#allocation15 + $0x720] sm:$0xff]  ;;  %v4505_v52 = vld [vmem:[#allocation15 + $0x708] sm:$0xff] }
 0x491   : > { %5909 = vmatprep.subr.bf16.mxu0 %v7097_v29  ;;  %5995 = vmatprep.subr.bf16.mxu1 %v7099_v55  ;;  %v4509_v29 = vld [vmem:[#allocation15 + $0x728] sm:$0xff]  ;;  %v7152_v55 = vcombine.low %v4496_v43, %v4500_v20  ;;  %v7161_v33 = vcombine.high %v4504_v50, %v4508_v51 }
 0x492   : > { %v7163_v54 = vcombine.high %v4505_v52, %v4509_v29  ;;  %v7162_v61 = vcombine.low %v4505_v52, %v4509_v29 }
 0x494   : > { %5910 = vmatpush1.bf16.msra.mxu0 %v7096_v38  ;;  %5996 = vmatpush1.bf16.msra.mxu1 %v7098_v56  ;;  %v4516_v38 = vld [vmem:[#allocation15 + $0x760] sm:$0xff]  ;;  %v4513_v56 = vld [vmem:[#allocation15 + $0x748] sm:$0xff] }
 0x495   : > { %5911 = vmatprep.subr.bf16.mxu0 %v7105_v26  ;;  %5997 = vmatprep.subr.bf16.mxu1 %v7107_v58  ;;  %v4517_v26 = vld [vmem:[#allocation15 + $0x768] sm:$0xff]  ;;  %v7160_v58 = vcombine.low %v4504_v50, %v4508_v51  ;;  %v7169_v62 = vcombine.high %v4512_v37, %v4516_v38 }
 0x496   : > { %v7171_v63 = vcombine.high %v4513_v56, %v4517_v26  ;;  %v7170_v48 = vcombine.low %v4513_v56, %v4517_v26  ;;  %v4322_v26 = vld [vmem:[#allocation15 + $0x150] sm:$0xff] }
 0x498   : > { %5912 = vmatpush1.bf16.msra.mxu0 %v7104_v0  ;;  %5998 = vmatpush1.bf16.msra.mxu1 %v7106_v15  ;;  %v4524_v0 = vld [vmem:[#allocation15 + $0x7a0] sm:$0xff]  ;;  %v4521_v15 = vld [vmem:[#allocation15 + $0x788] sm:$0xff] }
 0x499   : > { %5913 = vmatprep.subr.bf16.mxu0 %v7113_v18  ;;  %5999 = vmatprep.subr.bf16.mxu1 %v7115_v46  ;;  %v4525_v18 = vld [vmem:[#allocation15 + $0x7a8] sm:$0xff]  ;;  %v7168_v46 = vcombine.low %v4512_v37, %v4516_v38  ;;  %v7177_v2 = vcombine.high %v4520_v47, %v4524_v0 }
 0x49a   : > { %v7179_v3 = vcombine.high %v4521_v15, %v4525_v18  ;;  %v7178_v9 = vcombine.low %v4521_v15, %v4525_v18  ;;  %v4330_v18 = vld [vmem:[#allocation15 + $0x190] sm:$0xff] }
 0x49c   : > { %5914 = vmatpush1.bf16.msra.mxu0 %v7112_v4  ;;  %6000 = vmatpush1.bf16.msra.mxu1 %v7114_v5  ;;  %v4532_v4 = vld [vmem:[#allocation15 + $0x7e0] sm:$0xff]  ;;  %v4529_v5 = vld [vmem:[#allocation15 + $0x7c8] sm:$0xff] }
 0x49d   : > { %5915 = vmatprep.subr.bf16.mxu0 %v7121_v6  ;;  %6001 = vmatprep.subr.bf16.mxu1 %v7123_v7  ;;  %v4533_v6 = vld [vmem:[#allocation15 + $0x7e8] sm:$0xff]  ;;  %v7176_v7 = vcombine.low %v4520_v47, %v4524_v0  ;;  %v7185_v57 = vcombine.high %v4528_v27, %v4532_v4 }
 0x49e   : > { %v7187_v60 = vcombine.high %v4529_v5, %v4533_v6  ;;  %v7186_v12 = vcombine.low %v4529_v5, %v4533_v6 }
 0x4a0   : > { %5916 = vmatpush1.bf16.msra.mxu0 %v7120_v11  ;;  %6002 = vmatpush1.bf16.msra.mxu1 %v7122_v1  ;;  %v4286_v11 = vld [vmem:[#allocation15 + $0x30] sm:$0xff]  ;;  %v4283_v1 = vld [vmem:[#allocation15 + $0x18] sm:$0xff] }
 0x4a1   : > { %5917 = vmatprep.subr.bf16.mxu0 %v7129_v53  ;;  %6003 = vmatprep.subr.bf16.mxu1 %v7131_v45  ;;  %v4287_v53 = vld [vmem:[#allocation15 + $0x38] sm:$0xff]  ;;  %v7184_v45 = vcombine.low %v4528_v27, %v4532_v4  ;;  %v6941_v16 = vcombine.high %v4282_v10, %v4286_v11  ;;  %v6940_v28 = vcombine.low %v4282_v10, %v4286_v11 }
 0x4a2   : > { %v6943_v19 = vcombine.high %v4283_v1, %v4287_v53  ;;  %v6942_v31 = vcombine.low %v4283_v1, %v4287_v53  ;;  %v4339_v10 = vld [vmem:[#allocation15 + $0x1d8] sm:$0xff] }
 0x4a3   : > { %v4343_v11 = vld [vmem:[#allocation15 + $0x1f8] sm:$0xff] }
 0x4a4   : > { %5918 = vmatpush1.bf16.msra.mxu0 %v7128_v23  ;;  %6004 = vmatpush1.bf16.msra.mxu1 %v7130_v24  ;;  %v4294_v23 = vld [vmem:[#allocation15 + $0x70] sm:$0xff]  ;;  %v4291_v24 = vld [vmem:[#allocation15 + $0x58] sm:$0xff] }
 0x4a5   : > { %5919 = vmatprep.subr.bf16.mxu0 %v7137_v13  ;;  %6005 = vmatprep.subr.bf16.mxu1 %v7139_v25  ;;  %v4295_v13 = vld [vmem:[#allocation15 + $0x78] sm:$0xff]  ;;  %v8863_v25 = vld [vmem:[#allocation4 + $0x10] sm:$0xff]  ;;  %v6949_v34 = vcombine.high %v4290_v21, %v4294_v23  ;;  %v6948_v43 = vcombine.low %v4290_v21, %v4294_v23 }
 0x4a6   : > { %v6951_v35 = vcombine.high %v4291_v24, %v4295_v13  ;;  %v6950_v20 = vcombine.low %v4291_v24, %v4295_v13  ;;  %v4350_v21 = vld [vmem:[#allocation15 + $0x230] sm:$0xff]  ;;  %v4347_v24 = vld [vmem:[#allocation15 + $0x218] sm:$0xff] }
 0x4a7   : > { %v4351_v13 = vld [vmem:[#allocation15 + $0x238] sm:$0xff] }
 0x4a8   : > { %5920 = vmatpush1.bf16.msra.mxu0 %v7136_v36  ;;  %6006 = vmatpush1.bf16.msra.mxu1 %v7138_v32  ;;  %v4298_v36 = vld [vmem:[#allocation15 + $0x90] sm:$0xff] }
 0x4a9   : > { %5921 = vmatprep.subr.bf16.mxu0 %v7145_v41  ;;  %6007 = vmatprep.subr.bf16.mxu1 %v7147_v42  ;;  %v4302_v32 = vld [vmem:[#allocation15 + $0xb0] sm:$0xff]  ;;  %v4299_v41 = vld [vmem:[#allocation15 + $0x98] sm:$0xff] }
 0x4aa   : > { %v4303_v42 = vld [vmem:[#allocation15 + $0xb8] sm:$0xff]  ;;  %v6957_v22 = vcombine.high %v4298_v36, %v4302_v32  ;;  %v6956_v50 = vcombine.low %v4298_v36, %v4302_v32  ;;  %v6998_v36 = vcombine.low %v4339_v10, %v4343_v11 }
 0x4ab   : > { %v6959_v44 = vcombine.high %v4299_v41, %v4303_v42  ;;  %v6958_v51 = vcombine.low %v4299_v41, %v4303_v42  ;;  %v7007_v41 = vcombine.high %v4347_v24, %v4351_v13  ;;  %v4354_v42 = vld [vmem:[#allocation15 + $0x250] sm:$0xff] }
 0x4ac   : > { %5922 = vmatpush1.bf16.msra.mxu0 %v7144_v14  ;;  %6008 = vmatpush1.bf16.msra.mxu1 %v7146_v49  ;;  %v4306_v14 = vld [vmem:[#allocation15 + $0xd0] sm:$0xff] }
 0x4ad   : > { %5923 = vmatprep.subr.bf16.mxu0 %v7153_v39  ;;  %6009 = vmatprep.subr.bf16.mxu1 %v7155_v17  ;;  %v4310_v49 = vld [vmem:[#allocation15 + $0xf0] sm:$0xff]  ;;  %v4307_v39 = vld [vmem:[#allocation15 + $0xd8] sm:$0xff] }
 0x4ae   : > { %v4311_v17 = vld [vmem:[#allocation15 + $0xf8] sm:$0xff]  ;;  %v6965_v52 = vcombine.high %v4306_v14, %v4310_v49  ;;  %v6964_v37 = vcombine.low %v4306_v14, %v4310_v49  ;;  %v7006_v14 = vcombine.low %v4347_v24, %v4351_v13  ;;  %v4402_v13 = vld [vmem:[#allocation15 + $0x3d0] sm:$0xff] }
 0x4af   : > { %v6967_v29 = vcombine.high %v4307_v39, %v4311_v17  ;;  %v6966_v38 = vcombine.low %v4307_v39, %v4311_v17  ;;  %v4362_v17 = vld [vmem:[#allocation15 + $0x290] sm:$0xff] }
 0x4b0   : > { %5924 = vmatpush1.bf16.msra.mxu0 %v7152_v55  ;;  %6010 = vmatpush1.bf16.msra.mxu1 %v7154_v59  ;;  %v4314_v55 = vld [vmem:[#allocation15 + $0x110] sm:$0xff] }
 0x4b1   : > { %5925 = vmatprep.subr.bf16.mxu0 %v7161_v33  ;;  %6011 = vmatprep.subr.bf16.mxu1 %v7163_v54  ;;  %v4318_v59 = vld [vmem:[#allocation15 + $0x130] sm:$0xff]  ;;  %v4315_v33 = vld [vmem:[#allocation15 + $0x118] sm:$0xff] }
 0x4b2   : > { %v4319_v54 = vld [vmem:[#allocation15 + $0x138] sm:$0xff]  ;;  %v6973_v56 = vcombine.high %v4314_v55, %v4318_v59 }
 0x4b3   : > { %v6974_v47 = vcombine.low %v4315_v33, %v4319_v54 }
 0x4b4   : > { %5926 = vmatpush1.bf16.msra.mxu0 %v7160_v58  ;;  %6012 = vmatpush1.bf16.msra.mxu1 %v7162_v61  ;;  %v4326_v58 = vld [vmem:[#allocation15 + $0x170] sm:$0xff]  ;;  %v4323_v61 = vld [vmem:[#allocation15 + $0x158] sm:$0xff] }
 0x4b5   : > { %5927 = vmatprep.subr.bf16.mxu0 %v7169_v62  ;;  %6013 = vmatprep.subr.bf16.mxu1 %v7171_v63  ;;  %v4327_v62 = vld [vmem:[#allocation15 + $0x178] sm:$0xff]  ;;  %v6972_v63 = vcombine.low %v4314_v55, %v4318_v59  ;;  %v6981_v0 = vcombine.high %v4322_v26, %v4326_v58 }
 0x4b6   : > { %v6983_v15 = vcombine.high %v4323_v61, %v4327_v62  ;;  %v6982_v27 = vcombine.low %v4323_v61, %v4327_v62  ;;  %v4378_v62 = vld [vmem:[#allocation15 + $0x310] sm:$0xff] }
 0x4b8   : > { %5928 = vmatpush1.bf16.msra.mxu0 %v7168_v46  ;;  %6014 = vmatpush1.bf16.msra.mxu1 %v7170_v48  ;;  %v4334_v46 = vld [vmem:[#allocation15 + $0x1b0] sm:$0xff]  ;;  %v4331_v48 = vld [vmem:[#allocation15 + $0x198] sm:$0xff] }
 0x4b9   : > { %5929 = vmatprep.subr.bf16.mxu0 %v7177_v2  ;;  %6015 = vmatprep.subr.bf16.mxu1 %v7179_v3  ;;  %v4335_v2 = vld [vmem:[#allocation15 + $0x1b8] sm:$0xff]  ;;  %v6980_v3 = vcombine.low %v4322_v26, %v4326_v58  ;;  %v6989_v4 = vcombine.high %v4330_v18, %v4334_v46  ;;  %v6988_v53 = vcombine.low %v4330_v18, %v4334_v46 }
 0x4ba   : > { %v6991_v6 = vcombine.high %v4331_v48, %v4335_v2 }
 0x4bc   : > { %5930 = vmatpush1.bf16.msra.mxu0 %v7176_v7  ;;  %6016 = vmatpush1.bf16.msra.mxu1 %v7178_v9  ;;  %v4338_v7 = vld [vmem:[#allocation15 + $0x1d0] sm:$0xff] }
 0x4bd   : > { %5931 = vmatprep.subr.bf16.mxu0 %v7185_v57  ;;  %6017 = vmatprep.subr.bf16.mxu1 %v7187_v60  ;;  %v4342_v9 = vld [vmem:[#allocation15 + $0x1f0] sm:$0xff] }
 0x4c0   : > { %5932 = vmatpush1.bf16.msra.mxu0 %v7184_v45  ;;  %6018 = vmatpush1.bf16.msra.mxu1 %v7186_v12  ;;  %v6990_v45 = vcombine.low %v4331_v48, %v4335_v2  ;;  %v6997_v12 = vcombine.high %v4338_v7, %v4342_v9  ;;  %v4386_v2 = vld [vmem:[#allocation15 + $0x350] sm:$0xff] }
 0x4c1   : > { %6030 = vmatprep.subr.bf16.mxu0 %v6941_v16  ;;  %6116 = vmatprep.subr.bf16.mxu1 %v6943_v19  ;;  %v6999_v16 = vcombine.high %v4339_v10, %v4343_v11  ;;  %v4346_v19 = vld [vmem:[#allocation15 + $0x210] sm:$0xff] }
 0x4c2   : > { %v7005_v32 = vcombine.high %v4346_v19, %v4350_v21  ;;  %v4394_v11 = vld [vmem:[#allocation15 + $0x390] sm:$0xff] }
 0x4c3   : > { %5934 = vmatmul.mubr.bf16.vlgmr.msra.gmra.mrb[8].mxu0 %v8863_v25  ;;  %6020 = vmatmul.mubr.bf16.vlgmr.msra.gmra.mrb[8].mxu1 %v8863_v25 }
 0x4c4   : > { %6031 = vmatpush1.bf16.msra.mxu0 %v6940_v28  ;;  %6117 = vmatpush1.bf16.msra.mxu1 %v6942_v31 }
 0x4c5   : > { %6032 = vmatprep.subr.bf16.mxu0 %v6949_v34  ;;  %6118 = vmatprep.subr.bf16.mxu1 %v6951_v35  ;;  %v6996_v34 = vcombine.low %v4338_v7, %v4342_v9 }
 0x4c6   : > { %6062 = vmatprep.mubr.bf16.mxu0 %v8850_v40  ;;  %6148 = vmatprep.mubr.bf16.mxu1 %v8850_v40  ;;  %v6975_v40 = vcombine.high %v4315_v33, %v4319_v54  ;;  %v4370_v54 = vld [vmem:[#allocation15 + $0x2d0] sm:$0xff] }
 0x4c8   : > { %6033 = vmatpush1.bf16.msra.mxu0 %v6948_v43  ;;  %6119 = vmatpush1.bf16.msra.mxu1 %v6950_v20  ;;  %v4358_v43 = vld [vmem:[#allocation15 + $0x270] sm:$0xff]  ;;  %v4355_v20 = vld [vmem:[#allocation15 + $0x258] sm:$0xff] }
 0x4c9   : > { %6034 = vmatprep.subr.bf16.mxu0 %v6957_v22  ;;  %6120 = vmatprep.subr.bf16.mxu1 %v6959_v44  ;;  %v4359_v22 = vld [vmem:[#allocation15 + $0x278] sm:$0xff]  ;;  %v7004_v44 = vcombine.low %v4346_v19, %v4350_v21  ;;  %v7013_v49 = vcombine.high %v4354_v42, %v4358_v43 }
 0x4ca   : > { %v7015_v39 = vcombine.high %v4355_v20, %v4359_v22  ;;  %v7014_v55 = vcombine.low %v4355_v20, %v4359_v22  ;;  %v4410_v22 = vld [vmem:[#allocation15 + $0x410] sm:$0xff] }
 0x4cc   : > { %6035 = vmatpush1.bf16.msra.mxu0 %v6956_v50  ;;  %6121 = vmatpush1.bf16.msra.mxu1 %v6958_v51  ;;  %v4366_v50 = vld [vmem:[#allocation15 + $0x2b0] sm:$0xff]  ;;  %v4363_v51 = vld [vmem:[#allocation15 + $0x298] sm:$0xff] }
 0x4cd   : > { %6036 = vmatprep.subr.bf16.mxu0 %v6965_v52  ;;  %6122 = vmatprep.subr.bf16.mxu1 %v6967_v29  ;;  %v4367_v52 = vld [vmem:[#allocation15 + $0x2b8] sm:$0xff]  ;;  %v7012_v29 = vcombine.low %v4354_v42, %v4358_v43  ;;  %v7021_v59 = vcombine.high %v4362_v17, %v4366_v50 }
 0x4ce   : > { %v7023_v33 = vcombine.high %v4363_v51, %v4367_v52  ;;  %v7022_v26 = vcombine.low %v4363_v51, %v4367_v52  ;;  %v4418_v52 = vld [vmem:[#allocation15 + $0x450] sm:$0xff] }
 0x4d0   : > { %6037 = vmatpush1.bf16.msra.mxu0 %v6964_v37  ;;  %6123 = vmatpush1.bf16.msra.mxu1 %v6966_v38  ;;  %v4374_v37 = vld [vmem:[#allocation15 + $0x2f0] sm:$0xff]  ;;  %v4371_v38 = vld [vmem:[#allocation15 + $0x2d8] sm:$0xff] }
 0x4d1   : > { %6038 = vmatprep.subr.bf16.mxu0 %v6973_v56  ;;  %6124 = vmatprep.subr.bf16.mxu1 %v6975_v40  ;;  %v4375_v56 = vld [vmem:[#allocation15 + $0x2f8] sm:$0xff]  ;;  %v7020_v40 = vcombine.low %v4362_v17, %v4366_v50  ;;  %v7029_v58 = vcombine.high %v4370_v54, %v4374_v37 }
 0x4d2   : > { %v7031_v61 = vcombine.high %v4371_v38, %v4375_v56  ;;  %v7030_v18 = vcombine.low %v4371_v38, %v4375_v56  ;;  %v4426_v56 = vld [vmem:[#allocation15 + $0x490] sm:$0xff] }
 0x4d4   : > { %6039 = vmatpush1.bf16.msra.mxu0 %v6972_v63  ;;  %6125 = vmatpush1.bf16.msra.mxu1 %v6974_v47  ;;  %v4382_v63 = vld [vmem:[#allocation15 + $0x330] sm:$0xff]  ;;  %v4379_v47 = vld [vmem:[#allocation15 + $0x318] sm:$0xff] }
 0x4d5   : > { %6040 = vmatprep.subr.bf16.mxu0 %v6981_v0  ;;  %6126 = vmatprep.subr.bf16.mxu1 %v6983_v15  ;;  %v4383_v0 = vld [vmem:[#allocation15 + $0x338] sm:$0xff]  ;;  %v7028_v15 = vcombine.low %v4370_v54, %v4374_v37  ;;  %v7037_v46 = vcombine.high %v4378_v62, %v4382_v63 }
 0x4d6   : > { %v8869_v5 = vpop.f32.mrb[0].mxu0  ;;  %v8871_v57 = vpop.f32.mrb[0].mxu1  ;;  %v7039_v48 = vcombine.high %v4379_v47, %v4383_v0  ;;  %v7038_v7 = vcombine.low %v4379_v47, %v4383_v0  ;;  %v4434_v0 = vld [vmem:[#allocation15 + $0x4d0] sm:$0xff] }
 0x4d7   : > { %v8873_v60 = vpop.f32.mrb[1].mxu0  ;;  %v8875_v1 = vpop.f32.mrb[1].mxu1 }
 0x4d8   : > { %6041 = vmatpush1.bf16.msra.mxu0 %v6980_v3  ;;  %6127 = vmatpush1.bf16.msra.mxu1 %v6982_v27  ;;  %v4390_v3 = vld [vmem:[#allocation15 + $0x370] sm:$0xff]  ;;  %v4387_v27 = vld [vmem:[#allocation15 + $0x358] sm:$0xff] }
 0x4d9   : > { %6042 = vmatprep.subr.bf16.mxu0 %v6989_v4  ;;  %6128 = vmatprep.subr.bf16.mxu1 %v6991_v6  ;;  %v4391_v4 = vld [vmem:[#allocation15 + $0x378] sm:$0xff]  ;;  %v7036_v6 = vcombine.low %v4378_v62, %v4382_v63  ;;  %v7045_v9 = vcombine.high %v4386_v2, %v4390_v3 }
 0x4da   : > { %v8877_v23 = vpop.f32.mrb[2].mxu0  ;;  %v8879_v28 = vpop.f32.mrb[2].mxu1  ;;  %v7047_v10 = vcombine.high %v4387_v27, %v4391_v4  ;;  %v7046_v19 = vcombine.low %v4387_v27, %v4391_v4  ;;  %v4442_v27 = vld [vmem:[#allocation15 + $0x510] sm:$0xff] }
 0x4db   : > { %v8881_v31 = vpop.f32.mrb[3].mxu0  ;;  %v8883_v35 = vpop.f32.mrb[3].mxu1  ;;  %v4446_v4 = vld [vmem:[#allocation15 + $0x530] sm:$0xff] }
 0x4dc   : > { %6043 = vmatpush1.bf16.msra.mxu0 %v6988_v53  ;;  %6129 = vmatpush1.bf16.msra.mxu1 %v6990_v45  ;;  %v4398_v53 = vld [vmem:[#allocation15 + $0x3b0] sm:$0xff]  ;;  %v4395_v45 = vld [vmem:[#allocation15 + $0x398] sm:$0xff] }
 0x4dd   : > { %6044 = vmatprep.subr.bf16.mxu0 %v6997_v12  ;;  %6130 = vmatprep.subr.bf16.mxu1 %v6999_v16  ;;  %v4399_v12 = vld [vmem:[#allocation15 + $0x3b8] sm:$0xff]  ;;  %v7044_v16 = vcombine.low %v4386_v2, %v4390_v3  ;;  %v7053_v21 = vcombine.high %v4394_v11, %v4398_v53 }
 0x4de   : > { %v7055_v24 = vcombine.high %v4395_v45, %v4399_v12  ;;  %v7054_v42 = vcombine.low %v4395_v45, %v4399_v12  ;;  %v4454_v45 = vld [vmem:[#allocation15 + $0x570] sm:$0xff]  ;;  %v4451_v12 = vld [vmem:[#allocation15 + $0x558] sm:$0xff] }
 0x4e0   : > { %6045 = vmatpush1.bf16.msra.mxu0 %v6996_v34  ;;  %6131 = vmatpush1.bf16.msra.mxu1 %v6998_v36  ;;  %v4406_v34 = vld [vmem:[#allocation15 + $0x3f0] sm:$0xff]  ;;  %v4403_v36 = vld [vmem:[#allocation15 + $0x3d8] sm:$0xff] }
 0x4e1   : > { %6046 = vmatprep.subr.bf16.mxu0 %v7005_v32  ;;  %6132 = vmatprep.subr.bf16.mxu1 %v7007_v41  ;;  %v4407_v32 = vld [vmem:[#allocation15 + $0x3f8] sm:$0xff]  ;;  %v7052_v41 = vcombine.low %v4394_v11, %v4398_v53  ;;  %v7061_v43 = vcombine.high %v4402_v13, %v4406_v34  ;;  %v7101_v11 = vcombine.high %v4442_v27, %v4446_v4  ;;  %v4450_v53 = vld [vmem:[#allocation15 + $0x550] sm:$0xff] }
 0x4e2   : > { %v7063_v20 = vcombine.high %v4403_v36, %v4407_v32  ;;  %v7062_v17 = vcombine.low %v4403_v36, %v4407_v32  ;;  %v4462_v36 = vld [vmem:[#allocation15 + $0x5b0] sm:$0xff]  ;;  %v4459_v32 = vld [vmem:[#allocation15 + $0x598] sm:$0xff] }
 0x4e4   : > { %6047 = vmatpush1.bf16.msra.mxu0 %v7004_v44  ;;  %6133 = vmatpush1.bf16.msra.mxu1 %v7006_v14  ;;  %v4414_v44 = vld [vmem:[#allocation15 + $0x430] sm:$0xff]  ;;  %v4411_v14 = vld [vmem:[#allocation15 + $0x418] sm:$0xff] }
 0x4e5   : > { %6048 = vmatprep.subr.bf16.mxu0 %v7013_v49  ;;  %6134 = vmatprep.subr.bf16.mxu1 %v7015_v39  ;;  %v4415_v49 = vld [vmem:[#allocation15 + $0x438] sm:$0xff]  ;;  %v7060_v39 = vcombine.low %v4402_v13, %v4406_v34  ;;  %v7069_v50 = vcombine.high %v4410_v22, %v4414_v44  ;;  %v4458_v34 = vld [vmem:[#allocation15 + $0x590] sm:$0xff] }
 0x4e6   : > { %v7071_v51 = vcombine.high %v4411_v14, %v4415_v49  ;;  %v7070_v54 = vcombine.low %v4411_v14, %v4415_v49  ;;  %v4466_v14 = vld [vmem:[#allocation15 + $0x5d0] sm:$0xff] }
 0x4e7   : > { %v4470_v49 = vld [vmem:[#allocation15 + $0x5f0] sm:$0xff] }
 0x4e8   : > { %6049 = vmatpush1.bf16.msra.mxu0 %v7012_v29  ;;  %6135 = vmatpush1.bf16.msra.mxu1 %v7014_v55  ;;  %v4422_v29 = vld [vmem:[#allocation15 + $0x470] sm:$0xff]  ;;  %v4419_v55 = vld [vmem:[#allocation15 + $0x458] sm:$0xff] }
 0x4e9   : > { %6050 = vmatprep.subr.bf16.mxu0 %v7021_v59  ;;  %6136 = vmatprep.subr.bf16.mxu1 %v7023_v33  ;;  %v4423_v59 = vld [vmem:[#allocation15 + $0x478] sm:$0xff]  ;;  %v7068_v33 = vcombine.low %v4410_v22, %v4414_v44  ;;  %v7077_v37 = vcombine.high %v4418_v52, %v4422_v29 }
 0x4ea   : > { %v7079_v38 = vcombine.high %v4419_v55, %v4423_v59  ;;  %v7078_v62 = vcombine.low %v4419_v55, %v4423_v59  ;;  %v7125_v59 = vcombine.high %v4466_v14, %v4470_v49 }
 0x4ec   : > { %6051 = vmatpush1.bf16.msra.mxu0 %v7020_v40  ;;  %6137 = vmatpush1.bf16.msra.mxu1 %v7022_v26  ;;  %v4430_v40 = vld [vmem:[#allocation15 + $0x4b0] sm:$0xff]  ;;  %v4427_v26 = vld [vmem:[#allocation15 + $0x498] sm:$0xff] }
 0x4ed   : > { %6052 = vmatprep.subr.bf16.mxu0 %v7029_v58  ;;  %6138 = vmatprep.subr.bf16.mxu1 %v7031_v61  ;;  %v4431_v58 = vld [vmem:[#allocation15 + $0x4b8] sm:$0xff]  ;;  %v7076_v61 = vcombine.low %v4418_v52, %v4422_v29  ;;  %v7085_v63 = vcombine.high %v4426_v56, %v4430_v40  ;;  %v7116_v29 = vcombine.low %v4458_v34, %v4462_v36 }
 0x4ee   : > { %v7087_v47 = vcombine.high %v4427_v26, %v4431_v58 }
 0x4f0   : > { %6053 = vmatpush1.bf16.msra.mxu0 %v7028_v15  ;;  %6139 = vmatpush1.bf16.msra.mxu1 %v7030_v18  ;;  %v4438_v15 = vld [vmem:[#allocation15 + $0x4f0] sm:$0xff]  ;;  %v4435_v18 = vld [vmem:[#allocation15 + $0x4d8] sm:$0xff] }
 0x4f1   : > { %6054 = vmatprep.subr.bf16.mxu0 %v7037_v46  ;;  %6140 = vmatprep.subr.bf16.mxu1 %v7039_v48  ;;  %v4439_v46 = vld [vmem:[#allocation15 + $0x4f8] sm:$0xff]  ;;  %v7084_v48 = vcombine.low %v4426_v56, %v4430_v40  ;;  %v7093_v2 = vcombine.high %v4434_v0, %v4438_v15 }
 0x4f2   : > { %v7095_v3 = vcombine.high %v4435_v18, %v4439_v46  ;;  %v4475_v56 = vld [vmem:[#allocation15 + $0x618] sm:$0xff] }
 0x4f3   : > { %v4479_v40 = vld [vmem:[#allocation15 + $0x638] sm:$0xff] }
 0x4f4   : > { %6055 = vmatpush1.bf16.msra.mxu0 %v7036_v6  ;;  %6141 = vmatpush1.bf16.msra.mxu1 %v7038_v7  ;;  %v4443_v6 = vld [vmem:[#allocation15 + $0x518] sm:$0xff] }
 0x4f5   : > { %6056 = vmatprep.subr.bf16.mxu0 %v7045_v9  ;;  %6142 = vmatprep.subr.bf16.mxu1 %v7047_v10  ;;  %v4447_v7 = vld [vmem:[#allocation15 + $0x538] sm:$0xff]  ;;  %v7092_v9 = vcombine.low %v4434_v0, %v4438_v15  ;;  %v7094_v10 = vcombine.low %v4435_v18, %v4439_v46  ;;  %v7135_v0 = vcombine.high %v4475_v56, %v4479_v40  ;;  %v4482_v15 = vld [vmem:[#allocation15 + $0x650] sm:$0xff] }
 0x4f6   : > { %v4486_v18 = vld [vmem:[#allocation15 + $0x670] sm:$0xff]  ;;  %v4483_v46 = vld [vmem:[#allocation15 + $0x658] sm:$0xff] }
 0x4f8   : > { %6057 = vmatpush1.bf16.msra.mxu0 %v7044_v16  ;;  %6143 = vmatpush1.bf16.msra.mxu1 %v7046_v19  ;;  %v4455_v16 = vld [vmem:[#allocation15 + $0x578] sm:$0xff]  ;;  %v7100_v19 = vcombine.low %v4442_v27, %v4446_v4  ;;  %v4490_v4 = vld [vmem:[#allocation15 + $0x690] sm:$0xff] }
 0x4f9   : > { %6058 = vmatprep.subr.bf16.mxu0 %v7053_v21  ;;  %6144 = vmatprep.subr.bf16.mxu1 %v7055_v24  ;;  %v7102_v21 = vcombine.low %v4443_v6, %v4447_v7  ;;  %v7109_v24 = vcombine.high %v4450_v53, %v4454_v45  ;;  %v7111_v13 = vcombine.high %v4451_v12, %v4455_v16 }
 0x4fc   : > { %6059 = vmatpush1.bf16.msra.mxu0 %v7052_v41  ;;  %6145 = vmatpush1.bf16.msra.mxu1 %v7054_v42  ;;  %v4463_v41 = vld [vmem:[#allocation15 + $0x5b8] sm:$0xff]  ;;  %v7108_v42 = vcombine.low %v4450_v53, %v4454_v45  ;;  %v4498_v45 = vld [vmem:[#allocation15 + $0x6d0] sm:$0xff] }
 0x4fd   : > { %6060 = vmatprep.subr.bf16.mxu0 %v7061_v43  ;;  %6146 = vmatprep.subr.bf16.mxu1 %v7063_v20  ;;  %v7110_v43 = vcombine.low %v4451_v12, %v4455_v16  ;;  %v7117_v20 = vcombine.high %v4458_v34, %v4462_v36  ;;  %v7119_v44 = vcombine.high %v4459_v32, %v4463_v41  ;;  %v4502_v12 = vld [vmem:[#allocation15 + $0x6f0] sm:$0xff]  ;;  %v4499_v16 = vld [vmem:[#allocation15 + $0x6d8] sm:$0xff] }
 0x4fe   : > { %v7118_v55 = vcombine.low %v4459_v32, %v4463_v41  ;;  %v4506_v36 = vld [vmem:[#allocation15 + $0x710] sm:$0xff]  ;;  %v4507_v41 = vld [vmem:[#allocation15 + $0x718] sm:$0xff] }
 0x4ff   : > { %v4510_v32 = vld [vmem:[#allocation15 + $0x730] sm:$0xff] }
 0x500   : > { %6061 = vmatpush1.bf16.msra.mxu0 %v7060_v39  ;;  %6147 = vmatpush1.bf16.msra.mxu1 %v7062_v17 }
 0x501   : > { %6073 = vmatprep.subr.bf16.mxu0 %v7069_v50  ;;  %6159 = vmatprep.subr.bf16.mxu1 %v7071_v51  ;;  %v4467_v50 = vld [vmem:[#allocation15 + $0x5d8] sm:$0xff] }
 0x502   : > { %v4471_v51 = vld [vmem:[#allocation15 + $0x5f8] sm:$0xff] }
 0x503   : > { %6063 = vmatmul.mubr.bf16.vlgmr.msra.gmra.mrb[12].mxu0 %v8855_v8  ;;  %6149 = vmatmul.mubr.bf16.vlgmr.msra.gmra.mrb[12].mxu1 %v8855_v8  ;;  %v7086_v8 = vcombine.low %v4427_v26, %v4431_v58 }
 0x504   : > { %6074 = vmatpush1.bf16.msra.mxu0 %v7068_v33  ;;  %6160 = vmatpush1.bf16.msra.mxu1 %v7070_v54  ;;  %v7127_v33 = vcombine.high %v4467_v50, %v4471_v51  ;;  %v4474_v54 = vld [vmem:[#allocation15 + $0x610] sm:$0xff] }
 0x505   : > { %6075 = vmatprep.subr.bf16.mxu0 %v7077_v37  ;;  %6161 = vmatprep.subr.bf16.mxu1 %v7079_v38  ;;  %v4478_v37 = vld [vmem:[#allocation15 + $0x630] sm:$0xff] }
 0x506   : > { %6105 = vmatprep.mubr.bf16.mxu0 %v8858_v30  ;;  %6191 = vmatprep.mubr.bf16.mxu1 %v8858_v30  ;;  %v7103_v30 = vcombine.high %v4443_v6, %v4447_v7  ;;  %v4494_v6 = vld [vmem:[#allocation15 + $0x6b0] sm:$0xff]  ;;  %v4491_v7 = vld [vmem:[#allocation15 + $0x698] sm:$0xff] }
 0x508   : > { %6076 = vmatpush1.bf16.msra.mxu0 %v7076_v61  ;;  %6162 = vmatpush1.bf16.msra.mxu1 %v7078_v62  ;;  %v7124_v61 = vcombine.low %v4466_v14, %v4470_v49  ;;  %v4514_v49 = vld [vmem:[#allocation15 + $0x750] sm:$0xff] }
 0x509   : > { %6077 = vmatprep.subr.bf16.mxu0 %v7085_v63  ;;  %6163 = vmatprep.subr.bf16.mxu1 %v7087_v47  ;;  %v7126_v63 = vcombine.low %v4467_v50, %v4471_v51  ;;  %v7133_v47 = vcombine.high %v4474_v54, %v4478_v37  ;;  %v4518_v50 = vld [vmem:[#allocation15 + $0x770] sm:$0xff]  ;;  %v4515_v51 = vld [vmem:[#allocation15 + $0x758] sm:$0xff] }
 0x50c   : > { %6078 = vmatpush1.bf16.msra.mxu0 %v7084_v48  ;;  %6164 = vmatpush1.bf16.msra.mxu1 %v7086_v8  ;;  %v4487_v48 = vld [vmem:[#allocation15 + $0x678] sm:$0xff]  ;;  %v7132_v8 = vcombine.low %v4474_v54, %v4478_v37  ;;  %v4522_v37 = vld [vmem:[#allocation15 + $0x790] sm:$0xff] }
 0x50d   : > { %6079 = vmatprep.subr.bf16.mxu0 %v7093_v2  ;;  %6165 = vmatprep.subr.bf16.mxu1 %v7095_v3  ;;  %v7134_v2 = vcombine.low %v4475_v56, %v4479_v40  ;;  %v7141_v3 = vcombine.high %v4482_v15, %v4486_v18  ;;  %v7143_v27 = vcombine.high %v4483_v46, %v4487_v48  ;;  %v4526_v56 = vld [vmem:[#allocation15 + $0x7b0] sm:$0xff]  ;;  %v4523_v40 = vld [vmem:[#allocation15 + $0x798] sm:$0xff] }
 0x510   : > { %6080 = vmatpush1.bf16.msra.mxu0 %v7092_v9  ;;  %6166 = vmatpush1.bf16.msra.mxu1 %v7094_v10  ;;  %v4495_v9 = vld [vmem:[#allocation15 + $0x6b8] sm:$0xff]  ;;  %v7140_v10 = vcombine.low %v4482_v15, %v4486_v18  ;;  %v4530_v18 = vld [vmem:[#allocation15 + $0x7d0] sm:$0xff] }
 0x511   : > { %6081 = vmatprep.subr.bf16.mxu0 %v7101_v11  ;;  %6167 = vmatprep.subr.bf16.mxu1 %v7103_v30  ;;  %v7142_v11 = vcombine.low %v4483_v46, %v4487_v48  ;;  %v7149_v30 = vcombine.high %v4490_v4, %v4494_v6  ;;  %v7151_v53 = vcombine.high %v4491_v7, %v4495_v9  ;;  %v4534_v46 = vld [vmem:[#allocation15 + $0x7f0] sm:$0xff]  ;;  %v4531_v48 = vld [vmem:[#allocation15 + $0x7d8] sm:$0xff] }
 0x514   : > { %6082 = vmatpush1.bf16.msra.mxu0 %v7100_v19  ;;  %6168 = vmatpush1.bf16.msra.mxu1 %v7102_v21  ;;  %v4503_v19 = vld [vmem:[#allocation15 + $0x6f8] sm:$0xff]  ;;  %v7148_v21 = vcombine.low %v4490_v4, %v4494_v6  ;;  %v7188_v6 = vcombine.low %v4530_v18, %v4534_v46 }
 0x515   : > { %6083 = vmatprep.subr.bf16.mxu0 %v7109_v24  ;;  %6169 = vmatprep.subr.bf16.mxu1 %v7111_v13  ;;  %v7150_v24 = vcombine.low %v4491_v7, %v4495_v9  ;;  %v7157_v13 = vcombine.high %v4498_v45, %v4502_v12  ;;  %v7159_v34 = vcombine.high %v4499_v16, %v4503_v19  ;;  %v4538_v9 = vlaneseq }
 0x516   : > { %v8889_v22 = vpop.f32.mrb[4].mxu0  ;;  %v8891_v39 = vpop.f32.mrb[4].mxu1 }
 0x517   : > { %v8893_v17 = vpop.f32.mrb[5].mxu0  ;;  %v8895_v52 = vpop.f32.mrb[5].mxu1 }
 0x518   : > { %6084 = vmatpush1.bf16.msra.mxu0 %v7108_v42  ;;  %6170 = vmatpush1.bf16.msra.mxu1 %v7110_v43  ;;  %v4511_v42 = vld [vmem:[#allocation15 + $0x738] sm:$0xff]  ;;  %v7156_v43 = vcombine.low %v4498_v45, %v4502_v12  ;;  %v6203_v45 = vld [vmem:[#allocation9 + $0x8] sm:$0xff] }
 0x519   : > { %6085 = vmatprep.subr.bf16.mxu0 %v7117_v20  ;;  %6171 = vmatprep.subr.bf16.mxu1 %v7119_v44  ;;  %v7158_v20 = vcombine.low %v4499_v16, %v4503_v19  ;;  %v7165_v44 = vcombine.high %v4506_v36, %v4510_v32  ;;  %v7167_v14 = vcombine.high %v4507_v41, %v4511_v42  ;;  %v6205_v12 = vld [vmem:[#allocation9 + $0x18] sm:$0xff]  ;;  %v6210_v16 = vld [vmem:[#allocation9 + $0x40] sm:$0xff]  ;;  %v8913_v19 = vstv %s6934_s27 }
 0x51a   : > { %v8897_v38 = vpop.f32.mrb[6].mxu0  ;;  %v8899_v26 = vpop.f32.mrb[6].mxu1 }
 0x51b   : > { %v8901_v58 = vpop.f32.mrb[7].mxu0  ;;  %v8903_v62 = vpop.f32.mrb[7].mxu1 }
 0x51c   : > { %6086 = vmatpush1.bf16.msra.mxu0 %v7116_v29  ;;  %6172 = vmatpush1.bf16.msra.mxu1 %v7118_v55  ;;  %v4519_v29 = vld [vmem:[#allocation15 + $0x778] sm:$0xff]  ;;  %v7164_v55 = vcombine.low %v4506_v36, %v4510_v32  ;;  %v8921_v36 = vld [vmem:[%s9099_s3] sm:$0xff] }
 0x51d   : > { %6087 = vmatprep.subr.bf16.mxu0 %v7125_v59  ;;  %6173 = vmatprep.subr.bf16.mxu1 %v7127_v33  ;;  %v7166_v59 = vcombine.low %v4507_v41, %v4511_v42  ;;  %v7173_v33 = vcombine.high %v4514_v49, %v4518_v50  ;;  %v7175_v54 = vcombine.high %v4515_v51, %v4519_v29 }
 0x520   : > { %6088 = vmatpush1.bf16.msra.mxu0 %v7124_v61  ;;  %6174 = vmatpush1.bf16.msra.mxu1 %v7126_v63  ;;  %v4527_v61 = vld [vmem:[#allocation15 + $0x7b8] sm:$0xff]  ;;  %v7172_v63 = vcombine.low %v4514_v49, %v4518_v50  ;;  %v6238_v49 = vmul.f32 %v8913_v19, %v8871_v57  ;;  %v6246_v57 = vmul.f32 %v8913_v19, %v8879_v28 }
 0x521   : > { %6089 = vmatprep.subr.bf16.mxu0 %v7133_v47  ;;  %6175 = vmatprep.subr.bf16.mxu1 %v7135_v0  ;;  %v7174_v47 = vcombine.low %v4515_v51, %v4519_v29  ;;  %v7181_v0 = vcombine.high %v4522_v37, %v4526_v56  ;;  %v7183_v15 = vcombine.high %v4523_v40, %v4527_v61  ;;  %v6213_v29 = vld [vmem:[#allocation9 + $0x58] sm:$0xff] }
 0x524   : > { %6090 = vmatpush1.bf16.msra.mxu0 %v7132_v8  ;;  %6176 = vmatpush1.bf16.msra.mxu1 %v7134_v2  ;;  %v4535_v8 = vld [vmem:[#allocation15 + $0x7f8] sm:$0xff]  ;;  %v7180_v2 = vcombine.low %v4522_v37, %v4526_v56 }
 0x525   : > { %6091 = vmatprep.subr.bf16.mxu0 %v7141_v3  ;;  %6177 = vmatprep.subr.bf16.mxu1 %v7143_v27  ;;  %v7182_v3 = vcombine.low %v4523_v40, %v4527_v61  ;;  %v7189_v27 = vcombine.high %v4530_v18, %v4534_v46  ;;  %v7191_v4 = vcombine.high %v4531_v48, %v4535_v8 }
 0x526   : > { %v7190_v7 = vcombine.low %v4531_v48, %v4535_v8 }
 0x528   : > { %6092 = vmatpush1.bf16.msra.mxu0 %v7140_v10  ;;  %6178 = vmatpush1.bf16.msra.mxu1 %v7142_v11  ;;  %v8907_v10 = vshrl.u32 %v4538_v9, 7  ;;  %v6202_v11 = vld [vmem:[#allocation9] sm:$0xff] }
 0x529   : > { %6093 = vmatprep.subr.bf16.mxu0 %v7149_v30  ;;  %6179 = vmatprep.subr.bf16.mxu1 %v7151_v53  ;;  %v8909_v30 = vstv %s3577_s30  ;;  %v6204_v53 = vld [vmem:[#allocation9 + $0x10] sm:$0xff] }
 0x52a   : > { %v4548_v32 = vsub.s32 2, %v8907_v10  ;;  %v4544_v41 = vsub.s32 1, %v8907_v10  ;;  %v6220_v42 = vmul.f32 %v8909_v30, %v6203_v45 }
 0x52c   : > { %6094 = vmatpush1.bf16.msra.mxu0 %v7148_v21  ;;  %6180 = vmatpush1.bf16.msra.mxu1 %v7150_v24  ;;  %v6212_v21 = vld [vmem:[#allocation9 + $0x50] sm:$0xff]  ;;  %v6211_v24 = vld [vmem:[#allocation9 + $0x48] sm:$0xff]  ;;  %v4549_v37 = vrot.slane %v8921_v36, %v4548_v32  ;;  %v4545_v56 = vrot.slane %v8921_v36, %v4544_v41 }
 0x52d   : > { %6095 = vmatprep.subr.bf16.mxu0 %v7157_v13  ;;  %6181 = vmatprep.subr.bf16.mxu1 %v7159_v34  ;;  %v6219_v13 = vmul.f32 %v8909_v30, %v6202_v11  ;;  %v6221_v34 = vmul.f32 %v8909_v30, %v6204_v53  ;;  %v6229_v50 = vmul.f32 %v8909_v30, %v6212_v21 }
 0x52e   : > { %v6228_v51 = vmul.f32 %v8909_v30, %v6211_v24 }
 0x52f   : > { %v6254_v61 = vsub.f32 %v6221_v34, %v6238_v49  ;;  %v6262_v48 = vsub.f32 %v6229_v50, %v6246_v57 }
 0x530   : > { %6096 = vmatpush1.bf16.msra.mxu0 %v7156_v43  ;;  %6182 = vmatpush1.bf16.msra.mxu1 %v7158_v20  ;;  %v6222_v43 = vmul.f32 %v8909_v30, %v6205_v12  ;;  %v6227_v20 = vmul.f32 %v8909_v30, %v6210_v16 }
 0x531   : > { %6097 = vmatprep.subr.bf16.mxu0 %v7165_v44  ;;  %6183 = vmatprep.subr.bf16.mxu1 %v7167_v14  ;;  %v4552_v44 = vsub.s32 3, %v8907_v10  ;;  %v6236_v14 = vmul.f32 %v8913_v19, %v8869_v5 }
 0x533   : > { %v4553_v40 = vrot.slane %v8921_v36, %v4552_v44 }
 0x534   : > { %6098 = vmatpush1.bf16.msra.mxu0 %v7164_v55  ;;  %6184 = vmatpush1.bf16.msra.mxu1 %v7166_v59  ;;  %v6237_v55 = vmul.f32 %v8913_v19, %v8873_v60  ;;  %v6239_v59 = vmul.f32 %v8913_v19, %v8875_v1  ;;  %v6230_v60 = vmul.f32 %v8909_v30, %v6213_v29 }
 0x535   : > { %6099 = vmatprep.subr.bf16.mxu0 %v7173_v33  ;;  %6185 = vmatprep.subr.bf16.mxu1 %v7175_v54  ;;  %v6244_v33 = vmul.f32 %v8913_v19, %v8877_v23  ;;  %v6245_v54 = vmul.f32 %v8913_v19, %v8881_v31  ;;  %v6247_v1 = vmul.f32 %v8913_v19, %v8883_v35 }
 0x536   : > { %v6252_v23 = vsub.f32 %v6219_v13, %v6236_v14  ;;  %v6253_v28 = vsub.f32 %v6220_v42, %v6237_v55 }
 0x537   : > { %v6261_v8 = vsub.f32 %v6228_v51, %v6245_v54  ;;  %v6263_v35 = vsub.f32 %v6230_v60, %v6247_v1  ;;  %v6206_v60 = vld [vmem:[#allocation9 + $0x20] sm:$0xff]  ;;  %v6208_v1 = vld [vmem:[#allocation9 + $0x30] sm:$0xff] }
 0x538   : > { %6100 = vmatpush1.bf16.msra.mxu0 %v7172_v63  ;;  %6186 = vmatpush1.bf16.msra.mxu1 %v7174_v47  ;;  %v8953_v47 = vstv %s8911_s0 }
 0x539   : > { %6101 = vmatprep.subr.bf16.mxu0 %v7181_v0  ;;  %6187 = vmatprep.subr.bf16.mxu1 %v7183_v15  ;;  %v6255_v0 = vsub.f32 %v6222_v43, %v6239_v59  ;;  %v6260_v15 = vsub.f32 %v6227_v20, %v6244_v33 }
 0x53c   : > { %6102 = vmatpush1.bf16.msra.mxu0 %v7180_v2  ;;  %6188 = vmatpush1.bf16.msra.mxu1 %v7182_v3 }
 0x53d   : > { %6103 = vmatprep.subr.bf16.mxu0 %v7189_v27  ;;  %6189 = vmatprep.subr.bf16.mxu1 %v7191_v4 }
 0x540   : > { %6104 = vmatpush1.bf16.msra.mxu0 %v7188_v6  ;;  %6190 = vmatpush1.bf16.msra.mxu1 %v7190_v7 }
 0x543   : > { %6106 = vmatmul.mubr.bf16.vlgmr.msra.gmra.mrb[12].mxu0 %v8863_v25  ;;  %6192 = vmatmul.mubr.bf16.vlgmr.msra.gmra.mrb[12].mxu1 %v8863_v25  ;;  %v4540_v25 = vsub.s32 0, %v8907_v10 }
 0x545   : > { %v4541_v5 = vrot.slane %v8921_v36, %v4540_v25 }
 0x596   : > { %v5935_v63 = vpop.f32.mrb[8].mxu0  ;;  %v6021_v18 = vpop.f32.mrb[8].mxu1 }
 0x597   : > { %v7488_v31 = vadd.f32 %v5935_v63, %v4541_v5  ;;  %v5937_v46 = vpop.f32.mrb[9].mxu0  ;;  %v7492_v2 = vadd.f32 %v6021_v18, %v4549_v37  ;;  %v6023_v27 = vpop.f32.mrb[9].mxu1  ;;  %v6216_v63 = vld [vmem:[#allocation9 + $0x70] sm:$0xff]  ;;  %v4564_v18 = vsub.s32 6, %v8907_v10 }
 0x598   : > { %v7489_v3 = vadd.f32 %v5937_v46, %v4545_v56  ;;  %v5939_v4 = vpop.f32.mrb[10].mxu0  ;;  %v7493_v7 = vadd.f32 %v6023_v27, %v4553_v40  ;;  %v6025_v11 = vpop.f32.mrb[10].mxu1  ;;  %v4560_v46 = vsub.s32 5, %v8907_v10  ;;  %v6240_v27 = vmul.f32 %v8913_v19, %v8889_v22 }
 0x599   : > { %v6269_v6 = vmul.f32 %v7488_v31, %v8953_v47  ;;  %v7490_v9 = vadd.f32 %v5939_v4, %v4541_v5  ;;  %v5941_v53 = vpop.f32.mrb[11].mxu0  ;;  %v6271_v45 = vmul.f32 %v7492_v2, %v8953_v47  ;;  %v7494_v16 = vadd.f32 %v6025_v11, %v4549_v37  ;;  %v6027_v24 = vpop.f32.mrb[11].mxu1 }
 0x59a   : > { %v6270_v12 = vmul.f32 %v7489_v3, %v8953_v47  ;;  %v7491_v21 = vadd.f32 %v5941_v53, %v4545_v56  ;;  %v6272_v13 = vmul.f32 %v7493_v7, %v8953_v47  ;;  %v7495_v32 = vadd.f32 %v6027_v24, %v4553_v40  ;;  %v6207_v40 = vld [vmem:[#allocation9 + $0x28] sm:$0xff]  ;;  %v6217_v7 = vld [vmem:[#allocation9 + $0x78] sm:$0xff] }
 0x59b   : > { %v6285_v25 = vadd.f32 %v6269_v6, %v6252_v23  ;;  %v6277_v34 = vmul.f32 %v7490_v9, %v8953_v47  ;;  %v6287_v41 = vadd.f32 %v6271_v45, %v6254_v61  ;;  %v6279_v43 = vmul.f32 %v7494_v16, %v8953_v47  ;;  %v6209_v23 = vld [vmem:[#allocation9 + $0x38] sm:$0xff]  ;;  %v6214_v61 = vld [vmem:[#allocation9 + $0x60] sm:$0xff] }
 0x59c   : > { %v6286_v42 = vadd.f32 %v6270_v12, %v6253_v28  ;;  %v6278_v20 = vmul.f32 %v7491_v21, %v8953_v47  ;;  %v6288_v14 = vadd.f32 %v6272_v13, %v6255_v0  ;;  %v6280_v50 = vmul.f32 %v7495_v32, %v8953_v47  ;;  %v6215_v28 = vld [vmem:[#allocation9 + $0x68] sm:$0xff] }
 0x59d   : > { %v6301_v44 = vmax.f32 %v6285_v25, 0.0  ;;  %v6293_v49 = vadd.f32 %v6277_v34, %v6260_v15  ;;  %v6303_v51 = vmax.f32 %v6287_v41, 0.0  ;;  %v6295_v55 = vadd.f32 %v6279_v43, %v6262_v48 }
 0x59e   : > { %v6302_v29 = vmax.f32 %v6286_v42, 0.0  ;;  %v6294_v59 = vadd.f32 %v6278_v20, %v6261_v8  ;;  %v6304_v33 = vmax.f32 %v6288_v14, 0.0  ;;  %v6296_v57 = vadd.f32 %v6280_v50, %v6263_v35 }
 0x59f   : > { %6317 = vst [vmem:[#allocation18] sm:$0xff] %v6301_v44  ;;  %v6309_v5 = vmax.f32 %v6293_v49, 0.0  ;;  %6319 = vst [vmem:[#allocation18 + $0x10] sm:$0xff] %v6303_v51  ;;  %v6311_v54 = vmax.f32 %v6295_v55, 0.0  ;;  %v4556_v0 = vsub.s32 4, %v8907_v10  ;;  %v6223_v15 = vmul.f32 %v8909_v30, %v6206_v60 }
 0x5a0   : > { %6318 = vst [vmem:[#allocation18 + $0x8] sm:$0xff] %v6302_v29  ;;  %v6310_v37 = vmax.f32 %v6294_v59, 0.0  ;;  %6320 = vst [vmem:[#allocation18 + $0x18] sm:$0xff] %v6304_v33  ;;  %v6312_v56 = vmax.f32 %v6296_v57, 0.0  ;;  %v6225_v31 = vmul.f32 %v8909_v30, %v6208_v1  ;;  %v6224_v48 = vmul.f32 %v8909_v30, %v6207_v40 }
 0x5a1   : > { %6325 = vst [vmem:[#allocation18 + $0x40] sm:$0xff] %v6309_v5  ;;  %6327 = vst [vmem:[#allocation18 + $0x50] sm:$0xff] %v6311_v54  ;;  %v6226_v8 = vmul.f32 %v8909_v30, %v6209_v23  ;;  %v6231_v2 = vmul.f32 %v8909_v30, %v6214_v61  ;;  %v4568_v3 = vsub.s32 7, %v8907_v10  ;;  %v6242_v4 = vmul.f32 %v8913_v19, %v8891_v39 }
 0x5a2   : > { %6326 = vst [vmem:[#allocation18 + $0x48] sm:$0xff] %v6310_v37  ;;  %6328 = vst [vmem:[#allocation18 + $0x58] sm:$0xff] %v6312_v56  ;;  %v6233_v35 = vmul.f32 %v8909_v30, %v6216_v63  ;;  %v6232_v6 = vmul.f32 %v8909_v30, %v6215_v28  ;;  %v6241_v9 = vmul.f32 %v8913_v19, %v8893_v17 }
 0x5a3   : > { %v6243_v11 = vmul.f32 %v8913_v19, %v8895_v52  ;;  %v6248_v10 = vmul.f32 %v8913_v19, %v8897_v38  ;;  %v4557_v53 = vrot.slane %v8921_v36, %v4556_v0  ;;  %v6250_v22 = vmul.f32 %v8913_v19, %v8899_v26 }
 0x5a4   : > { %v6249_v39 = vmul.f32 %v8913_v19, %v8901_v58  ;;  %v4565_v45 = vrot.slane %v8921_v36, %v4564_v18  ;;  %v4561_v12 = vrot.slane %v8921_v36, %v4560_v46  ;;  %v6234_v17 = vmul.f32 %v8909_v30, %v6217_v7 }
 0x5a5   : > { %v6251_v52 = vmul.f32 %v8913_v19, %v8903_v62  ;;  %v4569_v16 = vrot.slane %v8921_v36, %v4568_v3  ;;  %v6256_v38 = vsub.f32 %v6223_v15, %v6240_v27  ;;  %v6258_v21 = vsub.f32 %v6225_v31, %v6242_v4 }
 0x5a6   : > { %v6257_v25 = vsub.f32 %v6224_v48, %v6241_v9  ;;  %v6259_v13 = vsub.f32 %v6226_v8, %v6243_v11  ;;  %v6264_v26 = vsub.f32 %v6231_v2, %v6248_v10  ;;  %v6266_v41 = vsub.f32 %v6233_v35, %v6250_v22 }
 0x5a7   : > { %v6265_v42 = vsub.f32 %v6232_v6, %v6249_v39  ;;  %v6267_v14 = vsub.f32 %v6234_v17, %v6251_v52 }
 0x616   : > { %v6107_v24 = vpop.f32.mrb[12].mxu0  ;;  %v6193_v32 = vpop.f32.mrb[12].mxu1 }
 0x617   : > { %v7496_v34 = vadd.f32 %v6107_v24, %v4557_v53  ;;  %v6109_v58 = vpop.f32.mrb[13].mxu0  ;;  %v7500_v43 = vadd.f32 %v6193_v32, %v4565_v45  ;;  %v6195_v44 = vpop.f32.mrb[13].mxu1 }
 0x618   : > { %v7497_v20 = vadd.f32 %v6109_v58, %v4561_v12  ;;  %v6111_v30 = vpop.f32.mrb[14].mxu0  ;;  %v7501_v19 = vadd.f32 %v6195_v44, %v4569_v16  ;;  %v6197_v49 = vpop.f32.mrb[14].mxu1 }
 0x619   : > { %v6273_v62 = vmul.f32 %v7496_v34, %v8953_v47  ;;  %v7498_v36 = vadd.f32 %v6111_v30, %v4557_v53  ;;  %v6113_v50 = vpop.f32.mrb[15].mxu0  ;;  %v6275_v51 = vmul.f32 %v7500_v43, %v8953_v47  ;;  %v7502_v55 = vadd.f32 %v6197_v49, %v4565_v45  ;;  %v6199_v33 = vpop.f32.mrb[15].mxu1 }
 0x61a   : > { %v6274_v29 = vmul.f32 %v7497_v20, %v8953_v47  ;;  %v7499_v59 = vadd.f32 %v6113_v50, %v4561_v12  ;;  %v6276_v57 = vmul.f32 %v7501_v19, %v8953_v47  ;;  %v7503_v37 = vadd.f32 %v6199_v33, %v4569_v16 }
 0x61b   : > { %v6289_v5 = vadd.f32 %v6273_v62, %v6256_v38  ;;  %v6281_v54 = vmul.f32 %v7498_v36, %v8953_v47  ;;  %v6291_v56 = vadd.f32 %v6275_v51, %v6258_v21  ;;  %v6283_v1 = vmul.f32 %v7502_v55, %v8953_v47 }
 0x61c   : > { %v6290_v60 = vadd.f32 %v6274_v29, %v6257_v25  ;;  %v6282_v40 = vmul.f32 %v7499_v59, %v8953_v47  ;;  %v6292_v61 = vadd.f32 %v6276_v57, %v6259_v13  ;;  %v6284_v28 = vmul.f32 %v7503_v37, %v8953_v47 }
 0x61d   : > { %v6305_v23 = vmax.f32 %v6289_v5, 0.0  ;;  %v6297_v63 = vadd.f32 %v6281_v54, %v6264_v26  ;;  %v6307_v0 = vmax.f32 %v6291_v56, 0.0  ;;  %v6299_v31 = vadd.f32 %v6283_v1, %v6266_v41 }
 0x61e   : > { %v6306_v15 = vmax.f32 %v6290_v60, 0.0  ;;  %v6298_v18 = vadd.f32 %v6282_v40, %v6265_v42  ;;  %v6308_v46 = vmax.f32 %v6292_v61, 0.0  ;;  %v6300_v8 = vadd.f32 %v6284_v28, %v6267_v14 }
 0x61f   : > { %6321 = vst [vmem:[#allocation18 + $0x20] sm:$0xff] %v6305_v23  ;;  %v6313_v48 = vmax.f32 %v6297_v63, 0.0  ;;  %6323 = vst [vmem:[#allocation18 + $0x30] sm:$0xff] %v6307_v0  ;;  %v6315_v2 = vmax.f32 %v6299_v31, 0.0 }
 0x620   : > { %6322 = vst [vmem:[#allocation18 + $0x28] sm:$0xff] %v6306_v15  ;;  %v6314_v3 = vmax.f32 %v6298_v18, 0.0  ;;  %6324 = vst [vmem:[#allocation18 + $0x38] sm:$0xff] %v6308_v46  ;;  %v6316_v27 = vmax.f32 %v6300_v8, 0.0 }
 0x621   : > { %6329 = vst [vmem:[#allocation18 + $0x60] sm:$0xff] %v6313_v48  ;;  %6331 = vst [vmem:[#allocation18 + $0x70] sm:$0xff] %v6315_v2 }
 0x622   : > { %6330 = vst [vmem:[#allocation18 + $0x68] sm:$0xff] %v6314_v3  ;;  %6332 = vst [vmem:[#allocation18 + $0x78] sm:$0xff] %v6316_v27 }
 0x623 PF: > { %p7722_p2 = scmp.eq.s32.totalorder %s8490_s14, 1  ;;  %s8421_s9 = smov [#allocation18]  }
 0x624   : > { %s6348_s29 = sshll.u32 %s8421_s9, 4  ;;  %s6349_s29 = int_to_ptr.vmem [resolvable:$true] %s6348_s29 }
 0x625   : > { %s8330_s8 = scalar_lea.vmem %s6349_s29, 2048  ;;  %s8336_s18 = scalar_lea.vmem %s6349_s29, 4096 }
 0x626   : > { %p8331_p7 = scmp.ne.s32.totalorder %s6349_s29, %s8330_s8  ;;  %p8337_p0 = scmp.lt.s32.totalorder %s6349_s29, %s6349_s29 }
 0x627   : > { %p8338_p11 = scmp.lt.s32.totalorder %s8336_s18, %s8330_s8 }
 0x628   : > { %p8332_p4 = pnand %p8331_p7, %p7722_p2 }
 0x629   : > { %p8339_p1 = por %p8338_p11, %p8337_p0 }
 0x62a   : > { %p8333_p9 = pneg %p8332_p4 }
 0x62c   : > { %p8340_p12 = pnand %p8339_p1, %p8333_p9 }
 0x62e   : > { %8343 = shalt.err (!%p8340_p12)
}
 0x62f   : > { %s9100_s12 = sld [smem:[#allocation31_spill]] }
 0x635   : > { %s8344_s7 = scalar_lea.hbm %s9100_s12, 2048 }
 0x636   : > { %p8345_p3 = scmp.ne.s32.totalorder %s9100_s12, %s8344_s7  ;;  %p8350_p8 = scmp.lt.u32.totalorder %s8344_s7, %s9100_s12 }
 0x638   : > { %p8346_p5 = pnand %p8345_p3, %p7722_p2 }
 0x63a   : > { %p8347_p10 = pneg %p8346_p5 }
 0x63c   : > { %p8352_p13 = pnand %p8350_p8, %p8347_p10 }
 0x63e   : > { %8355 = shalt.err (!%p8352_p13)
}
 0x63f   : > { %s8422_s13 = smov 1024   ;;  %s8423_s16 = smov 64  }
 0x640   : > { %7677 = dma.vmem_to_hbm [thread:$0]  (%p7722_p2), %s6349_s29, 2048, %s9100_s12, [#allocation7], %s8422_s13, %s8422_s13, %s8423_s16  }
 0x641 PF: > { %s9101_s26 = sadd.s32 4294967294, %s8406_s11   ;;  %p9102_p7 = scmp.ge.s32.totalorder %s8406_s11, 2 }
 0x642   : > { %p7724_p6 = scmp.eq.s32.totalorder %s9101_s26, 1 }
 0x644   : > { %p7704_p4 = pnand %p7724_p6, %p9102_p7 }
 0x646   : > { %8393 = dma.done.wait (!%p7704_p4), [#allocation7], 2048  }
 0x647   : > { %8395 = vsyncadd (!%p7704_p4), [#allocation7], 4294965248  ;;  %s31_s11 = sadd.s32 1, %s8406_s11   ;;  %s9103_s30 = smov %s8402_s10 }
 0x648   : > { %p28_p9 = scmp.ge.s32.totalorder %s31_s11, 4   ;;  %s9104_s10 = smov %s9106_s21 }
 0x64a   :  { %30 = sbr.rel (!%p28_p9) target bundleno = 17 (0x11), region = 164 }
 0x651   :  { %6369 = vsyncpa [#allocation6], 1 }
 0x652   :  { %6371 = vsyncpa [#allocation6 + $0x1], 1 }
 0x653   :  { %6372 = vsyncpa [#allocation11], 1 }
 0x654   :  { %6374 = vsyncpa [#allocation11 + $0x1], 1 }
 0x655   :  { %6375 = vsyncpa [#allocation14], 1 }
 0x656   :  { %6377 = vsyncpa [#allocation14 + $0x1], 1 }
 0x657   :  { %6378 = vsyncpa [#allocation17], 1 }
 0x658   :  { %6379 = vsyncpa [#allocation7], 1 }
 0x659   :  { %6381 = vsyncpa [#allocation7 + $0x1], 1 }
 0x65a   :  { %6382 = vsyncpa [#allocation8], 1 }
 0x65b   :  { %6384 = vsyncpa [#allocation8 + $0x1], 1 }

</bundles_post_ra>
